<compile_context>
chip_gen: v5e
topology: v5e:2x2
jax: 0.10.0
libtpu: 0.0.40
codegen_flags: <defaults>
</compile_context>

<pallas_src>
import functools

import jax
import jax.numpy as jnp
from jax import lax
from jax.experimental import pallas as pl
from jax.experimental.pallas import tpu as pltpu


_LANE = 128
_VMEM_SPEC = pl.BlockSpec(memory_space=pltpu.MemorySpace.VMEM)


def _round_up(x, m):
    return ((x + m - 1) // m) * m


# ----------------------------------------------------------------------------
# Parameter packing: all weights/biases into one lane-padded (R, 128) slab.
# ----------------------------------------------------------------------------

def _pack_params(entries):
    """entries: list of (name, 1D/2D f32 array).  Returns (slab, layout)."""
    layout = {}
    blocks = []
    off = 0
    for name, a in entries:
        a = jnp.asarray(a, jnp.float32)
        if a.ndim == 1:
            a = a.reshape(1, -1)
        r, c = a.shape
        assert c <= _LANE, f"param {name} wider than one lane tile ({c} > {_LANE})"
        rpad = _round_up(r, 8)                       # keep slices sublane-aligned
        blk = jnp.zeros((rpad, _LANE), jnp.float32).at[:r, :c].set(a)
        layout[name] = (off, r, c)
        blocks.append(blk)
        off += rpad
    return jnp.concatenate(blocks, axis=0), layout


# ----------------------------------------------------------------------------
# The single fused kernel: whole SoftPoolingGcnEncoder forward.
# ----------------------------------------------------------------------------

def _forward_kernel(x_ref, adj_ref, mask_ref, p_ref, out_ref, *,
                    layout, num_layers, num_pooling, num_pred_layers):

    def P(name):
        off, r, c = layout[name]
        return p_ref[off:off + r, :c]

    def gcn_stack(h_chunks, adjs, prefix, add_self, mask):
        """conv_first -> ReLU -> BN, conv_block..., conv_last, all L2-normalized.

        h_chunks: list of (B, Nc, d_i) input chunks; the first layer's weight is
        row-block sliced per chunk, so no lane concatenation ever materializes.
        adjs: per-batch (Nc, Nc) adjacency matrices.
        Returns the per-layer output chunks (masked if `mask` is given).
        """
        Bn, Nc = h_chunks[0].shape[0], h_chunks[0].shape[1]
        out_chunks = []
        for li in range(num_layers):
            w_full = P(f"{prefix}_w{li}")
            dout = w_full.shape[1]

            def rowblock_matmul(chunks, full_w):
                off, acc = 0, None
                for hc in chunks:
                    d = hc.shape[-1]
                    contrib = jnp.dot(hc.reshape(Bn * Nc, d), full_w[off:off + d, :],
                                      preferred_element_type=jnp.float32)
                    acc = contrib if acc is None else acc + contrib
                    off += d
                return acc

            # feature projection (batch folded into the MXU M dimension)
            xw = rowblock_matmul(h_chunks, w_full).reshape(Bn, Nc, dout)
            # adjacency aggregation, unrolled over the tiny static batch
            y = jnp.concatenate(
                [jnp.dot(adjs[b], xw[b], preferred_element_type=jnp.float32)[None]
                 for b in range(Bn)], axis=0)
            if add_self:
                se = rowblock_matmul(h_chunks, P(f"{prefix}_sw{li}"))
                y = y + se.reshape(Bn, Nc, dout)
            y = y + P(f"{prefix}_b{li}")                       # (1, dout) broadcast

            # F.normalize(y, p=2, dim=2), eps=1e-12; rsqrt -> EUP slot
            ss = jnp.sum(y * y, axis=-1, keepdims=True)
            y = y * lax.rsqrt(jnp.maximum(ss, 1e-24))

            if li < num_layers - 1:
                y = jnp.maximum(y, 0.0)                        # ReLU
                # Fresh train-mode BatchNorm1d(num_nodes): per-node stats over
                # (batch, feature), biased variance; one-pass sum / sum-of-sq.
                cnt = float(Bn * dout)
                s1 = jnp.sum(jnp.sum(y, axis=2, keepdims=True), axis=0, keepdims=True)
                s2 = jnp.sum(jnp.sum(y * y, axis=2, keepdims=True), axis=0, keepdims=True)
                mean = s1 / cnt
                var = jnp.maximum(s2 / cnt - mean * mean, 0.0)  # clamp cancellation
                y = (y - mean) * lax.rsqrt(var + 1e-5)

            h_chunks = [y]
            out_chunks.append(y * mask if mask is not None else y)
        return out_chunks

    x = x_ref[...]                                   # (B, N, Din)
    mask = mask_ref[...]                             # (B, N, 1)
    B = x.shape[0]
    adjs = [adj_ref[b] for b in range(B)]            # per-batch (N, N)

    readouts = []                                    # list of (B, d) chunks

    # Stage-1 GCN (add_self=True), masked embedding + max-over-nodes readout.
    # NOTE: the max intentionally includes masked (zeroed) padded rows,
    # matching the reference implementation.
    emb_chunks = gcn_stack([x], adjs, "gcn", True, mask)
    readouts += [jnp.max(c, axis=1) for c in emb_chunks]

    x_chunks = [x]
    for p in range(num_pooling):
        pmask = mask if p == 0 else None

        # assignment GCN (add_self=False)
        a_chunks = gcn_stack(x_chunks, adjs, f"assign{p}", False, pmask)

        # assign_pred linear, distributed over assign chunks (no lane concat)
        aw = P(f"apred{p}_w")
        A = aw.shape[1]
        Nc = a_chunks[0].shape[1]
        off, logits = 0, None
        for c in a_chunks:
            d = c.shape[-1]
            contrib = jnp.dot(c.reshape(B * Nc, d), aw[off:off + d, :],
                              preferred_element_type=jnp.float32)
            logits = contrib if logits is None else logits + contrib
            off += d
        logits = logits.reshape(B, Nc, A) + P(f"apred{p}_b")

        # softmax over clusters; approx reciprocal rides the otherwise-idle EUP
        m = jnp.max(logits, axis=-1, keepdims=True)
        e = jnp.exp(logits - m)
        s = e * pl.reciprocal(jnp.sum(e, axis=-1, keepdims=True), approx=True)
        if pmask is not None:
            s = s * pmask

        # DiffPool: x_new = s^T @ emb (per chunk), adj_new = s^T @ adj @ s
        new_adjs = []
        new_x_chunks = [[] for _ in emb_chunks]
        for b in range(B):
            st = s[b].T                                        # (A, Nc)
            for ci, c in enumerate(emb_chunks):
                new_x_chunks[ci].append(
                    jnp.dot(st, c[b], preferred_element_type=jnp.float32)[None])
            t = jnp.dot(st, adjs[b], preferred_element_type=jnp.float32)
            new_adjs.append(jnp.dot(t, s[b], preferred_element_type=jnp.float32))
        x_chunks = [jnp.concatenate(cs, axis=0) for cs in new_x_chunks]
        adjs = new_adjs

        # after-pool GCN (add_self=False, no mask) + readout
        emb_chunks = gcn_stack(x_chunks, adjs, f"pool{p}", False, None)
        readouts += [jnp.max(c, axis=1) for c in emb_chunks]

    # Prediction MLP.  First Linear is distributed over the readout chunks
    # (== Linear on the concatenated readout).  The last layer's weight/bias
    # were lane-padded to 128 outputs, so the single output store is lane-dense.
    w0 = P("pred_w0")
    off, h = 0, None
    for r in readouts:
        d = r.shape[-1]
        contrib = jnp.dot(r, w0[off:off + d, :], preferred_element_type=jnp.float32)
        h = contrib if h is None else h + contrib
        off += d
    h = h + P("pred_b0")
    for li in range(1, num_pred_layers):
        h = jnp.maximum(h, 0.0)
        h = jnp.dot(h, P(f"pred_w{li}"),
                    preferred_element_type=jnp.float32) + P(f"pred_b{li}")
    out_ref[...] = h


# ----------------------------------------------------------------------------
# Wrapper: one pallas_call for the whole forward.
# ----------------------------------------------------------------------------

def soft_pooling_gcn_forward(params, x, adj, batch_num_nodes):
    B, N, _ = x.shape
    mask = (jnp.arange(N)[None, :] < batch_num_nodes[:, None]
            ).astype(jnp.float32)[:, :, None]                  # [B, N, 1]
    cfg = params["config"]
    kernel = functools.partial(
        _forward_kernel,
        layout=params["layout"],
        num_layers=cfg["num_layers"],
        num_pooling=cfg["num_pooling"],
        num_pred_layers=cfg["num_pred_layers"])
    # TODO(synk): at realistic DiffPool sizes add a batch grid (with a CMEM
    # cross-core combine for the batch-coupled BatchNorm) instead of the
    # whole-batch-resident VMEM design used here for these tiny shapes.
    out = pl.pallas_call(
        kernel,
        out_shape=jax.ShapeDtypeStruct((B, _LANE), jnp.float32),
        in_specs=[_VMEM_SPEC] * 4,
        out_specs=_VMEM_SPEC,
        compiler_params=pltpu.CompilerParams(vmem_limit_bytes=32 * 1024 * 1024),
    )(x, adj, mask, params["slab"])
    return out[:, :cfg["label_dim"]]


# ----------------------------------------------------------------------------
# Deterministic parameter construction (shapes per the module __init__),
# packed into a single slab.
# ----------------------------------------------------------------------------

def _xavier_uniform(key, fan_in, fan_out, gain=2.0 ** 0.5):
    a = gain * (6.0 / (fan_in + fan_out)) ** 0.5
    return jax.random.uniform(key, (fan_in, fan_out), jnp.float32, -a, a)


def build_params(key, *, max_num_nodes, input_dim, hidden_dim, embedding_dim,
                 label_dim, num_layers, assign_hidden_dim, assign_ratio,
                 num_pooling, pred_hidden_dims):
    assert label_dim <= _LANE
    concat = True
    add_self_pre = True            # GcnEncoderGraph default add_self=True
    add_self_post = not concat     # SoftPoolingGcnEncoder: add_self = not concat
    pred_input_dim = hidden_dim * (num_layers - 1) + embedding_dim

    n_keys = 2 * num_layers + num_pooling * (4 * num_layers + 1) \
        + len(pred_hidden_dims) + 1 + 4
    keys = list(jax.random.split(key, n_keys))

    def nk():
        return keys.pop()

    entries = []

    def add_gcn(prefix, din, hidden, dout, add_self):
        dims = [(din, hidden)] + [(hidden, hidden)] * (num_layers - 2) + [(hidden, dout)]
        for l, (di, do) in enumerate(dims):
            entries.append((f"{prefix}_w{l}", _xavier_uniform(nk(), di, do)))
            if add_self:
                entries.append((f"{prefix}_sw{l}", _xavier_uniform(nk(), di, do)))
            entries.append((f"{prefix}_b{l}", jnp.zeros((do,), jnp.float32)))

    add_gcn("gcn", input_dim, hidden_dim, embedding_dim, add_self_pre)

    assign_input_dim = input_dim
    assign_dim = int(max_num_nodes * assign_ratio)
    for p in range(num_pooling):
        add_gcn(f"assign{p}", assign_input_dim, assign_hidden_dim, assign_dim,
                add_self_post)
        assign_pred_in = assign_hidden_dim * (num_layers - 1) + assign_dim
        entries.append((f"apred{p}_w",
                        _xavier_uniform(nk(), assign_pred_in, assign_dim, gain=1.0)))
        entries.append((f"apred{p}_b", jnp.zeros((assign_dim,), jnp.float32)))
        add_gcn(f"pool{p}", pred_input_dim, hidden_dim, embedding_dim, add_self_post)
        assign_input_dim = embedding_dim
        assign_dim = int(assign_dim * assign_ratio)

    # pred_model: Linear(pred_input_dim*(P+1), 50) -> ReLU -> Linear(50, label)
    pred_dims = []
    fin = pred_input_dim * (num_pooling + 1)
    for hdim in pred_hidden_dims:
        pred_dims.append((fin, hdim))
        fin = hdim
    pred_dims.append((fin, label_dim))
    n_pred = len(pred_dims)
    for li, (di, do) in enumerate(pred_dims):
        w = _xavier_uniform(nk(), di, do, gain=1.0)
        b = jnp.zeros((do,), jnp.float32)
        if li == n_pred - 1:
            # lane-pad the final layer so the kernel's only store is lane-dense
            w = jnp.pad(w, ((0, 0), (0, _LANE - do)))
            b = jnp.pad(b, (0, _LANE - do))
        entries.append((f"pred_w{li}", w))
        entries.append((f"pred_b{li}", b))

    slab, layout = _pack_params(entries)
    return {"slab": slab, "layout": layout,
            "config": {"num_layers": num_layers, "num_pooling": num_pooling,
                       "num_pred_layers": n_pred, "label_dim": label_dim}}


# ----------------------------------------------------------------------------
if __name__ == "__main__":
    # small configuration consistent with the module defaults
    B = 2
    max_num_nodes = 16
    input_dim = 8
    hidden_dim = 16
    embedding_dim = 16
    label_dim = 4
    num_layers = 3
    assign_hidden_dim = 16
    assign_ratio = 0.25
    num_pooling = 1
    pred_hidden_dims = [50]

    key = jax.random.PRNGKey(0)
    k_param, k_x, k_adj = jax.random.split(key, 3)

    params = build_params(
        k_param, max_num_nodes=max_num_nodes, input_dim=input_dim,
        hidden_dim=hidden_dim, embedding_dim=embedding_dim, label_dim=label_dim,
        num_layers=num_layers, assign_hidden_dim=assign_hidden_dim,
        assign_ratio=assign_ratio, num_pooling=num_pooling,
        pred_hidden_dims=pred_hidden_dims)

    # inputs
    x = jax.random.normal(k_x, (B, max_num_nodes, input_dim), jnp.float32)
    a_rand = jax.random.uniform(k_adj, (B, max_num_nodes, max_num_nodes))
    adj = (a_rand + jnp.swapaxes(a_rand, 1, 2) > 1.0).astype(jnp.float32)
    adj = adj + jnp.eye(max_num_nodes, dtype=jnp.float32)[None]
    batch_num_nodes = jnp.array([16, 12], dtype=jnp.int32)

    fwd = jax.jit(functools.partial(soft_pooling_gcn_forward, params))
    ypred = jax.block_until_ready(fwd(x, adj, batch_num_nodes))
    assert ypred.shape == (B, label_dim)
    assert bool(jnp.all(jnp.isfinite(ypred)))
    print("KERNEL_OK")
</pallas_src>

<mosaic_0001>
module attributes {stable_mosaic.version = 11 : i64} {
  func.func @_forward_kernel(%arg0: memref<2x16x8xf32, #tpu.memory_space<vmem>>, %arg1: memref<2x16x16xf32, #tpu.memory_space<vmem>>, %arg2: memref<2x16x1xf32, #tpu.memory_space<vmem>>, %arg3: memref<488x128xf32, #tpu.memory_space<vmem>>, %arg4: memref<2x128xf32, #tpu.memory_space<vmem>>) attributes {dimension_semantics = [], scalar_prefetch = 0 : i64, scratch_operands = 0 : i64, tpu.core_type = #tpu.core_type<tc>} {
    %c0 = arith.constant 0 : index
    %c0_0 = arith.constant 0 : index
    %c0_1 = arith.constant 0 : index
    %0 = vector.load %arg0[%c0, %c0_0, %c0_1] : memref<2x16x8xf32, #tpu.memory_space<vmem>>, vector<2x16x8xf32>
    %c0_2 = arith.constant 0 : index
    %c0_3 = arith.constant 0 : index
    %c0_4 = arith.constant 0 : index
    %1 = vector.load %arg2[%c0_2, %c0_3, %c0_4] : memref<2x16x1xf32, #tpu.memory_space<vmem>>, vector<2x16x1xf32>
    %c0_5 = arith.constant 0 : index
    %c0_6 = arith.constant 0 : index
    %c0_7 = arith.constant 0 : index
    %2 = vector.load %arg1[%c0_5, %c0_6, %c0_7] : memref<2x16x16xf32, #tpu.memory_space<vmem>>, vector<1x16x16xf32>
    %3 = vector.shape_cast %2 : vector<1x16x16xf32> to vector<16x16xf32>
    %c1 = arith.constant 1 : index
    %c0_8 = arith.constant 0 : index
    %c0_9 = arith.constant 0 : index
    %4 = vector.load %arg1[%c1, %c0_8, %c0_9] : memref<2x16x16xf32, #tpu.memory_space<vmem>>, vector<1x16x16xf32>
    %5 = vector.shape_cast %4 : vector<1x16x16xf32> to vector<16x16xf32>
    %c0_10 = arith.constant 0 : index
    %c0_11 = arith.constant 0 : index
    %6 = vector.load %arg3[%c0_10, %c0_11] : memref<488x128xf32, #tpu.memory_space<vmem>>, vector<8x16xf32>
    %7 = vector.shape_cast %0 : vector<2x16x8xf32> to vector<32x8xf32>
    %cst = arith.constant dense<0.000000e+00> : vector<32x16xf32>
    %8 = tpu.matmul %7, %6, %cst {dimension_numbers = #tpu.dot_dimension_numbers<[1], [0], [0], [1], [0, 0, 1, 1], [], []>} : vector<32x8xf32>, vector<8x16xf32>, vector<32x16xf32> -> vector<32x16xf32>
    %9 = vector.shape_cast %8 : vector<32x16xf32> to vector<2x16x16xf32>
    %10 = vector.extract_strided_slice %9 {offsets = [0, 0, 0], sizes = [1, 16, 16], strides = [1, 1, 1]} : vector<2x16x16xf32> to vector<1x16x16xf32>
    %11 = vector.shape_cast %10 : vector<1x16x16xf32> to vector<16x16xf32>
    %cst_12 = arith.constant dense<0.000000e+00> : vector<16x16xf32>
    %12 = tpu.matmul %3, %11, %cst_12 {dimension_numbers = #tpu.dot_dimension_numbers<[1], [0], [0], [1], [0, 0, 1, 1], [], []>} : vector<16x16xf32>, vector<16x16xf32>, vector<16x16xf32> -> vector<16x16xf32>
    %13 = vector.shape_cast %12 : vector<16x16xf32> to vector<1x16x16xf32>
    %14 = vector.extract_strided_slice %9 {offsets = [1, 0, 0], sizes = [1, 16, 16], strides = [1, 1, 1]} : vector<2x16x16xf32> to vector<1x16x16xf32>
    %15 = vector.shape_cast %14 : vector<1x16x16xf32> to vector<16x16xf32>
    %cst_13 = arith.constant dense<0.000000e+00> : vector<16x16xf32>
    %16 = tpu.matmul %5, %15, %cst_13 {dimension_numbers = #tpu.dot_dimension_numbers<[1], [0], [0], [1], [0, 0, 1, 1], [], []>} : vector<16x16xf32>, vector<16x16xf32>, vector<16x16xf32> -> vector<16x16xf32>
    %17 = vector.shape_cast %16 : vector<16x16xf32> to vector<1x16x16xf32>
    %18 = tpu.concatenate %13, %17 in 0 : vector<1x16x16xf32>, vector<1x16x16xf32> -> vector<2x16x16xf32>
    %c8 = arith.constant 8 : index
    %c0_14 = arith.constant 0 : index
    %19 = vector.load %arg3[%c8, %c0_14] : memref<488x128xf32, #tpu.memory_space<vmem>>, vector<8x16xf32>
    %20 = vector.shape_cast %0 : vector<2x16x8xf32> to vector<32x8xf32>
    %cst_15 = arith.constant dense<0.000000e+00> : vector<32x16xf32>
    %21 = tpu.matmul %20, %19, %cst_15 {dimension_numbers = #tpu.dot_dimension_numbers<[1], [0], [0], [1], [0, 0, 1, 1], [], []>} : vector<32x8xf32>, vector<8x16xf32>, vector<32x16xf32> -> vector<32x16xf32>
    %22 = vector.shape_cast %21 : vector<32x16xf32> to vector<2x16x16xf32>
    %23 = arith.addf %18, %22 : vector<2x16x16xf32>
    %c16 = arith.constant 16 : index
    %c0_16 = arith.constant 0 : index
    %24 = vector.load %arg3[%c16, %c0_16] : memref<488x128xf32, #tpu.memory_space<vmem>>, vector<1x16xf32>
    %25 = vector.shape_cast %24 : vector<1x16xf32> to vector<1x1x16xf32>
    %26 = vector.broadcast %25 : vector<1x1x16xf32> to vector<2x16x16xf32>
    %27 = arith.addf %23, %26 : vector<2x16x16xf32>
    %28 = arith.mulf %27, %27 : vector<2x16x16xf32>
    %cst_17 = arith.constant dense<0.000000e+00> : vector<2x16xf32>
    %29 = vector.multi_reduction <add>, %28, %cst_17 [2] : vector<2x16x16xf32> to vector<2x16xf32>
    %30 = vector.shape_cast %29 : vector<2x16xf32> to vector<2x16x1xf32>
    %cst_18 = arith.constant 1.000000e-24 : f32
    %31 = vector.broadcast %cst_18 : f32 to vector<2x16x1xf32>
    %32 = arith.maximumf %30, %31 : vector<2x16x1xf32>
    %33 = math.rsqrt %32 : vector<2x16x1xf32>
    %34 = vector.broadcast %33 : vector<2x16x1xf32> to vector<2x16x16xf32>
    %35 = arith.mulf %27, %34 : vector<2x16x16xf32>
    %cst_19 = arith.constant 0.000000e+00 : f32
    %36 = vector.broadcast %cst_19 : f32 to vector<2x16x16xf32>
    %37 = arith.maximumf %35, %36 : vector<2x16x16xf32>
    %cst_20 = arith.constant dense<0.000000e+00> : vector<2x16xf32>
    %38 = vector.multi_reduction <add>, %37, %cst_20 [2] : vector<2x16x16xf32> to vector<2x16xf32>
    %39 = vector.shape_cast %38 : vector<2x16xf32> to vector<2x16x1xf32>
    %cst_21 = arith.constant dense<0.000000e+00> : vector<16x1xf32>
    %40 = vector.multi_reduction <add>, %39, %cst_21 [0] : vector<2x16x1xf32> to vector<16x1xf32>
    %41 = vector.shape_cast %40 : vector<16x1xf32> to vector<1x16x1xf32>
    %42 = arith.mulf %37, %37 : vector<2x16x16xf32>
    %cst_22 = arith.constant dense<0.000000e+00> : vector<2x16xf32>
    %43 = vector.multi_reduction <add>, %42, %cst_22 [2] : vector<2x16x16xf32> to vector<2x16xf32>
    %44 = vector.shape_cast %43 : vector<2x16xf32> to vector<2x16x1xf32>
    %cst_23 = arith.constant dense<0.000000e+00> : vector<16x1xf32>
    %45 = vector.multi_reduction <add>, %44, %cst_23 [0] : vector<2x16x1xf32> to vector<16x1xf32>
    %46 = vector.shape_cast %45 : vector<16x1xf32> to vector<1x16x1xf32>
    %cst_24 = arith.constant 3.200000e+01 : f32
    %47 = vector.broadcast %cst_24 : f32 to vector<1x16x1xf32>
    %48 = arith.divf %41, %47 : vector<1x16x1xf32>
    %cst_25 = arith.constant 3.200000e+01 : f32
    %49 = vector.broadcast %cst_25 : f32 to vector<1x16x1xf32>
    %50 = arith.divf %46, %49 : vector<1x16x1xf32>
    %51 = arith.mulf %48, %48 : vector<1x16x1xf32>
    %52 = arith.subf %50, %51 : vector<1x16x1xf32>
    %cst_26 = arith.constant 0.000000e+00 : f32
    %53 = vector.broadcast %cst_26 : f32 to vector<1x16x1xf32>
    %54 = arith.maximumf %52, %53 : vector<1x16x1xf32>
    %55 = vector.broadcast %48 : vector<1x16x1xf32> to vector<2x16x16xf32>
    %56 = arith.subf %37, %55 : vector<2x16x16xf32>
    %cst_27 = arith.constant 9.99999974E-6 : f32
    %57 = vector.broadcast %cst_27 : f32 to vector<1x16x1xf32>
    %58 = arith.addf %54, %57 : vector<1x16x1xf32>
    %59 = math.rsqrt %58 : vector<1x16x1xf32>
    %60 = vector.broadcast %59 : vector<1x16x1xf32> to vector<2x16x16xf32>
    %61 = arith.mulf %56, %60 : vector<2x16x16xf32>
    %62 = vector.broadcast %1 : vector<2x16x1xf32> to vector<2x16x16xf32>
    %63 = arith.mulf %61, %62 : vector<2x16x16xf32>
    %c24 = arith.constant 24 : index
    %c0_28 = arith.constant 0 : index
    %64 = vector.load %arg3[%c24, %c0_28] : memref<488x128xf32, #tpu.memory_space<vmem>>, vector<16x16xf32>
    %65 = vector.shape_cast %61 : vector<2x16x16xf32> to vector<32x16xf32>
    %cst_29 = arith.constant dense<0.000000e+00> : vector<32x16xf32>
    %66 = tpu.matmul %65, %64, %cst_29 {dimension_numbers = #tpu.dot_dimension_numbers<[1], [0], [0], [1], [0, 0, 1, 1], [], []>} : vector<32x16xf32>, vector<16x16xf32>, vector<32x16xf32> -> vector<32x16xf32>
    %67 = vector.shape_cast %66 : vector<32x16xf32> to vector<2x16x16xf32>
    %68 = vector.extract_strided_slice %67 {offsets = [0, 0, 0], sizes = [1, 16, 16], strides = [1, 1, 1]} : vector<2x16x16xf32> to vector<1x16x16xf32>
    %69 = vector.shape_cast %68 : vector<1x16x16xf32> to vector<16x16xf32>
    %cst_30 = arith.constant dense<0.000000e+00> : vector<16x16xf32>
    %70 = tpu.matmul %3, %69, %cst_30 {dimension_numbers = #tpu.dot_dimension_numbers<[1], [0], [0], [1], [0, 0, 1, 1], [], []>} : vector<16x16xf32>, vector<16x16xf32>, vector<16x16xf32> -> vector<16x16xf32>
    %71 = vector.shape_cast %70 : vector<16x16xf32> to vector<1x16x16xf32>
    %72 = vector.extract_strided_slice %67 {offsets = [1, 0, 0], sizes = [1, 16, 16], strides = [1, 1, 1]} : vector<2x16x16xf32> to vector<1x16x16xf32>
    %73 = vector.shape_cast %72 : vector<1x16x16xf32> to vector<16x16xf32>
    %cst_31 = arith.constant dense<0.000000e+00> : vector<16x16xf32>
    %74 = tpu.matmul %5, %73, %cst_31 {dimension_numbers = #tpu.dot_dimension_numbers<[1], [0], [0], [1], [0, 0, 1, 1], [], []>} : vector<16x16xf32>, vector<16x16xf32>, vector<16x16xf32> -> vector<16x16xf32>
    %75 = vector.shape_cast %74 : vector<16x16xf32> to vector<1x16x16xf32>
    %76 = tpu.concatenate %71, %75 in 0 : vector<1x16x16xf32>, vector<1x16x16xf32> -> vector<2x16x16xf32>
    %c40 = arith.constant 40 : index
    %c0_32 = arith.constant 0 : index
    %77 = vector.load %arg3[%c40, %c0_32] : memref<488x128xf32, #tpu.memory_space<vmem>>, vector<16x16xf32>
    %78 = vector.shape_cast %61 : vector<2x16x16xf32> to vector<32x16xf32>
    %cst_33 = arith.constant dense<0.000000e+00> : vector<32x16xf32>
    %79 = tpu.matmul %78, %77, %cst_33 {dimension_numbers = #tpu.dot_dimension_numbers<[1], [0], [0], [1], [0, 0, 1, 1], [], []>} : vector<32x16xf32>, vector<16x16xf32>, vector<32x16xf32> -> vector<32x16xf32>
    %80 = vector.shape_cast %79 : vector<32x16xf32> to vector<2x16x16xf32>
    %81 = arith.addf %76, %80 : vector<2x16x16xf32>
    %c56 = arith.constant 56 : index
    %c0_34 = arith.constant 0 : index
    %82 = vector.load %arg3[%c56, %c0_34] : memref<488x128xf32, #tpu.memory_space<vmem>>, vector<1x16xf32>
    %83 = vector.shape_cast %82 : vector<1x16xf32> to vector<1x1x16xf32>
    %84 = vector.broadcast %83 : vector<1x1x16xf32> to vector<2x16x16xf32>
    %85 = arith.addf %81, %84 : vector<2x16x16xf32>
    %86 = arith.mulf %85, %85 : vector<2x16x16xf32>
    %cst_35 = arith.constant dense<0.000000e+00> : vector<2x16xf32>
    %87 = vector.multi_reduction <add>, %86, %cst_35 [2] : vector<2x16x16xf32> to vector<2x16xf32>
    %88 = vector.shape_cast %87 : vector<2x16xf32> to vector<2x16x1xf32>
    %cst_36 = arith.constant 1.000000e-24 : f32
    %89 = vector.broadcast %cst_36 : f32 to vector<2x16x1xf32>
    %90 = arith.maximumf %88, %89 : vector<2x16x1xf32>
    %91 = math.rsqrt %90 : vector<2x16x1xf32>
    %92 = vector.broadcast %91 : vector<2x16x1xf32> to vector<2x16x16xf32>
    %93 = arith.mulf %85, %92 : vector<2x16x16xf32>
    %cst_37 = arith.constant 0.000000e+00 : f32
    %94 = vector.broadcast %cst_37 : f32 to vector<2x16x16xf32>
    %95 = arith.maximumf %93, %94 : vector<2x16x16xf32>
    %cst_38 = arith.constant dense<0.000000e+00> : vector<2x16xf32>
    %96 = vector.multi_reduction <add>, %95, %cst_38 [2] : vector<2x16x16xf32> to vector<2x16xf32>
    %97 = vector.shape_cast %96 : vector<2x16xf32> to vector<2x16x1xf32>
    %cst_39 = arith.constant dense<0.000000e+00> : vector<16x1xf32>
    %98 = vector.multi_reduction <add>, %97, %cst_39 [0] : vector<2x16x1xf32> to vector<16x1xf32>
    %99 = vector.shape_cast %98 : vector<16x1xf32> to vector<1x16x1xf32>
    %100 = arith.mulf %95, %95 : vector<2x16x16xf32>
    %cst_40 = arith.constant dense<0.000000e+00> : vector<2x16xf32>
    %101 = vector.multi_reduction <add>, %100, %cst_40 [2] : vector<2x16x16xf32> to vector<2x16xf32>
    %102 = vector.shape_cast %101 : vector<2x16xf32> to vector<2x16x1xf32>
    %cst_41 = arith.constant dense<0.000000e+00> : vector<16x1xf32>
    %103 = vector.multi_reduction <add>, %102, %cst_41 [0] : vector<2x16x1xf32> to vector<16x1xf32>
    %104 = vector.shape_cast %103 : vector<16x1xf32> to vector<1x16x1xf32>
    %cst_42 = arith.constant 3.200000e+01 : f32
    %105 = vector.broadcast %cst_42 : f32 to vector<1x16x1xf32>
    %106 = arith.divf %99, %105 : vector<1x16x1xf32>
    %cst_43 = arith.constant 3.200000e+01 : f32
    %107 = vector.broadcast %cst_43 : f32 to vector<1x16x1xf32>
    %108 = arith.divf %104, %107 : vector<1x16x1xf32>
    %109 = arith.mulf %106, %106 : vector<1x16x1xf32>
    %110 = arith.subf %108, %109 : vector<1x16x1xf32>
    %cst_44 = arith.constant 0.000000e+00 : f32
    %111 = vector.broadcast %cst_44 : f32 to vector<1x16x1xf32>
    %112 = arith.maximumf %110, %111 : vector<1x16x1xf32>
    %113 = vector.broadcast %106 : vector<1x16x1xf32> to vector<2x16x16xf32>
    %114 = arith.subf %95, %113 : vector<2x16x16xf32>
    %cst_45 = arith.constant 9.99999974E-6 : f32
    %115 = vector.broadcast %cst_45 : f32 to vector<1x16x1xf32>
    %116 = arith.addf %112, %115 : vector<1x16x1xf32>
    %117 = math.rsqrt %116 : vector<1x16x1xf32>
    %118 = vector.broadcast %117 : vector<1x16x1xf32> to vector<2x16x16xf32>
    %119 = arith.mulf %114, %118 : vector<2x16x16xf32>
    %120 = vector.broadcast %1 : vector<2x16x1xf32> to vector<2x16x16xf32>
    %121 = arith.mulf %119, %120 : vector<2x16x16xf32>
    %c64 = arith.constant 64 : index
    %c0_46 = arith.constant 0 : index
    %122 = vector.load %arg3[%c64, %c0_46] : memref<488x128xf32, #tpu.memory_space<vmem>>, vector<16x16xf32>
    %123 = vector.shape_cast %119 : vector<2x16x16xf32> to vector<32x16xf32>
    %cst_47 = arith.constant dense<0.000000e+00> : vector<32x16xf32>
    %124 = tpu.matmul %123, %122, %cst_47 {dimension_numbers = #tpu.dot_dimension_numbers<[1], [0], [0], [1], [0, 0, 1, 1], [], []>} : vector<32x16xf32>, vector<16x16xf32>, vector<32x16xf32> -> vector<32x16xf32>
    %125 = vector.shape_cast %124 : vector<32x16xf32> to vector<2x16x16xf32>
    %126 = vector.extract_strided_slice %125 {offsets = [0, 0, 0], sizes = [1, 16, 16], strides = [1, 1, 1]} : vector<2x16x16xf32> to vector<1x16x16xf32>
    %127 = vector.shape_cast %126 : vector<1x16x16xf32> to vector<16x16xf32>
    %cst_48 = arith.constant dense<0.000000e+00> : vector<16x16xf32>
    %128 = tpu.matmul %3, %127, %cst_48 {dimension_numbers = #tpu.dot_dimension_numbers<[1], [0], [0], [1], [0, 0, 1, 1], [], []>} : vector<16x16xf32>, vector<16x16xf32>, vector<16x16xf32> -> vector<16x16xf32>
    %129 = vector.shape_cast %128 : vector<16x16xf32> to vector<1x16x16xf32>
    %130 = vector.extract_strided_slice %125 {offsets = [1, 0, 0], sizes = [1, 16, 16], strides = [1, 1, 1]} : vector<2x16x16xf32> to vector<1x16x16xf32>
    %131 = vector.shape_cast %130 : vector<1x16x16xf32> to vector<16x16xf32>
    %cst_49 = arith.constant dense<0.000000e+00> : vector<16x16xf32>
    %132 = tpu.matmul %5, %131, %cst_49 {dimension_numbers = #tpu.dot_dimension_numbers<[1], [0], [0], [1], [0, 0, 1, 1], [], []>} : vector<16x16xf32>, vector<16x16xf32>, vector<16x16xf32> -> vector<16x16xf32>
    %133 = vector.shape_cast %132 : vector<16x16xf32> to vector<1x16x16xf32>
    %134 = tpu.concatenate %129, %133 in 0 : vector<1x16x16xf32>, vector<1x16x16xf32> -> vector<2x16x16xf32>
    %c80 = arith.constant 80 : index
    %c0_50 = arith.constant 0 : index
    %135 = vector.load %arg3[%c80, %c0_50] : memref<488x128xf32, #tpu.memory_space<vmem>>, vector<16x16xf32>
    %136 = vector.shape_cast %119 : vector<2x16x16xf32> to vector<32x16xf32>
    %cst_51 = arith.constant dense<0.000000e+00> : vector<32x16xf32>
    %137 = tpu.matmul %136, %135, %cst_51 {dimension_numbers = #tpu.dot_dimension_numbers<[1], [0], [0], [1], [0, 0, 1, 1], [], []>} : vector<32x16xf32>, vector<16x16xf32>, vector<32x16xf32> -> vector<32x16xf32>
    %138 = vector.shape_cast %137 : vector<32x16xf32> to vector<2x16x16xf32>
    %139 = arith.addf %134, %138 : vector<2x16x16xf32>
    %c96 = arith.constant 96 : index
    %c0_52 = arith.constant 0 : index
    %140 = vector.load %arg3[%c96, %c0_52] : memref<488x128xf32, #tpu.memory_space<vmem>>, vector<1x16xf32>
    %141 = vector.shape_cast %140 : vector<1x16xf32> to vector<1x1x16xf32>
    %142 = vector.broadcast %141 : vector<1x1x16xf32> to vector<2x16x16xf32>
    %143 = arith.addf %139, %142 : vector<2x16x16xf32>
    %144 = arith.mulf %143, %143 : vector<2x16x16xf32>
    %cst_53 = arith.constant dense<0.000000e+00> : vector<2x16xf32>
    %145 = vector.multi_reduction <add>, %144, %cst_53 [2] : vector<2x16x16xf32> to vector<2x16xf32>
    %146 = vector.shape_cast %145 : vector<2x16xf32> to vector<2x16x1xf32>
    %cst_54 = arith.constant 1.000000e-24 : f32
    %147 = vector.broadcast %cst_54 : f32 to vector<2x16x1xf32>
    %148 = arith.maximumf %146, %147 : vector<2x16x1xf32>
    %149 = math.rsqrt %148 : vector<2x16x1xf32>
    %150 = vector.broadcast %149 : vector<2x16x1xf32> to vector<2x16x16xf32>
    %151 = arith.mulf %143, %150 : vector<2x16x16xf32>
    %152 = vector.broadcast %1 : vector<2x16x1xf32> to vector<2x16x16xf32>
    %153 = arith.mulf %151, %152 : vector<2x16x16xf32>
    %cst_55 = arith.constant dense<0xFF800000> : vector<2x16xf32>
    %154 = vector.multi_reduction <maximumf>, %63, %cst_55 [1] : vector<2x16x16xf32> to vector<2x16xf32>
    %cst_56 = arith.constant dense<0xFF800000> : vector<2x16xf32>
    %155 = vector.multi_reduction <maximumf>, %121, %cst_56 [1] : vector<2x16x16xf32> to vector<2x16xf32>
    %cst_57 = arith.constant dense<0xFF800000> : vector<2x16xf32>
    %156 = vector.multi_reduction <maximumf>, %153, %cst_57 [1] : vector<2x16x16xf32> to vector<2x16xf32>
    %c104 = arith.constant 104 : index
    %c0_58 = arith.constant 0 : index
    %157 = vector.load %arg3[%c104, %c0_58] : memref<488x128xf32, #tpu.memory_space<vmem>>, vector<8x16xf32>
    %158 = vector.shape_cast %0 : vector<2x16x8xf32> to vector<32x8xf32>
    %cst_59 = arith.constant dense<0.000000e+00> : vector<32x16xf32>
    %159 = tpu.matmul %158, %157, %cst_59 {dimension_numbers = #tpu.dot_dimension_numbers<[1], [0], [0], [1], [0, 0, 1, 1], [], []>} : vector<32x8xf32>, vector<8x16xf32>, vector<32x16xf32> -> vector<32x16xf32>
    %160 = vector.shape_cast %159 : vector<32x16xf32> to vector<2x16x16xf32>
    %161 = vector.extract_strided_slice %160 {offsets = [0, 0, 0], sizes = [1, 16, 16], strides = [1, 1, 1]} : vector<2x16x16xf32> to vector<1x16x16xf32>
    %162 = vector.shape_cast %161 : vector<1x16x16xf32> to vector<16x16xf32>
    %cst_60 = arith.constant dense<0.000000e+00> : vector<16x16xf32>
    %163 = tpu.matmul %3, %162, %cst_60 {dimension_numbers = #tpu.dot_dimension_numbers<[1], [0], [0], [1], [0, 0, 1, 1], [], []>} : vector<16x16xf32>, vector<16x16xf32>, vector<16x16xf32> -> vector<16x16xf32>
    %164 = vector.shape_cast %163 : vector<16x16xf32> to vector<1x16x16xf32>
    %165 = vector.extract_strided_slice %160 {offsets = [1, 0, 0], sizes = [1, 16, 16], strides = [1, 1, 1]} : vector<2x16x16xf32> to vector<1x16x16xf32>
    %166 = vector.shape_cast %165 : vector<1x16x16xf32> to vector<16x16xf32>
    %cst_61 = arith.constant dense<0.000000e+00> : vector<16x16xf32>
    %167 = tpu.matmul %5, %166, %cst_61 {dimension_numbers = #tpu.dot_dimension_numbers<[1], [0], [0], [1], [0, 0, 1, 1], [], []>} : vector<16x16xf32>, vector<16x16xf32>, vector<16x16xf32> -> vector<16x16xf32>
    %168 = vector.shape_cast %167 : vector<16x16xf32> to vector<1x16x16xf32>
    %169 = tpu.concatenate %164, %168 in 0 : vector<1x16x16xf32>, vector<1x16x16xf32> -> vector<2x16x16xf32>
    %c112 = arith.constant 112 : index
    %c0_62 = arith.constant 0 : index
    %170 = vector.load %arg3[%c112, %c0_62] : memref<488x128xf32, #tpu.memory_space<vmem>>, vector<1x16xf32>
    %171 = vector.shape_cast %170 : vector<1x16xf32> to vector<1x1x16xf32>
    %172 = vector.broadcast %171 : vector<1x1x16xf32> to vector<2x16x16xf32>
    %173 = arith.addf %169, %172 : vector<2x16x16xf32>
    %174 = arith.mulf %173, %173 : vector<2x16x16xf32>
    %cst_63 = arith.constant dense<0.000000e+00> : vector<2x16xf32>
    %175 = vector.multi_reduction <add>, %174, %cst_63 [2] : vector<2x16x16xf32> to vector<2x16xf32>
    %176 = vector.shape_cast %175 : vector<2x16xf32> to vector<2x16x1xf32>
    %cst_64 = arith.constant 1.000000e-24 : f32
    %177 = vector.broadcast %cst_64 : f32 to vector<2x16x1xf32>
    %178 = arith.maximumf %176, %177 : vector<2x16x1xf32>
    %179 = math.rsqrt %178 : vector<2x16x1xf32>
    %180 = vector.broadcast %179 : vector<2x16x1xf32> to vector<2x16x16xf32>
    %181 = arith.mulf %173, %180 : vector<2x16x16xf32>
    %cst_65 = arith.constant 0.000000e+00 : f32
    %182 = vector.broadcast %cst_65 : f32 to vector<2x16x16xf32>
    %183 = arith.maximumf %181, %182 : vector<2x16x16xf32>
    %cst_66 = arith.constant dense<0.000000e+00> : vector<2x16xf32>
    %184 = vector.multi_reduction <add>, %183, %cst_66 [2] : vector<2x16x16xf32> to vector<2x16xf32>
    %185 = vector.shape_cast %184 : vector<2x16xf32> to vector<2x16x1xf32>
    %cst_67 = arith.constant dense<0.000000e+00> : vector<16x1xf32>
    %186 = vector.multi_reduction <add>, %185, %cst_67 [0] : vector<2x16x1xf32> to vector<16x1xf32>
    %187 = vector.shape_cast %186 : vector<16x1xf32> to vector<1x16x1xf32>
    %188 = arith.mulf %183, %183 : vector<2x16x16xf32>
    %cst_68 = arith.constant dense<0.000000e+00> : vector<2x16xf32>
    %189 = vector.multi_reduction <add>, %188, %cst_68 [2] : vector<2x16x16xf32> to vector<2x16xf32>
    %190 = vector.shape_cast %189 : vector<2x16xf32> to vector<2x16x1xf32>
    %cst_69 = arith.constant dense<0.000000e+00> : vector<16x1xf32>
    %191 = vector.multi_reduction <add>, %190, %cst_69 [0] : vector<2x16x1xf32> to vector<16x1xf32>
    %192 = vector.shape_cast %191 : vector<16x1xf32> to vector<1x16x1xf32>
    %cst_70 = arith.constant 3.200000e+01 : f32
    %193 = vector.broadcast %cst_70 : f32 to vector<1x16x1xf32>
    %194 = arith.divf %187, %193 : vector<1x16x1xf32>
    %cst_71 = arith.constant 3.200000e+01 : f32
    %195 = vector.broadcast %cst_71 : f32 to vector<1x16x1xf32>
    %196 = arith.divf %192, %195 : vector<1x16x1xf32>
    %197 = arith.mulf %194, %194 : vector<1x16x1xf32>
    %198 = arith.subf %196, %197 : vector<1x16x1xf32>
    %cst_72 = arith.constant 0.000000e+00 : f32
    %199 = vector.broadcast %cst_72 : f32 to vector<1x16x1xf32>
    %200 = arith.maximumf %198, %199 : vector<1x16x1xf32>
    %201 = vector.broadcast %194 : vector<1x16x1xf32> to vector<2x16x16xf32>
    %202 = arith.subf %183, %201 : vector<2x16x16xf32>
    %cst_73 = arith.constant 9.99999974E-6 : f32
    %203 = vector.broadcast %cst_73 : f32 to vector<1x16x1xf32>
    %204 = arith.addf %200, %203 : vector<1x16x1xf32>
    %205 = math.rsqrt %204 : vector<1x16x1xf32>
    %206 = vector.broadcast %205 : vector<1x16x1xf32> to vector<2x16x16xf32>
    %207 = arith.mulf %202, %206 : vector<2x16x16xf32>
    %208 = vector.broadcast %1 : vector<2x16x1xf32> to vector<2x16x16xf32>
    %209 = arith.mulf %207, %208 : vector<2x16x16xf32>
    %c120 = arith.constant 120 : index
    %c0_74 = arith.constant 0 : index
    %210 = vector.load %arg3[%c120, %c0_74] : memref<488x128xf32, #tpu.memory_space<vmem>>, vector<16x16xf32>
    %211 = vector.shape_cast %207 : vector<2x16x16xf32> to vector<32x16xf32>
    %cst_75 = arith.constant dense<0.000000e+00> : vector<32x16xf32>
    %212 = tpu.matmul %211, %210, %cst_75 {dimension_numbers = #tpu.dot_dimension_numbers<[1], [0], [0], [1], [0, 0, 1, 1], [], []>} : vector<32x16xf32>, vector<16x16xf32>, vector<32x16xf32> -> vector<32x16xf32>
    %213 = vector.shape_cast %212 : vector<32x16xf32> to vector<2x16x16xf32>
    %214 = vector.extract_strided_slice %213 {offsets = [0, 0, 0], sizes = [1, 16, 16], strides = [1, 1, 1]} : vector<2x16x16xf32> to vector<1x16x16xf32>
    %215 = vector.shape_cast %214 : vector<1x16x16xf32> to vector<16x16xf32>
    %cst_76 = arith.constant dense<0.000000e+00> : vector<16x16xf32>
    %216 = tpu.matmul %3, %215, %cst_76 {dimension_numbers = #tpu.dot_dimension_numbers<[1], [0], [0], [1], [0, 0, 1, 1], [], []>} : vector<16x16xf32>, vector<16x16xf32>, vector<16x16xf32> -> vector<16x16xf32>
    %217 = vector.shape_cast %216 : vector<16x16xf32> to vector<1x16x16xf32>
    %218 = vector.extract_strided_slice %213 {offsets = [1, 0, 0], sizes = [1, 16, 16], strides = [1, 1, 1]} : vector<2x16x16xf32> to vector<1x16x16xf32>
    %219 = vector.shape_cast %218 : vector<1x16x16xf32> to vector<16x16xf32>
    %cst_77 = arith.constant dense<0.000000e+00> : vector<16x16xf32>
    %220 = tpu.matmul %5, %219, %cst_77 {dimension_numbers = #tpu.dot_dimension_numbers<[1], [0], [0], [1], [0, 0, 1, 1], [], []>} : vector<16x16xf32>, vector<16x16xf32>, vector<16x16xf32> -> vector<16x16xf32>
    %221 = vector.shape_cast %220 : vector<16x16xf32> to vector<1x16x16xf32>
    %222 = tpu.concatenate %217, %221 in 0 : vector<1x16x16xf32>, vector<1x16x16xf32> -> vector<2x16x16xf32>
    %c136 = arith.constant 136 : index
    %c0_78 = arith.constant 0 : index
    %223 = vector.load %arg3[%c136, %c0_78] : memref<488x128xf32, #tpu.memory_space<vmem>>, vector<1x16xf32>
    %224 = vector.shape_cast %223 : vector<1x16xf32> to vector<1x1x16xf32>
    %225 = vector.broadcast %224 : vector<1x1x16xf32> to vector<2x16x16xf32>
    %226 = arith.addf %222, %225 : vector<2x16x16xf32>
    %227 = arith.mulf %226, %226 : vector<2x16x16xf32>
    %cst_79 = arith.constant dense<0.000000e+00> : vector<2x16xf32>
    %228 = vector.multi_reduction <add>, %227, %cst_79 [2] : vector<2x16x16xf32> to vector<2x16xf32>
    %229 = vector.shape_cast %228 : vector<2x16xf32> to vector<2x16x1xf32>
    %cst_80 = arith.constant 1.000000e-24 : f32
    %230 = vector.broadcast %cst_80 : f32 to vector<2x16x1xf32>
    %231 = arith.maximumf %229, %230 : vector<2x16x1xf32>
    %232 = math.rsqrt %231 : vector<2x16x1xf32>
    %233 = vector.broadcast %232 : vector<2x16x1xf32> to vector<2x16x16xf32>
    %234 = arith.mulf %226, %233 : vector<2x16x16xf32>
    %cst_81 = arith.constant 0.000000e+00 : f32
    %235 = vector.broadcast %cst_81 : f32 to vector<2x16x16xf32>
    %236 = arith.maximumf %234, %235 : vector<2x16x16xf32>
    %cst_82 = arith.constant dense<0.000000e+00> : vector<2x16xf32>
    %237 = vector.multi_reduction <add>, %236, %cst_82 [2] : vector<2x16x16xf32> to vector<2x16xf32>
    %238 = vector.shape_cast %237 : vector<2x16xf32> to vector<2x16x1xf32>
    %cst_83 = arith.constant dense<0.000000e+00> : vector<16x1xf32>
    %239 = vector.multi_reduction <add>, %238, %cst_83 [0] : vector<2x16x1xf32> to vector<16x1xf32>
    %240 = vector.shape_cast %239 : vector<16x1xf32> to vector<1x16x1xf32>
    %241 = arith.mulf %236, %236 : vector<2x16x16xf32>
    %cst_84 = arith.constant dense<0.000000e+00> : vector<2x16xf32>
    %242 = vector.multi_reduction <add>, %241, %cst_84 [2] : vector<2x16x16xf32> to vector<2x16xf32>
    %243 = vector.shape_cast %242 : vector<2x16xf32> to vector<2x16x1xf32>
    %cst_85 = arith.constant dense<0.000000e+00> : vector<16x1xf32>
    %244 = vector.multi_reduction <add>, %243, %cst_85 [0] : vector<2x16x1xf32> to vector<16x1xf32>
    %245 = vector.shape_cast %244 : vector<16x1xf32> to vector<1x16x1xf32>
    %cst_86 = arith.constant 3.200000e+01 : f32
    %246 = vector.broadcast %cst_86 : f32 to vector<1x16x1xf32>
    %247 = arith.divf %240, %246 : vector<1x16x1xf32>
    %cst_87 = arith.constant 3.200000e+01 : f32
    %248 = vector.broadcast %cst_87 : f32 to vector<1x16x1xf32>
    %249 = arith.divf %245, %248 : vector<1x16x1xf32>
    %250 = arith.mulf %247, %247 : vector<1x16x1xf32>
    %251 = arith.subf %249, %250 : vector<1x16x1xf32>
    %cst_88 = arith.constant 0.000000e+00 : f32
    %252 = vector.broadcast %cst_88 : f32 to vector<1x16x1xf32>
    %253 = arith.maximumf %251, %252 : vector<1x16x1xf32>
    %254 = vector.broadcast %247 : vector<1x16x1xf32> to vector<2x16x16xf32>
    %255 = arith.subf %236, %254 : vector<2x16x16xf32>
    %cst_89 = arith.constant 9.99999974E-6 : f32
    %256 = vector.broadcast %cst_89 : f32 to vector<1x16x1xf32>
    %257 = arith.addf %253, %256 : vector<1x16x1xf32>
    %258 = math.rsqrt %257 : vector<1x16x1xf32>
    %259 = vector.broadcast %258 : vector<1x16x1xf32> to vector<2x16x16xf32>
    %260 = arith.mulf %255, %259 : vector<2x16x16xf32>
    %261 = vector.broadcast %1 : vector<2x16x1xf32> to vector<2x16x16xf32>
    %262 = arith.mulf %260, %261 : vector<2x16x16xf32>
    %c144 = arith.constant 144 : index
    %c0_90 = arith.constant 0 : index
    %263 = vector.load %arg3[%c144, %c0_90] : memref<488x128xf32, #tpu.memory_space<vmem>>, vector<16x4xf32>
    %264 = vector.shape_cast %260 : vector<2x16x16xf32> to vector<32x16xf32>
    %cst_91 = arith.constant dense<0.000000e+00> : vector<32x4xf32>
    %265 = tpu.matmul %264, %263, %cst_91 {dimension_numbers = #tpu.dot_dimension_numbers<[1], [0], [0], [1], [0, 0, 1, 1], [], []>} : vector<32x16xf32>, vector<16x4xf32>, vector<32x4xf32> -> vector<32x4xf32>
    %266 = vector.shape_cast %265 : vector<32x4xf32> to vector<2x16x4xf32>
    %267 = vector.extract_strided_slice %266 {offsets = [0, 0, 0], sizes = [1, 16, 4], strides = [1, 1, 1]} : vector<2x16x4xf32> to vector<1x16x4xf32>
    %268 = vector.shape_cast %267 : vector<1x16x4xf32> to vector<16x4xf32>
    %cst_92 = arith.constant dense<0.000000e+00> : vector<16x4xf32>
    %269 = tpu.matmul %3, %268, %cst_92 {dimension_numbers = #tpu.dot_dimension_numbers<[1], [0], [0], [1], [0, 0, 1, 1], [], []>} : vector<16x16xf32>, vector<16x4xf32>, vector<16x4xf32> -> vector<16x4xf32>
    %270 = vector.shape_cast %269 : vector<16x4xf32> to vector<1x16x4xf32>
    %271 = vector.extract_strided_slice %266 {offsets = [1, 0, 0], sizes = [1, 16, 4], strides = [1, 1, 1]} : vector<2x16x4xf32> to vector<1x16x4xf32>
    %272 = vector.shape_cast %271 : vector<1x16x4xf32> to vector<16x4xf32>
    %cst_93 = arith.constant dense<0.000000e+00> : vector<16x4xf32>
    %273 = tpu.matmul %5, %272, %cst_93 {dimension_numbers = #tpu.dot_dimension_numbers<[1], [0], [0], [1], [0, 0, 1, 1], [], []>} : vector<16x16xf32>, vector<16x4xf32>, vector<16x4xf32> -> vector<16x4xf32>
    %274 = vector.shape_cast %273 : vector<16x4xf32> to vector<1x16x4xf32>
    %275 = tpu.concatenate %270, %274 in 0 : vector<1x16x4xf32>, vector<1x16x4xf32> -> vector<2x16x4xf32>
    %c160 = arith.constant 160 : index
    %c0_94 = arith.constant 0 : index
    %276 = vector.load %arg3[%c160, %c0_94] : memref<488x128xf32, #tpu.memory_space<vmem>>, vector<1x4xf32>
    %277 = vector.shape_cast %276 : vector<1x4xf32> to vector<1x1x4xf32>
    %278 = vector.broadcast %277 : vector<1x1x4xf32> to vector<2x16x4xf32>
    %279 = arith.addf %275, %278 : vector<2x16x4xf32>
    %280 = arith.mulf %279, %279 : vector<2x16x4xf32>
    %cst_95 = arith.constant dense<0.000000e+00> : vector<2x16xf32>
    %281 = vector.multi_reduction <add>, %280, %cst_95 [2] : vector<2x16x4xf32> to vector<2x16xf32>
    %282 = vector.shape_cast %281 : vector<2x16xf32> to vector<2x16x1xf32>
    %cst_96 = arith.constant 1.000000e-24 : f32
    %283 = vector.broadcast %cst_96 : f32 to vector<2x16x1xf32>
    %284 = arith.maximumf %282, %283 : vector<2x16x1xf32>
    %285 = math.rsqrt %284 : vector<2x16x1xf32>
    %286 = vector.broadcast %285 : vector<2x16x1xf32> to vector<2x16x4xf32>
    %287 = arith.mulf %279, %286 : vector<2x16x4xf32>
    %288 = vector.broadcast %1 : vector<2x16x1xf32> to vector<2x16x4xf32>
    %289 = arith.mulf %287, %288 : vector<2x16x4xf32>
    %c168 = arith.constant 168 : index
    %c0_97 = arith.constant 0 : index
    %290 = vector.load %arg3[%c168, %c0_97] : memref<488x128xf32, #tpu.memory_space<vmem>>, vector<36x4xf32>
    %291 = vector.shape_cast %209 : vector<2x16x16xf32> to vector<32x16xf32>
    %292 = vector.extract_strided_slice %290 {offsets = [0, 0], sizes = [16, 4], strides = [1, 1]} : vector<36x4xf32> to vector<16x4xf32>
    %cst_98 = arith.constant dense<0.000000e+00> : vector<32x4xf32>
    %293 = tpu.matmul %291, %292, %cst_98 {dimension_numbers = #tpu.dot_dimension_numbers<[1], [0], [0], [1], [0, 0, 1, 1], [], []>} : vector<32x16xf32>, vector<16x4xf32>, vector<32x4xf32> -> vector<32x4xf32>
    %294 = vector.shape_cast %262 : vector<2x16x16xf32> to vector<32x16xf32>
    %295 = vector.extract_strided_slice %290 {offsets = [16, 0], sizes = [16, 4], strides = [1, 1]} : vector<36x4xf32> to vector<16x4xf32>
    %cst_99 = arith.constant dense<0.000000e+00> : vector<32x4xf32>
    %296 = tpu.matmul %294, %295, %cst_99 {dimension_numbers = #tpu.dot_dimension_numbers<[1], [0], [0], [1], [0, 0, 1, 1], [], []>} : vector<32x16xf32>, vector<16x4xf32>, vector<32x4xf32> -> vector<32x4xf32>
    %297 = arith.addf %293, %296 : vector<32x4xf32>
    %298 = vector.shape_cast %289 : vector<2x16x4xf32> to vector<32x4xf32>
    %299 = vector.extract_strided_slice %290 {offsets = [32, 0], sizes = [4, 4], strides = [1, 1]} : vector<36x4xf32> to vector<4x4xf32>
    %cst_100 = arith.constant dense<0.000000e+00> : vector<32x4xf32>
    %300 = tpu.matmul %298, %299, %cst_100 {dimension_numbers = #tpu.dot_dimension_numbers<[1], [0], [0], [1], [0, 0, 1, 1], [], []>} : vector<32x4xf32>, vector<4x4xf32>, vector<32x4xf32> -> vector<32x4xf32>
    %301 = arith.addf %297, %300 : vector<32x4xf32>
    %302 = vector.shape_cast %301 : vector<32x4xf32> to vector<2x16x4xf32>
    %c208 = arith.constant 208 : index
    %c0_101 = arith.constant 0 : index
    %303 = vector.load %arg3[%c208, %c0_101] : memref<488x128xf32, #tpu.memory_space<vmem>>, vector<1x4xf32>
    %304 = vector.shape_cast %303 : vector<1x4xf32> to vector<1x1x4xf32>
    %305 = vector.broadcast %304 : vector<1x1x4xf32> to vector<2x16x4xf32>
    %306 = arith.addf %302, %305 : vector<2x16x4xf32>
    %cst_102 = arith.constant dense<0xFF800000> : vector<2x16xf32>
    %307 = vector.multi_reduction <maximumf>, %306, %cst_102 [2] : vector<2x16x4xf32> to vector<2x16xf32>
    %308 = vector.shape_cast %307 : vector<2x16xf32> to vector<2x16x1xf32>
    %309 = vector.broadcast %308 : vector<2x16x1xf32> to vector<2x16x4xf32>
    %310 = arith.subf %306, %309 : vector<2x16x4xf32>
    %311 = math.exp %310 : vector<2x16x4xf32>
    %cst_103 = arith.constant dense<0.000000e+00> : vector<2x16xf32>
    %312 = vector.multi_reduction <add>, %311, %cst_103 [2] : vector<2x16x4xf32> to vector<2x16xf32>
    %313 = vector.shape_cast %312 : vector<2x16xf32> to vector<2x16x1xf32>
    %314 = tpu.reciprocal %313 {approx = true} : vector<2x16x1xf32> -> vector<2x16x1xf32>
    %315 = vector.broadcast %314 : vector<2x16x1xf32> to vector<2x16x4xf32>
    %316 = arith.mulf %311, %315 : vector<2x16x4xf32>
    %317 = vector.broadcast %1 : vector<2x16x1xf32> to vector<2x16x4xf32>
    %318 = arith.mulf %316, %317 : vector<2x16x4xf32>
    %319 = vector.extract_strided_slice %318 {offsets = [0, 0, 0], sizes = [1, 16, 4], strides = [1, 1, 1]} : vector<2x16x4xf32> to vector<1x16x4xf32>
    %320 = vector.shape_cast %319 : vector<1x16x4xf32> to vector<16x4xf32>
    %321 = tpu.transpose %320, [1, 0] : vector<16x4xf32> -> vector<4x16xf32>
    %322 = vector.extract_strided_slice %63 {offsets = [0, 0, 0], sizes = [1, 16, 16], strides = [1, 1, 1]} : vector<2x16x16xf32> to vector<1x16x16xf32>
    %323 = vector.shape_cast %322 : vector<1x16x16xf32> to vector<16x16xf32>
    %cst_104 = arith.constant dense<0.000000e+00> : vector<4x16xf32>
    %324 = tpu.matmul %321, %323, %cst_104 {dimension_numbers = #tpu.dot_dimension_numbers<[1], [0], [0], [1], [0, 0, 1, 1], [], []>} : vector<4x16xf32>, vector<16x16xf32>, vector<4x16xf32> -> vector<4x16xf32>
    %325 = vector.shape_cast %324 : vector<4x16xf32> to vector<1x4x16xf32>
    %326 = vector.extract_strided_slice %121 {offsets = [0, 0, 0], sizes = [1, 16, 16], strides = [1, 1, 1]} : vector<2x16x16xf32> to vector<1x16x16xf32>
    %327 = vector.shape_cast %326 : vector<1x16x16xf32> to vector<16x16xf32>
    %cst_105 = arith.constant dense<0.000000e+00> : vector<4x16xf32>
    %328 = tpu.matmul %321, %327, %cst_105 {dimension_numbers = #tpu.dot_dimension_numbers<[1], [0], [0], [1], [0, 0, 1, 1], [], []>} : vector<4x16xf32>, vector<16x16xf32>, vector<4x16xf32> -> vector<4x16xf32>
    %329 = vector.shape_cast %328 : vector<4x16xf32> to vector<1x4x16xf32>
    %330 = vector.extract_strided_slice %153 {offsets = [0, 0, 0], sizes = [1, 16, 16], strides = [1, 1, 1]} : vector<2x16x16xf32> to vector<1x16x16xf32>
    %331 = vector.shape_cast %330 : vector<1x16x16xf32> to vector<16x16xf32>
    %cst_106 = arith.constant dense<0.000000e+00> : vector<4x16xf32>
    %332 = tpu.matmul %321, %331, %cst_106 {dimension_numbers = #tpu.dot_dimension_numbers<[1], [0], [0], [1], [0, 0, 1, 1], [], []>} : vector<4x16xf32>, vector<16x16xf32>, vector<4x16xf32> -> vector<4x16xf32>
    %333 = vector.shape_cast %332 : vector<4x16xf32> to vector<1x4x16xf32>
    %cst_107 = arith.constant dense<0.000000e+00> : vector<4x16xf32>
    %334 = tpu.matmul %321, %3, %cst_107 {dimension_numbers = #tpu.dot_dimension_numbers<[1], [0], [0], [1], [0, 0, 1, 1], [], []>} : vector<4x16xf32>, vector<16x16xf32>, vector<4x16xf32> -> vector<4x16xf32>
    %335 = vector.extract_strided_slice %318 {offsets = [0, 0, 0], sizes = [1, 16, 4], strides = [1, 1, 1]} : vector<2x16x4xf32> to vector<1x16x4xf32>
    %336 = vector.shape_cast %335 : vector<1x16x4xf32> to vector<16x4xf32>
    %cst_108 = arith.constant dense<0.000000e+00> : vector<4x4xf32>
    %337 = tpu.matmul %334, %336, %cst_108 {dimension_numbers = #tpu.dot_dimension_numbers<[1], [0], [0], [1], [0, 0, 1, 1], [], []>} : vector<4x16xf32>, vector<16x4xf32>, vector<4x4xf32> -> vector<4x4xf32>
    %338 = vector.extract_strided_slice %318 {offsets = [1, 0, 0], sizes = [1, 16, 4], strides = [1, 1, 1]} : vector<2x16x4xf32> to vector<1x16x4xf32>
    %339 = vector.shape_cast %338 : vector<1x16x4xf32> to vector<16x4xf32>
    %340 = tpu.transpose %339, [1, 0] : vector<16x4xf32> -> vector<4x16xf32>
    %341 = vector.extract_strided_slice %63 {offsets = [1, 0, 0], sizes = [1, 16, 16], strides = [1, 1, 1]} : vector<2x16x16xf32> to vector<1x16x16xf32>
    %342 = vector.shape_cast %341 : vector<1x16x16xf32> to vector<16x16xf32>
    %cst_109 = arith.constant dense<0.000000e+00> : vector<4x16xf32>
    %343 = tpu.matmul %340, %342, %cst_109 {dimension_numbers = #tpu.dot_dimension_numbers<[1], [0], [0], [1], [0, 0, 1, 1], [], []>} : vector<4x16xf32>, vector<16x16xf32>, vector<4x16xf32> -> vector<4x16xf32>
    %344 = vector.shape_cast %343 : vector<4x16xf32> to vector<1x4x16xf32>
    %345 = vector.extract_strided_slice %121 {offsets = [1, 0, 0], sizes = [1, 16, 16], strides = [1, 1, 1]} : vector<2x16x16xf32> to vector<1x16x16xf32>
    %346 = vector.shape_cast %345 : vector<1x16x16xf32> to vector<16x16xf32>
    %cst_110 = arith.constant dense<0.000000e+00> : vector<4x16xf32>
    %347 = tpu.matmul %340, %346, %cst_110 {dimension_numbers = #tpu.dot_dimension_numbers<[1], [0], [0], [1], [0, 0, 1, 1], [], []>} : vector<4x16xf32>, vector<16x16xf32>, vector<4x16xf32> -> vector<4x16xf32>
    %348 = vector.shape_cast %347 : vector<4x16xf32> to vector<1x4x16xf32>
    %349 = vector.extract_strided_slice %153 {offsets = [1, 0, 0], sizes = [1, 16, 16], strides = [1, 1, 1]} : vector<2x16x16xf32> to vector<1x16x16xf32>
    %350 = vector.shape_cast %349 : vector<1x16x16xf32> to vector<16x16xf32>
    %cst_111 = arith.constant dense<0.000000e+00> : vector<4x16xf32>
    %351 = tpu.matmul %340, %350, %cst_111 {dimension_numbers = #tpu.dot_dimension_numbers<[1], [0], [0], [1], [0, 0, 1, 1], [], []>} : vector<4x16xf32>, vector<16x16xf32>, vector<4x16xf32> -> vector<4x16xf32>
    %352 = vector.shape_cast %351 : vector<4x16xf32> to vector<1x4x16xf32>
    %cst_112 = arith.constant dense<0.000000e+00> : vector<4x16xf32>
    %353 = tpu.matmul %340, %5, %cst_112 {dimension_numbers = #tpu.dot_dimension_numbers<[1], [0], [0], [1], [0, 0, 1, 1], [], []>} : vector<4x16xf32>, vector<16x16xf32>, vector<4x16xf32> -> vector<4x16xf32>
    %354 = vector.extract_strided_slice %318 {offsets = [1, 0, 0], sizes = [1, 16, 4], strides = [1, 1, 1]} : vector<2x16x4xf32> to vector<1x16x4xf32>
    %355 = vector.shape_cast %354 : vector<1x16x4xf32> to vector<16x4xf32>
    %cst_113 = arith.constant dense<0.000000e+00> : vector<4x4xf32>
    %356 = tpu.matmul %353, %355, %cst_113 {dimension_numbers = #tpu.dot_dimension_numbers<[1], [0], [0], [1], [0, 0, 1, 1], [], []>} : vector<4x16xf32>, vector<16x4xf32>, vector<4x4xf32> -> vector<4x4xf32>
    %357 = tpu.concatenate %325, %344 in 0 : vector<1x4x16xf32>, vector<1x4x16xf32> -> vector<2x4x16xf32>
    %358 = tpu.concatenate %329, %348 in 0 : vector<1x4x16xf32>, vector<1x4x16xf32> -> vector<2x4x16xf32>
    %359 = tpu.concatenate %333, %352 in 0 : vector<1x4x16xf32>, vector<1x4x16xf32> -> vector<2x4x16xf32>
    %c216 = arith.constant 216 : index
    %c0_114 = arith.constant 0 : index
    %360 = vector.load %arg3[%c216, %c0_114] : memref<488x128xf32, #tpu.memory_space<vmem>>, vector<48x16xf32>
    %361 = vector.shape_cast %357 : vector<2x4x16xf32> to vector<8x16xf32>
    %362 = vector.extract_strided_slice %360 {offsets = [0, 0], sizes = [16, 16], strides = [1, 1]} : vector<48x16xf32> to vector<16x16xf32>
    %cst_115 = arith.constant dense<0.000000e+00> : vector<8x16xf32>
    %363 = tpu.matmul %361, %362, %cst_115 {dimension_numbers = #tpu.dot_dimension_numbers<[1], [0], [0], [1], [0, 0, 1, 1], [], []>} : vector<8x16xf32>, vector<16x16xf32>, vector<8x16xf32> -> vector<8x16xf32>
    %364 = vector.shape_cast %358 : vector<2x4x16xf32> to vector<8x16xf32>
    %365 = vector.extract_strided_slice %360 {offsets = [16, 0], sizes = [16, 16], strides = [1, 1]} : vector<48x16xf32> to vector<16x16xf32>
    %cst_116 = arith.constant dense<0.000000e+00> : vector<8x16xf32>
    %366 = tpu.matmul %364, %365, %cst_116 {dimension_numbers = #tpu.dot_dimension_numbers<[1], [0], [0], [1], [0, 0, 1, 1], [], []>} : vector<8x16xf32>, vector<16x16xf32>, vector<8x16xf32> -> vector<8x16xf32>
    %367 = arith.addf %363, %366 : vector<8x16xf32>
    %368 = vector.shape_cast %359 : vector<2x4x16xf32> to vector<8x16xf32>
    %369 = vector.extract_strided_slice %360 {offsets = [32, 0], sizes = [16, 16], strides = [1, 1]} : vector<48x16xf32> to vector<16x16xf32>
    %cst_117 = arith.constant dense<0.000000e+00> : vector<8x16xf32>
    %370 = tpu.matmul %368, %369, %cst_117 {dimension_numbers = #tpu.dot_dimension_numbers<[1], [0], [0], [1], [0, 0, 1, 1], [], []>} : vector<8x16xf32>, vector<16x16xf32>, vector<8x16xf32> -> vector<8x16xf32>
    %371 = arith.addf %367, %370 : vector<8x16xf32>
    %372 = vector.shape_cast %371 : vector<8x16xf32> to vector<2x4x16xf32>
    %373 = vector.extract_strided_slice %372 {offsets = [0, 0, 0], sizes = [1, 4, 16], strides = [1, 1, 1]} : vector<2x4x16xf32> to vector<1x4x16xf32>
    %374 = vector.shape_cast %373 : vector<1x4x16xf32> to vector<4x16xf32>
    %cst_118 = arith.constant dense<0.000000e+00> : vector<4x16xf32>
    %375 = tpu.matmul %337, %374, %cst_118 {dimension_numbers = #tpu.dot_dimension_numbers<[1], [0], [0], [1], [0, 0, 1, 1], [], []>} : vector<4x4xf32>, vector<4x16xf32>, vector<4x16xf32> -> vector<4x16xf32>
    %376 = vector.shape_cast %375 : vector<4x16xf32> to vector<1x4x16xf32>
    %377 = vector.extract_strided_slice %372 {offsets = [1, 0, 0], sizes = [1, 4, 16], strides = [1, 1, 1]} : vector<2x4x16xf32> to vector<1x4x16xf32>
    %378 = vector.shape_cast %377 : vector<1x4x16xf32> to vector<4x16xf32>
    %cst_119 = arith.constant dense<0.000000e+00> : vector<4x16xf32>
    %379 = tpu.matmul %356, %378, %cst_119 {dimension_numbers = #tpu.dot_dimension_numbers<[1], [0], [0], [1], [0, 0, 1, 1], [], []>} : vector<4x4xf32>, vector<4x16xf32>, vector<4x16xf32> -> vector<4x16xf32>
    %380 = vector.shape_cast %379 : vector<4x16xf32> to vector<1x4x16xf32>
    %381 = tpu.concatenate %376, %380 in 0 : vector<1x4x16xf32>, vector<1x4x16xf32> -> vector<2x4x16xf32>
    %c264 = arith.constant 264 : index
    %c0_120 = arith.constant 0 : index
    %382 = vector.load %arg3[%c264, %c0_120] : memref<488x128xf32, #tpu.memory_space<vmem>>, vector<1x16xf32>
    %383 = vector.shape_cast %382 : vector<1x16xf32> to vector<1x1x16xf32>
    %384 = vector.broadcast %383 : vector<1x1x16xf32> to vector<2x4x16xf32>
    %385 = arith.addf %381, %384 : vector<2x4x16xf32>
    %386 = arith.mulf %385, %385 : vector<2x4x16xf32>
    %cst_121 = arith.constant dense<0.000000e+00> : vector<2x4xf32>
    %387 = vector.multi_reduction <add>, %386, %cst_121 [2] : vector<2x4x16xf32> to vector<2x4xf32>
    %388 = vector.shape_cast %387 : vector<2x4xf32> to vector<2x4x1xf32>
    %cst_122 = arith.constant 1.000000e-24 : f32
    %389 = vector.broadcast %cst_122 : f32 to vector<2x4x1xf32>
    %390 = arith.maximumf %388, %389 : vector<2x4x1xf32>
    %391 = math.rsqrt %390 : vector<2x4x1xf32>
    %392 = vector.broadcast %391 : vector<2x4x1xf32> to vector<2x4x16xf32>
    %393 = arith.mulf %385, %392 : vector<2x4x16xf32>
    %cst_123 = arith.constant 0.000000e+00 : f32
    %394 = vector.broadcast %cst_123 : f32 to vector<2x4x16xf32>
    %395 = arith.maximumf %393, %394 : vector<2x4x16xf32>
    %cst_124 = arith.constant dense<0.000000e+00> : vector<2x4xf32>
    %396 = vector.multi_reduction <add>, %395, %cst_124 [2] : vector<2x4x16xf32> to vector<2x4xf32>
    %397 = vector.shape_cast %396 : vector<2x4xf32> to vector<2x4x1xf32>
    %cst_125 = arith.constant dense<0.000000e+00> : vector<4x1xf32>
    %398 = vector.multi_reduction <add>, %397, %cst_125 [0] : vector<2x4x1xf32> to vector<4x1xf32>
    %399 = vector.shape_cast %398 : vector<4x1xf32> to vector<1x4x1xf32>
    %400 = arith.mulf %395, %395 : vector<2x4x16xf32>
    %cst_126 = arith.constant dense<0.000000e+00> : vector<2x4xf32>
    %401 = vector.multi_reduction <add>, %400, %cst_126 [2] : vector<2x4x16xf32> to vector<2x4xf32>
    %402 = vector.shape_cast %401 : vector<2x4xf32> to vector<2x4x1xf32>
    %cst_127 = arith.constant dense<0.000000e+00> : vector<4x1xf32>
    %403 = vector.multi_reduction <add>, %402, %cst_127 [0] : vector<2x4x1xf32> to vector<4x1xf32>
    %404 = vector.shape_cast %403 : vector<4x1xf32> to vector<1x4x1xf32>
    %cst_128 = arith.constant 3.200000e+01 : f32
    %405 = vector.broadcast %cst_128 : f32 to vector<1x4x1xf32>
    %406 = arith.divf %399, %405 : vector<1x4x1xf32>
    %cst_129 = arith.constant 3.200000e+01 : f32
    %407 = vector.broadcast %cst_129 : f32 to vector<1x4x1xf32>
    %408 = arith.divf %404, %407 : vector<1x4x1xf32>
    %409 = arith.mulf %406, %406 : vector<1x4x1xf32>
    %410 = arith.subf %408, %409 : vector<1x4x1xf32>
    %cst_130 = arith.constant 0.000000e+00 : f32
    %411 = vector.broadcast %cst_130 : f32 to vector<1x4x1xf32>
    %412 = arith.maximumf %410, %411 : vector<1x4x1xf32>
    %413 = vector.broadcast %406 : vector<1x4x1xf32> to vector<2x4x16xf32>
    %414 = arith.subf %395, %413 : vector<2x4x16xf32>
    %cst_131 = arith.constant 9.99999974E-6 : f32
    %415 = vector.broadcast %cst_131 : f32 to vector<1x4x1xf32>
    %416 = arith.addf %412, %415 : vector<1x4x1xf32>
    %417 = math.rsqrt %416 : vector<1x4x1xf32>
    %418 = vector.broadcast %417 : vector<1x4x1xf32> to vector<2x4x16xf32>
    %419 = arith.mulf %414, %418 : vector<2x4x16xf32>
    %c272 = arith.constant 272 : index
    %c0_132 = arith.constant 0 : index
    %420 = vector.load %arg3[%c272, %c0_132] : memref<488x128xf32, #tpu.memory_space<vmem>>, vector<16x16xf32>
    %421 = vector.shape_cast %419 : vector<2x4x16xf32> to vector<8x16xf32>
    %cst_133 = arith.constant dense<0.000000e+00> : vector<8x16xf32>
    %422 = tpu.matmul %421, %420, %cst_133 {dimension_numbers = #tpu.dot_dimension_numbers<[1], [0], [0], [1], [0, 0, 1, 1], [], []>} : vector<8x16xf32>, vector<16x16xf32>, vector<8x16xf32> -> vector<8x16xf32>
    %423 = vector.shape_cast %422 : vector<8x16xf32> to vector<2x4x16xf32>
    %424 = vector.extract_strided_slice %423 {offsets = [0, 0, 0], sizes = [1, 4, 16], strides = [1, 1, 1]} : vector<2x4x16xf32> to vector<1x4x16xf32>
    %425 = vector.shape_cast %424 : vector<1x4x16xf32> to vector<4x16xf32>
    %cst_134 = arith.constant dense<0.000000e+00> : vector<4x16xf32>
    %426 = tpu.matmul %337, %425, %cst_134 {dimension_numbers = #tpu.dot_dimension_numbers<[1], [0], [0], [1], [0, 0, 1, 1], [], []>} : vector<4x4xf32>, vector<4x16xf32>, vector<4x16xf32> -> vector<4x16xf32>
    %427 = vector.shape_cast %426 : vector<4x16xf32> to vector<1x4x16xf32>
    %428 = vector.extract_strided_slice %423 {offsets = [1, 0, 0], sizes = [1, 4, 16], strides = [1, 1, 1]} : vector<2x4x16xf32> to vector<1x4x16xf32>
    %429 = vector.shape_cast %428 : vector<1x4x16xf32> to vector<4x16xf32>
    %cst_135 = arith.constant dense<0.000000e+00> : vector<4x16xf32>
    %430 = tpu.matmul %356, %429, %cst_135 {dimension_numbers = #tpu.dot_dimension_numbers<[1], [0], [0], [1], [0, 0, 1, 1], [], []>} : vector<4x4xf32>, vector<4x16xf32>, vector<4x16xf32> -> vector<4x16xf32>
    %431 = vector.shape_cast %430 : vector<4x16xf32> to vector<1x4x16xf32>
    %432 = tpu.concatenate %427, %431 in 0 : vector<1x4x16xf32>, vector<1x4x16xf32> -> vector<2x4x16xf32>
    %c288 = arith.constant 288 : index
    %c0_136 = arith.constant 0 : index
    %433 = vector.load %arg3[%c288, %c0_136] : memref<488x128xf32, #tpu.memory_space<vmem>>, vector<1x16xf32>
    %434 = vector.shape_cast %433 : vector<1x16xf32> to vector<1x1x16xf32>
    %435 = vector.broadcast %434 : vector<1x1x16xf32> to vector<2x4x16xf32>
    %436 = arith.addf %432, %435 : vector<2x4x16xf32>
    %437 = arith.mulf %436, %436 : vector<2x4x16xf32>
    %cst_137 = arith.constant dense<0.000000e+00> : vector<2x4xf32>
    %438 = vector.multi_reduction <add>, %437, %cst_137 [2] : vector<2x4x16xf32> to vector<2x4xf32>
    %439 = vector.shape_cast %438 : vector<2x4xf32> to vector<2x4x1xf32>
    %cst_138 = arith.constant 1.000000e-24 : f32
    %440 = vector.broadcast %cst_138 : f32 to vector<2x4x1xf32>
    %441 = arith.maximumf %439, %440 : vector<2x4x1xf32>
    %442 = math.rsqrt %441 : vector<2x4x1xf32>
    %443 = vector.broadcast %442 : vector<2x4x1xf32> to vector<2x4x16xf32>
    %444 = arith.mulf %436, %443 : vector<2x4x16xf32>
    %cst_139 = arith.constant 0.000000e+00 : f32
    %445 = vector.broadcast %cst_139 : f32 to vector<2x4x16xf32>
    %446 = arith.maximumf %444, %445 : vector<2x4x16xf32>
    %cst_140 = arith.constant dense<0.000000e+00> : vector<2x4xf32>
    %447 = vector.multi_reduction <add>, %446, %cst_140 [2] : vector<2x4x16xf32> to vector<2x4xf32>
    %448 = vector.shape_cast %447 : vector<2x4xf32> to vector<2x4x1xf32>
    %cst_141 = arith.constant dense<0.000000e+00> : vector<4x1xf32>
    %449 = vector.multi_reduction <add>, %448, %cst_141 [0] : vector<2x4x1xf32> to vector<4x1xf32>
    %450 = vector.shape_cast %449 : vector<4x1xf32> to vector<1x4x1xf32>
    %451 = arith.mulf %446, %446 : vector<2x4x16xf32>
    %cst_142 = arith.constant dense<0.000000e+00> : vector<2x4xf32>
    %452 = vector.multi_reduction <add>, %451, %cst_142 [2] : vector<2x4x16xf32> to vector<2x4xf32>
    %453 = vector.shape_cast %452 : vector<2x4xf32> to vector<2x4x1xf32>
    %cst_143 = arith.constant dense<0.000000e+00> : vector<4x1xf32>
    %454 = vector.multi_reduction <add>, %453, %cst_143 [0] : vector<2x4x1xf32> to vector<4x1xf32>
    %455 = vector.shape_cast %454 : vector<4x1xf32> to vector<1x4x1xf32>
    %cst_144 = arith.constant 3.200000e+01 : f32
    %456 = vector.broadcast %cst_144 : f32 to vector<1x4x1xf32>
    %457 = arith.divf %450, %456 : vector<1x4x1xf32>
    %cst_145 = arith.constant 3.200000e+01 : f32
    %458 = vector.broadcast %cst_145 : f32 to vector<1x4x1xf32>
    %459 = arith.divf %455, %458 : vector<1x4x1xf32>
    %460 = arith.mulf %457, %457 : vector<1x4x1xf32>
    %461 = arith.subf %459, %460 : vector<1x4x1xf32>
    %cst_146 = arith.constant 0.000000e+00 : f32
    %462 = vector.broadcast %cst_146 : f32 to vector<1x4x1xf32>
    %463 = arith.maximumf %461, %462 : vector<1x4x1xf32>
    %464 = vector.broadcast %457 : vector<1x4x1xf32> to vector<2x4x16xf32>
    %465 = arith.subf %446, %464 : vector<2x4x16xf32>
    %cst_147 = arith.constant 9.99999974E-6 : f32
    %466 = vector.broadcast %cst_147 : f32 to vector<1x4x1xf32>
    %467 = arith.addf %463, %466 : vector<1x4x1xf32>
    %468 = math.rsqrt %467 : vector<1x4x1xf32>
    %469 = vector.broadcast %468 : vector<1x4x1xf32> to vector<2x4x16xf32>
    %470 = arith.mulf %465, %469 : vector<2x4x16xf32>
    %c296 = arith.constant 296 : index
    %c0_148 = arith.constant 0 : index
    %471 = vector.load %arg3[%c296, %c0_148] : memref<488x128xf32, #tpu.memory_space<vmem>>, vector<16x16xf32>
    %472 = vector.shape_cast %470 : vector<2x4x16xf32> to vector<8x16xf32>
    %cst_149 = arith.constant dense<0.000000e+00> : vector<8x16xf32>
    %473 = tpu.matmul %472, %471, %cst_149 {dimension_numbers = #tpu.dot_dimension_numbers<[1], [0], [0], [1], [0, 0, 1, 1], [], []>} : vector<8x16xf32>, vector<16x16xf32>, vector<8x16xf32> -> vector<8x16xf32>
    %474 = vector.shape_cast %473 : vector<8x16xf32> to vector<2x4x16xf32>
    %475 = vector.extract_strided_slice %474 {offsets = [0, 0, 0], sizes = [1, 4, 16], strides = [1, 1, 1]} : vector<2x4x16xf32> to vector<1x4x16xf32>
    %476 = vector.shape_cast %475 : vector<1x4x16xf32> to vector<4x16xf32>
    %cst_150 = arith.constant dense<0.000000e+00> : vector<4x16xf32>
    %477 = tpu.matmul %337, %476, %cst_150 {dimension_numbers = #tpu.dot_dimension_numbers<[1], [0], [0], [1], [0, 0, 1, 1], [], []>} : vector<4x4xf32>, vector<4x16xf32>, vector<4x16xf32> -> vector<4x16xf32>
    %478 = vector.shape_cast %477 : vector<4x16xf32> to vector<1x4x16xf32>
    %479 = vector.extract_strided_slice %474 {offsets = [1, 0, 0], sizes = [1, 4, 16], strides = [1, 1, 1]} : vector<2x4x16xf32> to vector<1x4x16xf32>
    %480 = vector.shape_cast %479 : vector<1x4x16xf32> to vector<4x16xf32>
    %cst_151 = arith.constant dense<0.000000e+00> : vector<4x16xf32>
    %481 = tpu.matmul %356, %480, %cst_151 {dimension_numbers = #tpu.dot_dimension_numbers<[1], [0], [0], [1], [0, 0, 1, 1], [], []>} : vector<4x4xf32>, vector<4x16xf32>, vector<4x16xf32> -> vector<4x16xf32>
    %482 = vector.shape_cast %481 : vector<4x16xf32> to vector<1x4x16xf32>
    %483 = tpu.concatenate %478, %482 in 0 : vector<1x4x16xf32>, vector<1x4x16xf32> -> vector<2x4x16xf32>
    %c312 = arith.constant 312 : index
    %c0_152 = arith.constant 0 : index
    %484 = vector.load %arg3[%c312, %c0_152] : memref<488x128xf32, #tpu.memory_space<vmem>>, vector<1x16xf32>
    %485 = vector.shape_cast %484 : vector<1x16xf32> to vector<1x1x16xf32>
    %486 = vector.broadcast %485 : vector<1x1x16xf32> to vector<2x4x16xf32>
    %487 = arith.addf %483, %486 : vector<2x4x16xf32>
    %488 = arith.mulf %487, %487 : vector<2x4x16xf32>
    %cst_153 = arith.constant dense<0.000000e+00> : vector<2x4xf32>
    %489 = vector.multi_reduction <add>, %488, %cst_153 [2] : vector<2x4x16xf32> to vector<2x4xf32>
    %490 = vector.shape_cast %489 : vector<2x4xf32> to vector<2x4x1xf32>
    %cst_154 = arith.constant 1.000000e-24 : f32
    %491 = vector.broadcast %cst_154 : f32 to vector<2x4x1xf32>
    %492 = arith.maximumf %490, %491 : vector<2x4x1xf32>
    %493 = math.rsqrt %492 : vector<2x4x1xf32>
    %494 = vector.broadcast %493 : vector<2x4x1xf32> to vector<2x4x16xf32>
    %495 = arith.mulf %487, %494 : vector<2x4x16xf32>
    %cst_155 = arith.constant dense<0xFF800000> : vector<2x16xf32>
    %496 = vector.multi_reduction <maximumf>, %419, %cst_155 [1] : vector<2x4x16xf32> to vector<2x16xf32>
    %cst_156 = arith.constant dense<0xFF800000> : vector<2x16xf32>
    %497 = vector.multi_reduction <maximumf>, %470, %cst_156 [1] : vector<2x4x16xf32> to vector<2x16xf32>
    %cst_157 = arith.constant dense<0xFF800000> : vector<2x16xf32>
    %498 = vector.multi_reduction <maximumf>, %495, %cst_157 [1] : vector<2x4x16xf32> to vector<2x16xf32>
    %c320 = arith.constant 320 : index
    %c0_158 = arith.constant 0 : index
    %499 = vector.load %arg3[%c320, %c0_158] : memref<488x128xf32, #tpu.memory_space<vmem>>, vector<96x50xf32>
    %500 = vector.extract_strided_slice %499 {offsets = [0, 0], sizes = [16, 50], strides = [1, 1]} : vector<96x50xf32> to vector<16x50xf32>
    %cst_159 = arith.constant dense<0.000000e+00> : vector<2x50xf32>
    %501 = tpu.matmul %154, %500, %cst_159 {dimension_numbers = #tpu.dot_dimension_numbers<[1], [0], [0], [1], [0, 0, 1, 1], [], []>} : vector<2x16xf32>, vector<16x50xf32>, vector<2x50xf32> -> vector<2x50xf32>
    %502 = vector.extract_strided_slice %499 {offsets = [16, 0], sizes = [16, 50], strides = [1, 1]} : vector<96x50xf32> to vector<16x50xf32>
    %cst_160 = arith.constant dense<0.000000e+00> : vector<2x50xf32>
    %503 = tpu.matmul %155, %502, %cst_160 {dimension_numbers = #tpu.dot_dimension_numbers<[1], [0], [0], [1], [0, 0, 1, 1], [], []>} : vector<2x16xf32>, vector<16x50xf32>, vector<2x50xf32> -> vector<2x50xf32>
    %504 = arith.addf %501, %503 : vector<2x50xf32>
    %505 = vector.extract_strided_slice %499 {offsets = [32, 0], sizes = [16, 50], strides = [1, 1]} : vector<96x50xf32> to vector<16x50xf32>
    %cst_161 = arith.constant dense<0.000000e+00> : vector<2x50xf32>
    %506 = tpu.matmul %156, %505, %cst_161 {dimension_numbers = #tpu.dot_dimension_numbers<[1], [0], [0], [1], [0, 0, 1, 1], [], []>} : vector<2x16xf32>, vector<16x50xf32>, vector<2x50xf32> -> vector<2x50xf32>
    %507 = arith.addf %504, %506 : vector<2x50xf32>
    %508 = vector.extract_strided_slice %499 {offsets = [48, 0], sizes = [16, 50], strides = [1, 1]} : vector<96x50xf32> to vector<16x50xf32>
    %cst_162 = arith.constant dense<0.000000e+00> : vector<2x50xf32>
    %509 = tpu.matmul %496, %508, %cst_162 {dimension_numbers = #tpu.dot_dimension_numbers<[1], [0], [0], [1], [0, 0, 1, 1], [], []>} : vector<2x16xf32>, vector<16x50xf32>, vector<2x50xf32> -> vector<2x50xf32>
    %510 = arith.addf %507, %509 : vector<2x50xf32>
    %511 = vector.extract_strided_slice %499 {offsets = [64, 0], sizes = [16, 50], strides = [1, 1]} : vector<96x50xf32> to vector<16x50xf32>
    %cst_163 = arith.constant dense<0.000000e+00> : vector<2x50xf32>
    %512 = tpu.matmul %497, %511, %cst_163 {dimension_numbers = #tpu.dot_dimension_numbers<[1], [0], [0], [1], [0, 0, 1, 1], [], []>} : vector<2x16xf32>, vector<16x50xf32>, vector<2x50xf32> -> vector<2x50xf32>
    %513 = arith.addf %510, %512 : vector<2x50xf32>
    %514 = vector.extract_strided_slice %499 {offsets = [80, 0], sizes = [16, 50], strides = [1, 1]} : vector<96x50xf32> to vector<16x50xf32>
    %cst_164 = arith.constant dense<0.000000e+00> : vector<2x50xf32>
    %515 = tpu.matmul %498, %514, %cst_164 {dimension_numbers = #tpu.dot_dimension_numbers<[1], [0], [0], [1], [0, 0, 1, 1], [], []>} : vector<2x16xf32>, vector<16x50xf32>, vector<2x50xf32> -> vector<2x50xf32>
    %516 = arith.addf %513, %515 : vector<2x50xf32>
    %c416 = arith.constant 416 : index
    %c0_165 = arith.constant 0 : index
    %517 = vector.load %arg3[%c416, %c0_165] : memref<488x128xf32, #tpu.memory_space<vmem>>, vector<1x50xf32>
    %518 = vector.broadcast %517 : vector<1x50xf32> to vector<2x50xf32>
    %519 = arith.addf %516, %518 : vector<2x50xf32>
    %cst_166 = arith.constant 0.000000e+00 : f32
    %520 = vector.broadcast %cst_166 : f32 to vector<2x50xf32>
    %521 = arith.maximumf %519, %520 : vector<2x50xf32>
    %c424 = arith.constant 424 : index
    %c0_167 = arith.constant 0 : index
    %522 = vector.load %arg3[%c424, %c0_167] : memref<488x128xf32, #tpu.memory_space<vmem>>, vector<50x128xf32>
    %cst_168 = arith.constant dense<0.000000e+00> : vector<2x128xf32>
    %523 = tpu.matmul %521, %522, %cst_168 {dimension_numbers = #tpu.dot_dimension_numbers<[1], [0], [0], [1], [0, 0, 1, 1], [], []>} : vector<2x50xf32>, vector<50x128xf32>, vector<2x128xf32> -> vector<2x128xf32>
    %c480 = arith.constant 480 : index
    %c0_169 = arith.constant 0 : index
    %524 = vector.load %arg3[%c480, %c0_169] : memref<488x128xf32, #tpu.memory_space<vmem>>, vector<1x128xf32>
    %525 = vector.broadcast %524 : vector<1x128xf32> to vector<2x128xf32>
    %526 = arith.addf %523, %525 : vector<2x128xf32>
    %c0_170 = arith.constant 0 : index
    %c0_171 = arith.constant 0 : index
    %527 = vector.load %arg4[%c0_170, %c0_171] : memref<2x128xf32, #tpu.memory_space<vmem>>, vector<2x128xf32>
    tpu.vector_store %arg4[%c0_170, %c0_171], %526 {strides = array<i32>} : memref<2x128xf32, #tpu.memory_space<vmem>>, vector<2x128xf32>,
    return
  }
}

</mosaic_0001>

<bundles_post_ra>
// kernel: soft_pooling_gcn_forward.1
= control target key start
LH: loop header
LB: loop body
LE: loop exit
PB: predicated region body
PF: predicated region fallthrough
CT: control target
= control target key end

     0   :  { %9 = vsyncpa [#allocation3], 0  ;;  %s3769_s0 = inlined_call_operand.vmem [shape: f32[2,16,8], index: 0, kind: input, shape index: {}]   ;;  %s3770_s1 = inlined_call_operand.vmem [shape: f32[2,16,16], index: 1, kind: input, shape index: {}]   ;;  %s3771_s2 = inlined_call_operand.vmem [shape: f32[2,16,1], index: 2, kind: input, shape index: {}]   ;;  %s3772_s3 = inlined_call_operand.hbm [shape: f32[488,128], index: 3, kind: input, shape index: {}]   ;;  %s3773_s4 = inlined_call_operand.hbm [shape: f32[2,128], index: 4, kind: output, shape index: {}]  }
   0x1   :  { %10 = vsyncpa [#allocation4], 0  ;;  %s21_s17 = sshll.u32 %s3772_s3, 4  ;;  %s3024_s18 = smov [#allocation2]   ;;  %s22_s17 = int_to_ptr.hbm [resolvable:$true] %s21_s17 }
   0x2   :  { %s23_s19 = sshll.u32 %s3024_s18, 4  ;;  %s3025_s20 = smov 128   ;;  %s24_s19 = int_to_ptr.vmem [resolvable:$true] %s23_s19 }
   0x3   :  { %s3026_s21 = smov 8  }
   0x4   :  { %29 = dma.hbm_to_vmem [thread:$0]  %s22_s17, 7808, %s24_s19, [#allocation3], %s3025_s20, %s3025_s20, %s3026_s21  }
   0x5   :  { %3020 = dma.done.wait [#allocation3], 7808  }
   0x6   :  { %3021 = vsyncadd [#allocation3], 4294959488  ;;  %vm48_vm0 = vcmask 64512   ;;  %v47_v0 = vld [vmem:[#allocation2] sm:$0xff]  ;;  %v3061_v1 = vld [vmem:[%s3769_s0] sm:$0xff]  ;;  %vm90_vm1 = vcmask 130048  }
   0x7   :  { %76 = vmatpush.msra.mxu0 %v47_v0  ;;  %v3068_v2 = vld [vmem:[%s3769_s0 + $0x8] sm:$0xff]  ;;  %v3075_v3 = vld [vmem:[%s3769_s0 + $0x10] sm:$0xff]  ;;  %v3082_v4 = vld [vmem:[%s3769_s0 + $0x18] sm:$0xff]  ;;  %s2727_s27 = sshll.u32 %s3773_s4, 4  ;;  %s2728_s27 = int_to_ptr.hbm [resolvable:$true] %s2727_s27 }
   0x8   :  { %2739 = vmatmul.msk.f32.vlgmr.msra.gmra.mxu0 %vm48_vm0, %v3061_v1  ;;  %v149_v5 = vld [vmem:[#allocation2 + $0x8] sm:$0xff]  ;;  %v3097_v8 = vld [vmem:[%s3770_s1] sm:$0xff]  ;;  %v3104_v10 = vld [vmem:[%s3770_s1 + $0x8] sm:$0xff] }
   0x9   :  { %165 = vmatpush.msra.mxu3 %v149_v5  ;;  %v3111_v12 = vld [vmem:[%s3770_s1 + $0x10] sm:$0xff]  ;;  %v3118_v13 = vld [vmem:[%s3770_s1 + $0x18] sm:$0xff] }
   0xa   :  { %2747 = vmatmul.msk.f32.vlgmr.msra.gmra.mxu3 %vm48_vm0, %v3061_v1  ;;  %v2857_v15 = vld [vmem:[#allocation2 + $0x10] ss:$0 sm:$0xff] }
  0x10   :  { %2740 = vmatmul.msk.f32.gmra.mxu0 %vm48_vm0, %v3068_v2 }
  0x12   :  { %2748 = vmatmul.msk.f32.gmra.mxu3 %vm48_vm0, %v3068_v2 }
  0x18   :  { %2741 = vmatmul.msk.f32.gmra.mxu0 %vm48_vm0, %v3075_v3 }
  0x1a   :  { %2749 = vmatmul.msk.f32.gmra.mxu3 %vm48_vm0, %v3075_v3 }
  0x20   :  { %2742 = vmatmul.msk.f32.gmra.mxu0 %vm48_vm0, %v3082_v4 }
  0x22   :  { %2750 = vmatmul.msk.f32.gmra.mxu3 %vm48_vm0, %v3082_v4 }
  0x85   :  { %v78_v6 = vpop.f32.mrf.mxu0 }
  0x8d   :  { %v81_v7 = vpop.f32.mrf.mxu0  ;;  %v167_v14 = vpop.f32.mrf.mxu3 }
  0x8e   :  { %111 = vmatpush.msra.mxu1 %v81_v7 }
  0x90   :  { %112 = vmatpush.msra.mxu1 %v78_v6 }
  0x91   :  { %2743 = vmatmul.msk.f32.vlgmr.msra.gmra.mxu1 %vm90_vm1, %v3097_v8 }
  0x95   :  { %v84_v9 = vpop.f32.mrf.mxu0  ;;  %v170_v20 = vpop.f32.mrf.mxu3 }
  0x99   :  { %2744 = vmatmul.msk.f32.gmra.mxu1 %vm90_vm1, %v3104_v10 }
  0x9d   :  { %v87_v11 = vpop.f32.mrf.mxu0  ;;  %v173_v27 = vpop.f32.mrf.mxu3 }
  0x9e   :  { %140 = vmatpush.msra.mxu2 %v87_v11 }
  0xa0   :  { %141 = vmatpush.msra.mxu2 %v84_v9 }
  0xa1   :  { %2745 = vmatmul.msk.f32.vlgmr.msra.gmra.mxu2 %vm90_vm1, %v3111_v12 }
  0xa5   :  { %v176_v32 = vpop.f32.mrf.mxu3 }
  0xa9   :  { %2746 = vmatmul.msk.f32.gmra.mxu2 %vm90_vm1, %v3118_v13 }
 0x10e   :  { %v114_v16 = vpop.f32.mrf.mxu1 }
 0x10f   :  { %v179_v17 = vadd.f32 %v167_v14, %v114_v16 }
 0x111   :  { %v185_v18 = vadd.f32 %v2857_v15, %v179_v17 }
 0x113   :  { %v189_v19 = vmul.f32 %v185_v18, %v185_v18 }
 0x115   :  { %v193_v21 = vsel %vm90_vm1, %v189_v19, 0.0 }
 0x116   :  { %194 = vadd.xlane.f32.xlu0 %v193_v21  ;;  %v117_v22 = vpop.f32.mrf.mxu1 }
 0x117   :  { %v180_v23 = vadd.f32 %v170_v20, %v117_v22 }
 0x119   :  { %v3123_v24 = vadd.f32 %v2857_v15, %v180_v23 }
 0x11b   :  { %v190_v25 = vmul.f32 %v3123_v24, %v3123_v24 }
 0x11d   :  { %v196_v26 = vsel %vm90_vm1, %v190_v25, 0.0 }
 0x11e   :  { %197 = vadd.xlane.f32.xlu1 %v196_v26 }
 0x124   :  { %v143_v28 = vpop.f32.mrf.mxu2 }
 0x125   :  { %v181_v29 = vadd.f32 %v173_v27, %v143_v28 }
 0x127   :  { %v3128_v30 = vadd.f32 %v2857_v15, %v181_v29 }
 0x129   :  { %v191_v31 = vmul.f32 %v3128_v30, %v3128_v30 }
 0x12b   :  { %v199_v33 = vsel %vm90_vm1, %v191_v31, 0.0 }
 0x12c   :  { %200 = vadd.xlane.f32.xlu0 %v199_v33  ;;  %v146_v34 = vpop.f32.mrf.mxu2 }
 0x12d   :  { %v182_v35 = vadd.f32 %v176_v32, %v146_v34 }
 0x12f   :  { %v3133_v36 = vadd.f32 %v2857_v15, %v182_v35 }
 0x131   :  { %v192_v37 = vmul.f32 %v3133_v36, %v3133_v36 }
 0x133   :  { %v202_v38 = vsel %vm90_vm1, %v192_v37, 0.0 }
 0x134   :  { %203 = vadd.xlane.f32.xlu1 %v202_v38 }
 0x189   :  { %v195_v39 = vpop.xlane.xlu0 %194 }
 0x18a   :  { %v205_v40 = vmax.f32 %v195_v39, 1e-24  ;;  %v3027_v39 = vmov 32.0  }
 0x18c   :  { %2869 = vrsqrt.f32 %v205_v40  ;;  %vm215_vm2 = vweird.f32 %v205_v40 }
 0x191   :  { %v198_v41 = vpop.xlane.xlu1 %197 }
 0x192   :  { %v2870_v42 = vpop.eup %2869  ;;  %v206_v43 = vmax.f32 %v198_v41, 1e-24 }
 0x193   :  { %v210_v44 = vmul.f32 %v2870_v42, %v205_v40  ;;  %vm216_vm3 = vweird.f32 %v2870_v42 }
 0x194   :  { %2871 = vrsqrt.f32 %v206_v43  ;;  %vm217_vm4 = vmor %vm215_vm2, %vm216_vm3  ;;  %vm225_vm5 = vweird.f32 %v206_v43 }
 0x195   :  { %v211_v45 = vmul.f32 %v2870_v42, %v210_v44 }
 0x197   :  { %v212_v46 = vmul.f32 0.5, %v211_v45 }
 0x199   :  { %v213_v47 = vsub.f32 1.5, %v212_v46  ;;  %v361_v46 = vld [vmem:[#allocation2 + $0x20] sm:$0xff] }
 0x19a   :  { %v2872_v49 = vpop.eup %2871  ;;  %388 = vmatpush.msrb.mxu1 %v361_v46  ;;  %v2858_v46 = vld [vmem:[#allocation2 + $0x38] ss:$0 sm:$0xff] }
 0x19b   :  { %v214_v48 = vmul.f32 %v2870_v42, %v213_v47  ;;  %v220_v52 = vmul.f32 %v2872_v49, %v206_v43  ;;  %vm226_vm6 = vweird.f32 %v2872_v49  ;;  %v450_v47 = vld [vmem:[#allocation2 + $0x30] sm:$0xff] }
 0x19c   :  { %vm227_vm8 = vmor %vm225_vm5, %vm226_vm6  ;;  %465 = vmatpush.msrb.mxu3 %v450_v47 }
 0x19d   :  { %v218_v50 = vsel %vm217_vm4, %v2870_v42, %v214_v48  ;;  %v221_v58 = vmul.f32 %v2872_v49, %v220_v52  ;;  %v360_v48 = vld [vmem:[#allocation2 + $0x18] sm:$0xff] }
 0x19e   :  { %v249_v51 = vmul.f32 %v218_v50, %v185_v18  ;;  %389 = vmatpush.msrb.mxu1 %v360_v48 }
 0x19f   :  { %v201_v53 = vpop.xlane.xlu0 %200  ;;  %v222_v60 = vmul.f32 0.5, %v221_v58 }
 0x1a0   :  { %v207_v54 = vmax.f32 %v201_v53, 1e-24  ;;  %v3138_v55 = vmax.f32 %v249_v51, 0.0 }
 0x1a1   :  { %v223_v5 = vsub.f32 1.5, %v222_v60 }
 0x1a2   :  { %2873 = vrsqrt.f32 %v207_v54  ;;  %v257_v56 = vsel %vm90_vm1, %v3138_v55, 0.0  ;;  %v271_v57 = vmul.f32 %v3138_v55, %v3138_v55  ;;  %vm235_vm9 = vweird.f32 %v207_v54 }
 0x1a3   :  { %258 = vadd.xlane.f32.xlu2 %v257_v56  ;;  %v224_v9 = vmul.f32 %v2872_v49, %v223_v5 }
 0x1a4   :  { %v275_v59 = vsel %vm90_vm1, %v271_v57, 0.0 }
 0x1a5   :  { %276 = vadd.xlane.f32.xlu0 %v275_v59  ;;  %v228_v19 = vsel %vm227_vm8, %v2872_v49, %v224_v9  ;;  %v449_v49 = vld [vmem:[#allocation2 + $0x28] sm:$0xff] }
 0x1a6   :  { %v250_v23 = vmul.f32 %v228_v19, %v3123_v24  ;;  %466 = vmatpush.msrb.mxu3 %v449_v49 }
 0x1a7   :  { %v204_v61 = vpop.xlane.xlu1 %203 }
 0x1a8   :  { %v2874_v62 = vpop.eup %2873  ;;  %v208_v63 = vmax.f32 %v204_v61, 1e-24 }
 0x1a9   :  { %v230_v0 = vmul.f32 %v2874_v62, %v207_v54  ;;  %vm236_vm7 = vweird.f32 %v2874_v62 }
 0x1aa   :  { %2875 = vrsqrt.f32 %v208_v63  ;;  %vm237_vm10 = vmor %vm235_vm9, %vm236_vm7  ;;  %vm245_vm11 = vweird.f32 %v208_v63 }
 0x1ab   :  { %v231_v6 = vmul.f32 %v2874_v62, %v230_v0  ;;  %2877 = vrcp.f32 %v3027_v39 }
 0x1ad   :  { %v232_v7 = vmul.f32 0.5, %v231_v6 }
 0x1af   :  { %v233_v11 = vsub.f32 1.5, %v232_v7 }
 0x1b0   :  { %v2876_v14 = vpop.eup %2875 }
 0x1b1   :  { %v234_v15 = vmul.f32 %v2874_v62, %v233_v11  ;;  %v240_v16 = vmul.f32 %v2876_v14, %v208_v63  ;;  %vm246_vm12 = vweird.f32 %v2876_v14  ;;  %v2878_v40 = vpop.eup %2877 }
 0x1b2   :  { %vm247_vm13 = vmor %vm245_vm11, %vm246_vm12  ;;  %v290_v41 = vmul.f32 32.0, %v2878_v40  ;;  %vm294_vm14 = vweird.f32 %v2878_v40 }
 0x1b3   :  { %v241_v17 = vmul.f32 %v2876_v14, %v240_v16  ;;  %v238_v18 = vsel %vm237_vm10, %v2874_v62, %v234_v15 }
 0x1b4   :  { %v251_v20 = vmul.f32 %v238_v18, %v3128_v30  ;;  %v3154_v30 = vmax.f32 %v250_v23, 0.0  ;;  %v291_v42 = vsub.f32 1.0, %v290_v41 }
 0x1b5   :  { %v242_v21 = vmul.f32 0.5, %v241_v17 }
 0x1b6   :  { %v3146_v22 = vmax.f32 %v251_v20, 0.0  ;;  %v272_v33 = vmul.f32 %v3154_v30, %v3154_v30  ;;  %v260_v34 = vsel %vm90_vm1, %v3154_v30, 0.0  ;;  %v292_v44 = vmul.f32 %v2878_v40, %v291_v42 }
 0x1b7   :  { %v243_v25 = vsub.f32 1.5, %v242_v21 }
 0x1b8   :  { %v263_v26 = vsel %vm90_vm1, %v3146_v22, 0.0  ;;  %v273_v27 = vmul.f32 %v3146_v22, %v3146_v22  ;;  %v278_v37 = vsel %vm90_vm1, %v272_v33, 0.0  ;;  %v293_v45 = vadd.f32 %v2878_v40, %v292_v44 }
 0x1b9   :  { %v244_v28 = vmul.f32 %v2876_v14, %v243_v25  ;;  %264 = vadd.xlane.f32.xlu2 %v263_v26 }
 0x1ba   :  { %v281_v29 = vsel %vm90_vm1, %v273_v27, 0.0  ;;  %v3169_v51 = vsel %vm294_vm14, %v2878_v40, %v293_v45 }
 0x1bb   :  { %282 = vadd.xlane.f32.xlu1 %v281_v29  ;;  %v248_v31 = vsel %vm247_vm13, %v2876_v14, %v244_v28 }
 0x1bc   :  { %v252_v24 = vmul.f32 %v248_v31, %v3133_v36 }
 0x1be   :  { %v3157_v32 = vmax.f32 %v252_v24, 0.0 }
 0x1c0   :  { %v266_v35 = vsel %vm90_vm1, %v3157_v32, 0.0  ;;  %v274_v38 = vmul.f32 %v3157_v32, %v3157_v32 }
 0x1c1   :  { %261 = vadd.xlane.f32.xlu2 %v260_v34  ;;  %267 = vadd.xlane.f32.xlu0 %v266_v35 }
 0x1c2   :  { %v284_v36 = vsel %vm90_vm1, %v274_v38, 0.0 }
 0x1c3   :  { %279 = vadd.xlane.f32.xlu1 %v278_v37 }
 0x1c9   :  { %285 = vadd.xlane.f32.xlu2 %v284_v36 }
 0x216   :  { %v259_v43 = vpop.xlane.xlu2 %258 }
 0x218   :  { %v277_v50 = vpop.xlane.xlu0 %276 }
 0x22c   :  { %v265_v52 = vpop.xlane.xlu2 %264 }
 0x22d   :  { %v269_v53 = vadd.f32 %v265_v52, %v259_v43 }
 0x22e   :  { %v283_v54 = vpop.xlane.xlu1 %282 }
 0x22f   :  { %v296_v56 = vmul.f32 %v3169_v51, %v269_v53  ;;  %v287_v57 = vadd.f32 %v283_v54, %v277_v50 }
 0x231   :  { %v300_v58 = vmul.f32 %v296_v56, %v296_v56  ;;  %v298_v59 = vmul.f32 %v3169_v51, %v287_v57  ;;  %v306_v27 = vsub.f32 %v3138_v55, %v296_v56  ;;  %v308_v39 = vsub.f32 %v3146_v22, %v296_v56 }
 0x233   :  { %v302_v60 = vsub.f32 %v298_v59, %v300_v58 }
 0x234   :  { %v262_v61 = vpop.xlane.xlu2 %261  ;;  %v268_v62 = vpop.xlane.xlu0 %267 }
 0x235   :  { %v304_v63 = vmax.f32 %v302_v60, 0.0  ;;  %v270_v5 = vadd.f32 %v268_v62, %v262_v61 }
 0x236   :  { %v280_v7 = vpop.xlane.xlu1 %279 }
 0x237   :  { %v310_v0 = vadd.f32 1e-05, %v304_v63  ;;  %v297_v6 = vmul.f32 %v3169_v51, %v270_v5 }
 0x239   :  { %2879 = vrsqrt.f32 %v310_v0  ;;  %v301_v16 = vmul.f32 %v297_v6, %v297_v6  ;;  %vm318_vm2 = vweird.f32 %v310_v0  ;;  %v307_v55 = vsub.f32 %v3154_v30, %v297_v6 }
 0x23a   :  { %v309_v30 = vsub.f32 %v3157_v32, %v297_v6 }
 0x23c   :  { %v286_v9 = vpop.xlane.xlu2 %285 }
 0x23d   :  { %v288_v11 = vadd.f32 %v286_v9, %v280_v7 }
 0x23f   :  { %v2880_v14 = vpop.eup %2879  ;;  %v299_v15 = vmul.f32 %v3169_v51, %v288_v11 }
 0x240   :  { %v313_v17 = vmul.f32 %v2880_v14, %v310_v0  ;;  %vm319_vm15 = vweird.f32 %v2880_v14 }
 0x241   :  { %v303_v18 = vsub.f32 %v299_v15, %v301_v16  ;;  %vm320_vm3 = vmor %vm318_vm2, %vm319_vm15 }
 0x242   :  { %v314_v19 = vmul.f32 %v2880_v14, %v313_v17 }
 0x243   :  { %v305_v20 = vmax.f32 %v303_v18, 0.0 }
 0x244   :  { %v315_v21 = vmul.f32 0.5, %v314_v19 }
 0x245   :  { %v311_v23 = vadd.f32 1e-05, %v305_v20 }
 0x246   :  { %v316_v25 = vsub.f32 1.5, %v315_v21 }
 0x247   :  { %2881 = vrsqrt.f32 %v311_v23  ;;  %vm328_vm5 = vweird.f32 %v311_v23 }
 0x248   :  { %v317_v26 = vmul.f32 %v2880_v14, %v316_v25 }
 0x24a   :  { %v321_v28 = vsel %vm320_vm3, %v2880_v14, %v317_v26 }
 0x24b   :  { %v3176_v29 = vmul.f32 %v321_v28, %v306_v27  ;;  %v3190_v40 = vmul.f32 %v321_v28, %v308_v39  ;;  %v886_v39 = vld [vmem:[#allocation2 + $0x68] sm:$0xff] }
 0x24c   :  { %902 = vmatpush.msra.mxu3 %v886_v39 }
 0x24d   :  { %v2882_v31 = vpop.eup %2881  ;;  %2751 = vmatmul.msk.f32.vlgmr.msrb.gmra.mxu1 %vm90_vm1, %v3176_v29  ;;  %2759 = vmatmul.msk.f32.vlgmr.msrb.gmra.mxu3 %vm90_vm1, %v3176_v29 }
 0x24e   :  { %v323_v24 = vmul.f32 %v2882_v31, %v311_v23  ;;  %vm329_vm4 = vweird.f32 %v2882_v31 }
 0x24f   :  { %vm330_vm6 = vmor %vm328_vm5, %vm329_vm4 }
 0x250   :  { %v324_v33 = vmul.f32 %v2882_v31, %v323_v24 }
 0x252   :  { %v325_v34 = vmul.f32 0.5, %v324_v33 }
 0x254   :  { %v326_v35 = vsub.f32 1.5, %v325_v34 }
 0x256   :  { %v327_v37 = vmul.f32 %v2882_v31, %v326_v35 }
 0x258   :  { %v331_v38 = vsel %vm330_vm6, %v2882_v31, %v327_v37 }
 0x259   :  { %v3183_v36 = vmul.f32 %v331_v38, %v307_v55  ;;  %v3197_v41 = vmul.f32 %v331_v38, %v309_v30 }
 0x25b   :  { %2752 = vmatmul.msk.f32.gmra.mxu1 %vm90_vm1, %v3183_v36  ;;  %2760 = vmatmul.msk.f32.gmra.mxu3 %vm90_vm1, %v3183_v36 }
 0x263   :  { %2753 = vmatmul.msk.f32.gmra.mxu1 %vm90_vm1, %v3190_v40  ;;  %2761 = vmatmul.msk.f32.gmra.mxu3 %vm90_vm1, %v3190_v40 }
 0x26b   :  { %2754 = vmatmul.msk.f32.gmra.mxu1 %vm90_vm1, %v3197_v41  ;;  %2762 = vmatmul.msk.f32.gmra.mxu3 %vm90_vm1, %v3197_v41 }
 0x273   :  { %2775 = vmatmul.msk.f32.vlgmr.msra.gmra.mxu3 %vm48_vm0, %v3061_v1 }
 0x27b   :  { %2776 = vmatmul.msk.f32.gmra.mxu3 %vm48_vm0, %v3068_v2 }
 0x283   :  { %2777 = vmatmul.msk.f32.gmra.mxu3 %vm48_vm0, %v3075_v3 }
 0x28b   :  { %2778 = vmatmul.msk.f32.gmra.mxu3 %vm48_vm0, %v3082_v4 }
 0x2ca   :  { %v391_v42 = vpop.f32.mrf.mxu1 }
 0x2d0   :  { %v468_v44 = vpop.f32.mrf.mxu3 }
 0x2d8   :  { %v394_v22 = vpop.f32.mrf.mxu1 }
 0x2d9   :  { %417 = vmatpush.msrb.mxu2 %v394_v22 }
 0x2db   :  { %418 = vmatpush.msrb.mxu2 %v391_v42 }
 0x2dc   :  { %2755 = vmatmul.msk.f32.vlgmr.msrb.gmra.mxu2 %vm90_vm1, %v3097_v8 }
 0x2de   :  { %v471_v45 = vpop.f32.mrf.mxu3 }
 0x2e0   :  { %v397_v43 = vpop.f32.mrf.mxu1 }
 0x2e4   :  { %2756 = vmatmul.msk.f32.gmra.mxu2 %vm90_vm1, %v3104_v10 }
 0x2e6   :  { %v474_v53 = vpop.f32.mrf.mxu3 }
 0x2e8   :  { %v400_v32 = vpop.f32.mrf.mxu1 }
 0x2e9   :  { %440 = vmatpush.msrb.mxu0 %v400_v32 }
 0x2eb   :  { %441 = vmatpush.msrb.mxu0 %v397_v43 }
 0x2ec   :  { %2757 = vmatmul.msk.f32.vlgmr.msrb.gmra.mxu0 %vm90_vm1, %v3111_v12 }
 0x2ee   :  { %v477_v5 = vpop.f32.mrf.mxu3 }
 0x2f4   :  { %2758 = vmatmul.msk.f32.gmra.mxu0 %vm90_vm1, %v3118_v13 }
 0x35f   :  { %v420_v47 = vpop.f32.mrf.mxu2 }
 0x360   :  { %v480_v48 = vadd.f32 %v468_v44, %v420_v47 }
 0x362   :  { %v486_v49 = vadd.f32 %v2858_v46, %v480_v48 }
 0x364   :  { %v490_v50 = vmul.f32 %v486_v49, %v486_v49 }
 0x366   :  { %v494_v52 = vsel %vm90_vm1, %v490_v50, 0.0 }
 0x367   :  { %495 = vadd.xlane.f32.xlu0 %v494_v52  ;;  %v423_v54 = vpop.f32.mrf.mxu2 }
 0x368   :  { %v481_v56 = vadd.f32 %v471_v45, %v423_v54 }
 0x369   :  { %v443_v57 = vpop.f32.mrf.mxu0 }
 0x36a   :  { %v3212_v58 = vadd.f32 %v2858_v46, %v481_v56  ;;  %v482_v59 = vadd.f32 %v474_v53, %v443_v57 }
 0x36c   :  { %v3214_v60 = vadd.f32 %v2858_v46, %v482_v59  ;;  %v491_v61 = vmul.f32 %v3212_v58, %v3212_v58 }
 0x36e   :  { %v497_v62 = vsel %vm90_vm1, %v491_v61, 0.0  ;;  %v492_v63 = vmul.f32 %v3214_v60, %v3214_v60 }
 0x36f   :  { %498 = vadd.xlane.f32.xlu2 %v497_v62 }
 0x370   :  { %v500_v0 = vsel %vm90_vm1, %v492_v63, 0.0 }
 0x371   :  { %501 = vadd.xlane.f32.xlu1 %v500_v0  ;;  %v446_v6 = vpop.f32.mrf.mxu0 }
 0x372   :  { %v483_v7 = vadd.f32 %v477_v5, %v446_v6 }
 0x374   :  { %v3222_v9 = vadd.f32 %v2858_v46, %v483_v7 }
 0x376   :  { %v493_v11 = vmul.f32 %v3222_v9, %v3222_v9 }
 0x378   :  { %v503_v14 = vsel %vm90_vm1, %v493_v11, 0.0 }
 0x379   :  { %504 = vadd.xlane.f32.xlu0 %v503_v14 }
 0x3da   :  { %v496_v15 = vpop.xlane.xlu0 %495 }
 0x3db   :  { %v506_v16 = vmax.f32 %v496_v15, 1e-24 }
 0x3dd   :  { %2883 = vrsqrt.f32 %v506_v16  ;;  %vm516_vm8 = vweird.f32 %v506_v16 }
 0x3e2   :  { %v499_v17 = vpop.xlane.xlu2 %498 }
 0x3e3   :  { %v2884_v18 = vpop.eup %2883  ;;  %v507_v19 = vmax.f32 %v499_v17, 1e-24 }
 0x3e4   :  { %v511_v20 = vmul.f32 %v2884_v18, %v506_v16  ;;  %v502_v21 = vpop.xlane.xlu1 %501  ;;  %vm517_vm7 = vweird.f32 %v2884_v18 }
 0x3e5   :  { %2885 = vrsqrt.f32 %v507_v19  ;;  %v508_v23 = vmax.f32 %v502_v21, 1e-24  ;;  %vm518_vm9 = vmor %vm516_vm8, %vm517_vm7  ;;  %vm526_vm12 = vweird.f32 %v507_v19 }
 0x3e6   :  { %v512_v25 = vmul.f32 %v2884_v18, %v511_v20 }
 0x3e7   :  { %2887 = vrsqrt.f32 %v508_v23  ;;  %vm536_vm14 = vweird.f32 %v508_v23 }
 0x3e8   :  { %v513_v26 = vmul.f32 0.5, %v512_v25 }
 0x3ea   :  { %v514_v27 = vsub.f32 1.5, %v513_v26 }
 0x3eb   :  { %v2886_v28 = vpop.eup %2885 }
 0x3ec   :  { %v515_v31 = vmul.f32 %v2884_v18, %v514_v27  ;;  %v521_v24 = vmul.f32 %v2886_v28, %v507_v19  ;;  %v505_v33 = vpop.xlane.xlu0 %504  ;;  %vm527_vm10 = vweird.f32 %v2886_v28  ;;  %v635_v19 = vld [vmem:[#allocation2 + $0x48] sm:$0xff] }
 0x3ed   :  { %v2888_v34 = vpop.eup %2887  ;;  %v509_v35 = vmax.f32 %v505_v33, 1e-24  ;;  %vm528_vm13 = vmor %vm526_vm12, %vm527_vm10  ;;  %662 = vmatpush.msra.mxu2 %v635_v19 }
 0x3ee   :  { %v522_v37 = vmul.f32 %v2886_v28, %v521_v24  ;;  %v531_v55 = vmul.f32 %v2888_v34, %v508_v23  ;;  %v519_v38 = vsel %vm518_vm9, %v2884_v18, %v515_v31  ;;  %vm537_vm11 = vweird.f32 %v2888_v34  ;;  %v634_v23 = vld [vmem:[#allocation2 + $0x40] sm:$0xff]  ;;  %v3268_v24 = vpop.f32.mrf.mxu3 }
 0x3ef   :  { %2889 = vrsqrt.f32 %v509_v35  ;;  %v550_v30 = vmul.f32 %v519_v38, %v486_v49  ;;  %vm538_vm15 = vmor %vm536_vm14, %vm537_vm11  ;;  %vm546_vm3 = vweird.f32 %v509_v35  ;;  %663 = vmatpush.msra.mxu2 %v634_v23 }
 0x3f0   :  { %v523_v42 = vmul.f32 0.5, %v522_v37  ;;  %v532_v22 = vmul.f32 %v2888_v34, %v531_v55 }
 0x3f1   :  { %v3229_v43 = vmax.f32 %v550_v30, 0.0 }
 0x3f2   :  { %v524_v32 = vsub.f32 1.5, %v523_v42  ;;  %v533_v44 = vmul.f32 0.5, %v532_v22 }
 0x3f3   :  { %v558_v45 = vsel %vm90_vm1, %v3229_v43, 0.0  ;;  %v572_v46 = vmul.f32 %v3229_v43, %v3229_v43 }
 0x3f4   :  { %v525_v47 = vmul.f32 %v2886_v28, %v524_v32  ;;  %v534_v48 = vsub.f32 1.5, %v533_v44  ;;  %559 = vadd.xlane.f32.xlu1 %v558_v45 }
 0x3f5   :  { %v2890_v49 = vpop.eup %2889  ;;  %v576_v50 = vsel %vm90_vm1, %v572_v46, 0.0 }
 0x3f6   :  { %v535_v1 = vmul.f32 %v2888_v34, %v534_v48  ;;  %v541_v52 = vmul.f32 %v2890_v49, %v509_v35  ;;  %577 = vadd.xlane.f32.xlu0 %v576_v50  ;;  %v529_v56 = vsel %vm528_vm13, %v2886_v28, %v525_v47  ;;  %vm547_vm2 = vweird.f32 %v2890_v49  ;;  %v3271_v30 = vpop.f32.mrf.mxu3 }
 0x3f7   :  { %v551_v62 = vmul.f32 %v529_v56, %v3212_v58  ;;  %vm548_vm4 = vmor %vm546_vm3, %vm547_vm2 }
 0x3f8   :  { %v542_v53 = vmul.f32 %v2890_v49, %v541_v52  ;;  %v539_v54 = vsel %vm538_vm15, %v2888_v34, %v535_v1 }
 0x3f9   :  { %v552_v57 = vmul.f32 %v539_v54, %v3214_v60  ;;  %v3247_v60 = vmax.f32 %v551_v62, 0.0 }
 0x3fa   :  { %v543_v59 = vmul.f32 0.5, %v542_v53 }
 0x3fb   :  { %v3239_v61 = vmax.f32 %v552_v57, 0.0  ;;  %v573_v14 = vmul.f32 %v3247_v60, %v3247_v60  ;;  %v561_v15 = vsel %vm90_vm1, %v3247_v60, 0.0 }
 0x3fc   :  { %v544_v63 = vsub.f32 1.5, %v543_v59 }
 0x3fd   :  { %v564_v0 = vsel %vm90_vm1, %v3239_v61, 0.0  ;;  %v574_v5 = vmul.f32 %v3239_v61, %v3239_v61  ;;  %v579_v17 = vsel %vm90_vm1, %v573_v14, 0.0 }
 0x3fe   :  { %v545_v6 = vmul.f32 %v2890_v49, %v544_v63  ;;  %565 = vadd.xlane.f32.xlu2 %v564_v0  ;;  %v910_v1 = vpop.f32.mrf.mxu3 }
 0x3ff   :  { %v582_v2 = vsel %vm90_vm1, %v574_v5, 0.0 }
 0x400   :  { %583 = vadd.xlane.f32.xlu1 %v582_v2  ;;  %v549_v7 = vsel %vm548_vm4, %v2890_v49, %v545_v6 }
 0x401   :  { %v553_v58 = vmul.f32 %v549_v7, %v3222_v9 }
 0x403   :  { %v3252_v11 = vmax.f32 %v553_v58, 0.0 }
 0x405   :  { %v567_v16 = vsel %vm90_vm1, %v3252_v11, 0.0  ;;  %v575_v3 = vmul.f32 %v3252_v11, %v3252_v11 }
 0x406   :  { %562 = vadd.xlane.f32.xlu2 %v561_v15  ;;  %568 = vadd.xlane.f32.xlu0 %v567_v16  ;;  %v913_v63 = vpop.f32.mrf.mxu3 }
 0x407   :  { %v585_v9 = vsel %vm90_vm1, %v575_v3, 0.0  ;;  %953 = vmatpush.msrb.mxu2 %v913_v63 }
 0x408   :  { %580 = vadd.xlane.f32.xlu1 %v579_v17 }
 0x409   :  { %954 = vmatpush.msrb.mxu2 %v910_v1 }
 0x40e   :  { %586 = vadd.xlane.f32.xlu2 %v585_v9 }
 0x467   :  { %v560_v18 = vpop.xlane.xlu1 %559 }
 0x469   :  { %v578_v20 = vpop.xlane.xlu0 %577 }
 0x471   :  { %v566_v21 = vpop.xlane.xlu2 %565 }
 0x472   :  { %v570_v25 = vadd.f32 %v566_v21, %v560_v18  ;;  %v724_v18 = vld [vmem:[#allocation2 + $0x58] sm:$0xff]  ;;  %v2859_v21 = vld [vmem:[#allocation2 + $0x70] ss:$0 sm:$0xff] }
 0x473   :  { %v584_v26 = vpop.xlane.xlu1 %583 }
 0x474   :  { %v590_v27 = vmul.f32 %v570_v25, %v3169_v51  ;;  %v588_v28 = vadd.f32 %v584_v26, %v578_v20 }
 0x476   :  { %v594_v31 = vmul.f32 %v590_v27, %v590_v27  ;;  %v592_v4 = vmul.f32 %v588_v28, %v3169_v51  ;;  %v600_v57 = vsub.f32 %v3229_v43, %v590_v27  ;;  %v602_v16 = vsub.f32 %v3239_v61, %v590_v27  ;;  %v2860_v28 = vld [vmem:[#allocation2 + $0x60] ss:$0 sm:$0xff] }
 0x478   :  { %v596_v33 = vsub.f32 %v592_v4, %v594_v31 }
 0x479   :  { %v563_v34 = vpop.xlane.xlu2 %562  ;;  %v569_v35 = vpop.xlane.xlu0 %568 }
 0x47a   :  { %v598_v37 = vmax.f32 %v596_v33, 0.0  ;;  %v571_v38 = vadd.f32 %v569_v35, %v563_v34 }
 0x47b   :  { %v581_v42 = vpop.xlane.xlu1 %580 }
 0x47c   :  { %v604_v55 = vadd.f32 1e-05, %v598_v37  ;;  %v591_v39 = vmul.f32 %v571_v38, %v3169_v51 }
 0x47e   :  { %2891 = vrsqrt.f32 %v604_v55  ;;  %v595_v46 = vmul.f32 %v591_v39, %v591_v39  ;;  %vm612_vm5 = vweird.f32 %v604_v55  ;;  %v601_v43 = vsub.f32 %v3247_v60, %v591_v39 }
 0x47f   :  { %v603_v3 = vsub.f32 %v3252_v11, %v591_v39  ;;  %v723_v11 = vld [vmem:[#allocation2 + $0x50] sm:$0xff] }
 0x481   :  { %v587_v22 = vpop.xlane.xlu2 %586 }
 0x482   :  { %v589_v32 = vadd.f32 %v587_v22, %v581_v42 }
 0x484   :  { %v2892_v44 = vpop.eup %2891  ;;  %v593_v45 = vmul.f32 %v589_v32, %v3169_v51 }
 0x485   :  { %v607_v47 = vmul.f32 %v2892_v44, %v604_v55  ;;  %vm613_vm0 = vweird.f32 %v2892_v44 }
 0x486   :  { %v597_v48 = vsub.f32 %v593_v45, %v595_v46  ;;  %vm614_vm6 = vmor %vm612_vm5, %vm613_vm0 }
 0x487   :  { %v608_v49 = vmul.f32 %v2892_v44, %v607_v47 }
 0x488   :  { %v599_v50 = vmax.f32 %v597_v48, 0.0 }
 0x489   :  { %v609_v52 = vmul.f32 0.5, %v608_v49 }
 0x48a   :  { %v605_v53 = vadd.f32 1e-05, %v599_v50 }
 0x48b   :  { %v610_v54 = vsub.f32 1.5, %v609_v52 }
 0x48c   :  { %2893 = vrsqrt.f32 %v605_v53  ;;  %vm622_vm8 = vweird.f32 %v605_v53 }
 0x48d   :  { %v611_v56 = vmul.f32 %v2892_v44, %v610_v54 }
 0x48f   :  { %v615_v59 = vsel %vm614_vm6, %v2892_v44, %v611_v56 }
 0x490   :  { %v3275_v62 = vmul.f32 %v615_v59, %v600_v57  ;;  %v3285_v17 = vmul.f32 %v615_v59, %v602_v16 }
 0x492   :  { %v2894_v0 = vpop.eup %2893  ;;  %2763 = vmatmul.msk.f32.vlgmr.msra.gmra.mxu2 %vm90_vm1, %v3275_v62 }
 0x493   :  { %v617_v5 = vmul.f32 %v2894_v0, %v605_v53  ;;  %vm623_vm7 = vweird.f32 %v2894_v0 }
 0x494   :  { %vm624_vm9 = vmor %vm622_vm8, %vm623_vm7 }
 0x495   :  { %v618_v6 = vmul.f32 %v2894_v0, %v617_v5 }
 0x497   :  { %v619_v2 = vmul.f32 0.5, %v618_v6 }
 0x499   :  { %v620_v7 = vsub.f32 1.5, %v619_v2 }
 0x49b   :  { %v621_v58 = vmul.f32 %v2894_v0, %v620_v7 }
 0x49d   :  { %v625_v14 = vsel %vm624_vm9, %v2894_v0, %v621_v58 }
 0x49e   :  { %v3280_v15 = vmul.f32 %v625_v14, %v601_v43  ;;  %v3290_v9 = vmul.f32 %v625_v14, %v603_v3 }
 0x4a0   :  { %2764 = vmatmul.msk.f32.gmra.mxu2 %vm90_vm1, %v3280_v15 }
 0x4a8   :  { %2765 = vmatmul.msk.f32.gmra.mxu2 %vm90_vm1, %v3285_v17 }
 0x4b0   :  { %2766 = vmatmul.msk.f32.gmra.mxu2 %vm90_vm1, %v3290_v9 }
 0x4b8   :  { %2781 = vmatmul.msk.f32.vlgmr.msrb.gmra.mxu2 %vm90_vm1, %v3111_v12 }
 0x4c0   :  { %2782 = vmatmul.msk.f32.gmra.mxu2 %vm90_vm1, %v3118_v13 }
 0x515   :  { %v665_v60 = vpop.f32.mrf.mxu2 }
 0x523   :  { %v668_v61 = vpop.f32.mrf.mxu2 }
 0x524   :  { %691 = vmatpush.msra.mxu0 %v668_v61 }
 0x526   :  { %692 = vmatpush.msra.mxu0 %v665_v60 }
 0x527   :  { %2767 = vmatmul.msk.f32.vlgmr.msra.gmra.mxu0 %vm90_vm1, %v3097_v8 }
 0x528   :  { %739 = vmatpush.msrb.mxu0 %v724_v18 }
 0x52a   :  { %740 = vmatpush.msrb.mxu0 %v723_v11 }
 0x52b   :  { %v671_v19 = vpop.f32.mrf.mxu2 }
 0x52f   :  { %2768 = vmatmul.msk.f32.gmra.mxu0 %vm90_vm1, %v3104_v10 }
 0x533   :  { %v674_v20 = vpop.f32.mrf.mxu2 }
 0x534   :  { %714 = vmatpush.msra.mxu1 %v674_v20 }
 0x536   :  { %715 = vmatpush.msra.mxu1 %v671_v19 }
 0x537   :  { %2769 = vmatmul.msk.f32.vlgmr.msra.gmra.mxu1 %vm90_vm1, %v3111_v12  ;;  %2771 = vmatmul.msk.f32.vlgmr.msrb.gmra.mxu0 %vm90_vm1, %v3275_v62 }
 0x538   :  { %930 = vmatpush.msrb.mxu1 %v3271_v30 }
 0x53a   :  { %931 = vmatpush.msrb.mxu1 %v3268_v24 }
 0x53b   :  { %v956_v23 = vpop.f32.mrf.mxu2 }
 0x53c   :  { %v966_v25 = vadd.f32 %v2859_v21, %v956_v23 }
 0x53e   :  { %v970_v26 = vmul.f32 %v966_v25, %v966_v25 }
 0x53f   :  { %2770 = vmatmul.msk.f32.gmra.mxu1 %vm90_vm1, %v3118_v13  ;;  %2772 = vmatmul.msk.f32.gmra.mxu0 %vm90_vm1, %v3280_v15 }
 0x540   :  { %v978_v27 = vsel %vm90_vm1, %v970_v26, 0.0 }
 0x541   :  { %979 = vadd.xlane.f32.xlu1 %v978_v27 }
 0x543   :  { %v959_v44 = vpop.f32.mrf.mxu2 }
 0x544   :  { %v3327_v49 = vadd.f32 %v2859_v21, %v959_v44 }
 0x546   :  { %v971_v53 = vmul.f32 %v3327_v49, %v3327_v49 }
 0x547   :  { %2773 = vmatmul.msk.f32.gmra.mxu0 %vm90_vm1, %v3285_v17  ;;  %2779 = vmatmul.msk.f32.vlgmr.msrb.gmra.mxu1 %vm90_vm1, %v3097_v8 }
 0x548   :  { %v981_v0 = vsel %vm90_vm1, %v971_v53, 0.0 }
 0x54f   :  { %2774 = vmatmul.msk.f32.gmra.mxu0 %vm90_vm1, %v3290_v9  ;;  %2780 = vmatmul.msk.f32.gmra.mxu1 %vm90_vm1, %v3104_v10 }
 0x5a4   :  { %v694_v12 = vpop.f32.mrf.mxu0 }
 0x5ac   :  { %v697_v13 = vpop.f32.mrf.mxu0 }
 0x5b4   :  { %v742_v31 = vpop.f32.mrf.mxu0  ;;  %v980_v4 = vpop.xlane.xlu1 %979 }
 0x5b5   :  { %v754_v24 = vadd.f32 %v742_v31, %v694_v12  ;;  %v986_v33 = vmax.f32 %v980_v4, 1e-24  ;;  %v717_v34 = vpop.f32.mrf.mxu1 }
 0x5b7   :  { %v3321_v35 = vadd.f32 %v2860_v28, %v754_v24  ;;  %2895 = vrsqrt.f32 %v986_v33  ;;  %vm1014_vm10 = vweird.f32 %v986_v33 }
 0x5bc   :  { %v745_v37 = vpop.f32.mrf.mxu0 }
 0x5bd   :  { %v2896_v55 = vpop.eup %2895  ;;  %v720_v8 = vpop.f32.mrf.mxu1  ;;  %v3323_v38 = vadd.f32 %v745_v37, %v697_v13 }
 0x5be   :  { %v1009_v39 = vmul.f32 %v2896_v55, %v986_v33  ;;  %vm1015_vm11 = vweird.f32 %v2896_v55 }
 0x5bf   :  { %vm1016_vm12 = vmor %vm1014_vm10, %vm1015_vm11 }
 0x5c0   :  { %v1010_v30 = vmul.f32 %v2896_v55, %v1009_v39 }
 0x5c2   :  { %v1011_v42 = vmul.f32 0.5, %v1010_v30 }
 0x5c4   :  { %v748_v10 = vpop.f32.mrf.mxu0  ;;  %v1012_v46 = vsub.f32 1.5, %v1011_v42 }
 0x5c5   :  { %v756_v22 = vadd.f32 %v748_v10, %v717_v34  ;;  %v933_v32 = vpop.f32.mrf.mxu1 }
 0x5c6   :  { %v964_v45 = vadd.f32 %v2859_v21, %v933_v32  ;;  %v1013_v1 = vmul.f32 %v2896_v55, %v1012_v46 }
 0x5c7   :  { %v3325_v47 = vadd.f32 %v2860_v28, %v756_v22 }
 0x5c8   :  { %v968_v48 = vmul.f32 %v964_v45, %v964_v45  ;;  %v1017_v63 = vsel %vm1016_vm12, %v2896_v55, %v1013_v1 }
 0x5c9   :  { %v1030_v2 = vmul.f32 %v1017_v63, %v966_v25 }
 0x5ca   :  { %v972_v50 = vsel %vm90_vm1, %v968_v48, 0.0 }
 0x5cb   :  { %973 = vadd.xlane.f32.xlu0 %v972_v50  ;;  %v3336_v7 = vmax.f32 %v1030_v2, 0.0  ;;  %v1113_v2 = vld [vmem:[#allocation2 + $0x80] sm:$0xff] }
 0x5cc   :  { %v751_v52 = vpop.f32.mrf.mxu0  ;;  %1140 = vmatpush.msra.mxu1 %v1113_v2  ;;  %v3413_v2 = vld [vmem:[%s3770_s1 + $0x18] sm:$0xff] }
 0x5cd   :  { %v757_v54 = vadd.f32 %v751_v52, %v720_v8  ;;  %v936_v56 = vpop.f32.mrf.mxu1  ;;  %v1042_v58 = vsel %vm90_vm1, %v3336_v7, 0.0  ;;  %v1052_v32 = vmul.f32 %v3336_v7, %v3336_v7 }
 0x5ce   :  { %v965_v57 = vadd.f32 %v2859_v21, %v936_v56 }
 0x5cf   :  { %v3332_v59 = vadd.f32 %v2860_v28, %v757_v54  ;;  %v1060_v1 = vsel %vm90_vm1, %v1052_v32, 0.0 }
 0x5d0   :  { %v969_v5 = vmul.f32 %v965_v57, %v965_v57 }
 0x5d2   :  { %v975_v6 = vsel %vm90_vm1, %v969_v5, 0.0 }
 0x5d3   :  { %982 = vadd.xlane.f32.xlu0 %v981_v0  ;;  %976 = vadd.xlane.f32.xlu2 %v975_v6 }
 0x5db   :  { %1043 = vadd.xlane.f32.xlu2 %v1042_v58  ;;  %v1112_v58 = vld [vmem:[#allocation2 + $0x78] sm:$0xff] }
 0x5dc   :  { %1141 = vmatpush.msra.mxu1 %v1112_v58  ;;  %v2861_v58 = vld [vmem:[#allocation2 + $0x88] ss:$0 sm:$0xff] }
 0x63e   :  { %v974_v43 = vpop.xlane.xlu0 %973 }
 0x63f   :  { %v984_v14 = vmax.f32 %v974_v43, 1e-24 }
 0x641   :  { %2897 = vrsqrt.f32 %v984_v14  ;;  %vm994_vm14 = vweird.f32 %v984_v14 }
 0x646   :  { %v983_v16 = vpop.xlane.xlu0 %982  ;;  %v977_v3 = vpop.xlane.xlu2 %976 }
 0x647   :  { %v2898_v60 = vpop.eup %2897  ;;  %v987_v61 = vmax.f32 %v983_v16, 1e-24  ;;  %v985_v18 = vmax.f32 %v977_v3, 1e-24 }
 0x648   :  { %v989_v11 = vmul.f32 %v2898_v60, %v984_v14  ;;  %vm995_vm13 = vweird.f32 %v2898_v60 }
 0x649   :  { %2899 = vrsqrt.f32 %v987_v61  ;;  %vm996_vm15 = vmor %vm994_vm14, %vm995_vm13  ;;  %vm1024_vm2 = vweird.f32 %v987_v61  ;;  %vm1004_vm5 = vweird.f32 %v985_v18 }
 0x64a   :  { %v990_v19 = vmul.f32 %v2898_v60, %v989_v11  ;;  %2901 = vrsqrt.f32 %v985_v18 }
 0x64c   :  { %v991_v20 = vmul.f32 0.5, %v990_v19 }
 0x64e   :  { %v992_v21 = vsub.f32 1.5, %v991_v20  ;;  %v1044_v0 = vpop.xlane.xlu2 %1043 }
 0x64f   :  { %v2900_v23 = vpop.eup %2899 }
 0x650   :  { %v2902_v25 = vpop.eup %2901  ;;  %v993_v26 = vmul.f32 %v2898_v60, %v992_v21  ;;  %v1019_v27 = vmul.f32 %v2900_v23, %v987_v61  ;;  %vm1025_vm3 = vweird.f32 %v2900_v23 }
 0x651   :  { %v999_v12 = vmul.f32 %v2902_v25, %v985_v18  ;;  %vm1005_vm4 = vweird.f32 %v2902_v25  ;;  %vm1026_vm0 = vmor %vm1024_vm2, %vm1025_vm3 }
 0x652   :  { %v1020_v13 = vmul.f32 %v2900_v23, %v1019_v27  ;;  %v997_v28 = vsel %vm996_vm15, %v2898_v60, %v993_v26  ;;  %vm1006_vm6 = vmor %vm1004_vm5, %vm1005_vm4 }
 0x653   :  { %v1000_v31 = vmul.f32 %v2902_v25, %v999_v12  ;;  %v1028_v4 = vmul.f32 %v997_v28, %v964_v45 }
 0x654   :  { %v1021_v24 = vmul.f32 0.5, %v1020_v13 }
 0x655   :  { %v1001_v33 = vmul.f32 0.5, %v1000_v31  ;;  %v3340_v34 = vmax.f32 %v1028_v4, 0.0 }
 0x656   :  { %v1022_v37 = vsub.f32 1.5, %v1021_v24 }
 0x657   :  { %v1002_v55 = vsub.f32 1.5, %v1001_v33  ;;  %v1036_v8 = vsel %vm90_vm1, %v3340_v34, 0.0  ;;  %v1050_v39 = vmul.f32 %v3340_v34, %v3340_v34 }
 0x658   :  { %v1023_v30 = vmul.f32 %v2900_v23, %v1022_v37  ;;  %1037 = vadd.xlane.f32.xlu1 %v1036_v8 }
 0x659   :  { %v1003_v42 = vmul.f32 %v2902_v25, %v1002_v55  ;;  %v1054_v10 = vsel %vm90_vm1, %v1050_v39, 0.0 }
 0x65a   :  { %1055 = vadd.xlane.f32.xlu0 %v1054_v10  ;;  %v1027_v22 = vsel %vm1026_vm0, %v2900_v23, %v1023_v30 }
 0x65b   :  { %v1007_v44 = vsel %vm1006_vm6, %v2902_v25, %v1003_v42  ;;  %v1031_v45 = vmul.f32 %v1027_v22, %v3327_v49 }
 0x65c   :  { %v1029_v46 = vmul.f32 %v1007_v44, %v965_v57 }
 0x65d   :  { %v3350_v48 = vmax.f32 %v1031_v45, 0.0 }
 0x65e   :  { %v3352_v50 = vmax.f32 %v1029_v46, 0.0 }
 0x65f   :  { %v1045_v53 = vsel %vm90_vm1, %v3350_v48, 0.0  ;;  %v1053_v49 = vmul.f32 %v3350_v48, %v3350_v48 }
 0x660   :  { %1061 = vadd.xlane.f32.xlu1 %v1060_v1  ;;  %v1039_v52 = vsel %vm90_vm1, %v3352_v50, 0.0  ;;  %v1051_v54 = vmul.f32 %v3352_v50, %v3352_v50 }
 0x661   :  { %1040 = vadd.xlane.f32.xlu2 %v1039_v52  ;;  %v1063_v57 = vsel %vm90_vm1, %v1053_v49, 0.0 }
 0x662   :  { %1046 = vadd.xlane.f32.xlu0 %v1045_v53  ;;  %v1057_v56 = vsel %vm90_vm1, %v1051_v54, 0.0 }
 0x668   :  { %1058 = vadd.xlane.f32.xlu1 %v1057_v56 }
 0x669   :  { %1064 = vadd.xlane.f32.xlu2 %v1063_v57 }
 0x6cb   :  { %v1038_v63 = vpop.xlane.xlu1 %1037 }
 0x6cc   :  { %v1048_v6 = vadd.f32 %v1044_v0, %v1038_v63 }
 0x6cd   :  { %v1056_v5 = vpop.xlane.xlu0 %1055 }
 0x6ce   :  { %v1068_v43 = vmul.f32 %v1048_v6, %v3169_v51  ;;  %v3406_v6 = vld [vmem:[%s3770_s1 + $0x10] sm:$0xff] }
 0x6d0   :  { %v1072_v18 = vmul.f32 %v1068_v43, %v1068_v43  ;;  %v1078_v42 = vsub.f32 %v3340_v34, %v1068_v43  ;;  %v1080_v34 = vsub.f32 %v3336_v7, %v1068_v43  ;;  %v3392_v7 = vld [vmem:[%s3770_s1] sm:$0xff] }
 0x6d3   :  { %v1062_v14 = vpop.xlane.xlu1 %1061 }
 0x6d4   :  { %v1066_v16 = vadd.f32 %v1062_v14, %v1056_v5  ;;  %v1041_v3 = vpop.xlane.xlu2 %1040 }
 0x6d5   :  { %v1047_v60 = vpop.xlane.xlu0 %1046 }
 0x6d6   :  { %v1070_v61 = vmul.f32 %v1066_v16, %v3169_v51  ;;  %v1049_v11 = vadd.f32 %v1047_v60, %v1041_v3 }
 0x6d8   :  { %v1074_v19 = vsub.f32 %v1070_v61, %v1072_v18  ;;  %v1069_v21 = vmul.f32 %v1049_v11, %v3169_v51 }
 0x6da   :  { %v1076_v20 = vmax.f32 %v1074_v19, 0.0  ;;  %v1073_v12 = vmul.f32 %v1069_v21, %v1069_v21  ;;  %v1079_v52 = vsub.f32 %v3352_v50, %v1069_v21  ;;  %v1081_v56 = vsub.f32 %v3350_v48, %v1069_v21  ;;  %v3399_v48 = vld [vmem:[%s3770_s1 + $0x8] sm:$0xff] }
 0x6db   :  { %v1059_v23 = vpop.xlane.xlu1 %1058 }
 0x6dc   :  { %v1082_v25 = vadd.f32 1e-05, %v1076_v20  ;;  %v1065_v26 = vpop.xlane.xlu2 %1064 }
 0x6dd   :  { %v1067_v27 = vadd.f32 %v1065_v26, %v1059_v23 }
 0x6de   :  { %2903 = vrsqrt.f32 %v1082_v25  ;;  %vm1090_vm8 = vweird.f32 %v1082_v25 }
 0x6df   :  { %v1071_v13 = vmul.f32 %v1067_v27, %v3169_v51 }
 0x6e1   :  { %v1075_v28 = vsub.f32 %v1071_v13, %v1073_v12 }
 0x6e3   :  { %v1077_v31 = vmax.f32 %v1075_v28, 0.0 }
 0x6e4   :  { %v2904_v4 = vpop.eup %2903 }
 0x6e5   :  { %v1085_v24 = vmul.f32 %v2904_v4, %v1082_v25  ;;  %v1083_v33 = vadd.f32 1e-05, %v1077_v31  ;;  %vm1091_vm7 = vweird.f32 %v2904_v4 }
 0x6e6   :  { %vm1092_vm9 = vmor %vm1090_vm8, %vm1091_vm7 }
 0x6e7   :  { %v1086_v37 = vmul.f32 %v2904_v4, %v1085_v24  ;;  %2905 = vrsqrt.f32 %v1083_v33  ;;  %vm1100_vm11 = vweird.f32 %v1083_v33 }
 0x6e9   :  { %v1087_v55 = vmul.f32 0.5, %v1086_v37 }
 0x6eb   :  { %v1088_v8 = vsub.f32 1.5, %v1087_v55 }
 0x6ed   :  { %v2906_v39 = vpop.eup %2905  ;;  %v1089_v30 = vmul.f32 %v2904_v4, %v1088_v8 }
 0x6ee   :  { %v1095_v10 = vmul.f32 %v2906_v39, %v1083_v33  ;;  %vm1101_vm10 = vweird.f32 %v2906_v39 }
 0x6ef   :  { %v1093_v22 = vsel %vm1092_vm9, %v2904_v4, %v1089_v30  ;;  %vm1102_vm12 = vmor %vm1100_vm11, %vm1101_vm10 }
 0x6f0   :  { %v1096_v32 = vmul.f32 %v2906_v39, %v1095_v10  ;;  %v3370_v44 = vmul.f32 %v1093_v22, %v1078_v42  ;;  %v3380_v49 = vmul.f32 %v1093_v22, %v1080_v34 }
 0x6f2   :  { %2783 = vmatmul.msk.f32.vlgmr.msra.gmra.mxu1 %vm90_vm1, %v3370_v44  ;;  %v1097_v45 = vmul.f32 0.5, %v1096_v32 }
 0x6f4   :  { %v1098_v46 = vsub.f32 1.5, %v1097_v45 }
 0x6f6   :  { %v1099_v1 = vmul.f32 %v2906_v39, %v1098_v46 }
 0x6f8   :  { %v1103_v53 = vsel %vm1102_vm12, %v2906_v39, %v1099_v1 }
 0x6f9   :  { %v3375_v54 = vmul.f32 %v1103_v53, %v1079_v52  ;;  %v3385_v57 = vmul.f32 %v1103_v53, %v1081_v56 }
 0x6fb   :  { %2784 = vmatmul.msk.f32.gmra.mxu1 %vm90_vm1, %v3375_v54 }
 0x703   :  { %2785 = vmatmul.msk.f32.gmra.mxu1 %vm90_vm1, %v3380_v49 }
 0x70b   :  { %2786 = vmatmul.msk.f32.gmra.mxu1 %vm90_vm1, %v3385_v57 }
 0x76f   :  { %v1143_v50 = vpop.f32.mrf.mxu1 }
 0x778   :  { %v1146_v63 = vpop.f32.mrf.mxu1 }
 0x779   :  { %1169 = vmatpush.msra.mxu2 %v1146_v63  ;;  %v3028_v63 = vmov 0  }
 0x77a   :  { %2854 = vset.pattern.permute.xlu2 %v3028_v63  ;;  %2855 = vset.pattern.permute.xlu0 %v3028_v63 }
 0x77b   :  { %1170 = vmatpush.msra.mxu2 %v1143_v50  ;;  %2856 = vset.pattern.permute.xlu1 %v3028_v63 }
 0x77c   :  { %2787 = vmatmul.msk.f32.vlgmr.msra.gmra.mxu2 %vm90_vm1, %v3392_v7 }
 0x780   :  { %v1149_v0 = vpop.f32.mrf.mxu1 }
 0x784   :  { %2788 = vmatmul.msk.f32.gmra.mxu2 %vm90_vm1, %v3399_v48 }
 0x788   :  { %v1152_v5 = vpop.f32.mrf.mxu1 }
 0x789   :  { %1192 = vmatpush.msra.mxu0 %v1152_v5 }
 0x78b   :  { %1193 = vmatpush.msra.mxu0 %v1149_v0 }
 0x78c   :  { %2789 = vmatmul.msk.f32.vlgmr.msra.gmra.mxu0 %vm90_vm1, %v3406_v6 }
 0x794   :  { %2790 = vmatmul.msk.f32.gmra.mxu0 %vm90_vm1, %v3413_v2 }
 0x7ff   :  { %v1172_v43 = vpop.f32.mrf.mxu2 }
 0x800   :  { %v1203_v14 = vadd.f32 %v2861_v58, %v1172_v43 }
 0x802   :  { %v1207_v16 = vmul.f32 %v1203_v14, %v1203_v14 }
 0x804   :  { %v1211_v3 = vsel %vm90_vm1, %v1207_v16, 0.0 }
 0x805   :  { %1212 = vadd.xlane.f32.xlu0 %v1211_v3 }
 0x807   :  { %v1175_v60 = vpop.f32.mrf.mxu2 }
 0x808   :  { %v3418_v61 = vadd.f32 %v2861_v58, %v1175_v60 }
 0x809   :  { %v1195_v18 = vpop.f32.mrf.mxu0 }
 0x80a   :  { %v3420_v11 = vadd.f32 %v2861_v58, %v1195_v18  ;;  %v1208_v19 = vmul.f32 %v3418_v61, %v3418_v61 }
 0x80c   :  { %v1214_v20 = vsel %vm90_vm1, %v1208_v19, 0.0  ;;  %v1209_v21 = vmul.f32 %v3420_v11, %v3420_v11 }
 0x80d   :  { %1215 = vadd.xlane.f32.xlu2 %v1214_v20 }
 0x80e   :  { %v1217_v23 = vsel %vm90_vm1, %v1209_v21, 0.0 }
 0x80f   :  { %1218 = vadd.xlane.f32.xlu1 %v1217_v23 }
 0x811   :  { %v1198_v25 = vpop.f32.mrf.mxu0 }
 0x812   :  { %v3428_v26 = vadd.f32 %v2861_v58, %v1198_v25 }
 0x814   :  { %v1210_v27 = vmul.f32 %v3428_v26, %v3428_v26 }
 0x816   :  { %v1220_v12 = vsel %vm90_vm1, %v1210_v27, 0.0 }
 0x817   :  { %1221 = vadd.xlane.f32.xlu0 %v1220_v12 }
 0x878   :  { %v1213_v13 = vpop.xlane.xlu0 %1212 }
 0x879   :  { %v1223_v28 = vmax.f32 %v1213_v13, 1e-24 }
 0x87b   :  { %2907 = vrsqrt.f32 %v1223_v28  ;;  %vm1233_vm13 = vweird.f32 %v1223_v28 }
 0x880   :  { %v1216_v31 = vpop.xlane.xlu2 %1215 }
 0x881   :  { %v2908_v4 = vpop.eup %2907  ;;  %v1224_v24 = vmax.f32 %v1216_v31, 1e-24 }
 0x882   :  { %v1228_v33 = vmul.f32 %v2908_v4, %v1223_v28  ;;  %v1219_v37 = vpop.xlane.xlu1 %1218  ;;  %vm1234_vm14 = vweird.f32 %v2908_v4 }
 0x883   :  { %2909 = vrsqrt.f32 %v1224_v24  ;;  %v1225_v55 = vmax.f32 %v1219_v37, 1e-24  ;;  %vm1235_vm15 = vmor %vm1233_vm13, %vm1234_vm14  ;;  %vm1243_vm2 = vweird.f32 %v1224_v24 }
 0x884   :  { %v1229_v8 = vmul.f32 %v2908_v4, %v1228_v33 }
 0x885   :  { %2911 = vrsqrt.f32 %v1225_v55  ;;  %vm1253_vm5 = vweird.f32 %v1225_v55 }
 0x886   :  { %v1230_v39 = vmul.f32 0.5, %v1229_v8 }
 0x888   :  { %v1231_v30 = vsub.f32 1.5, %v1230_v39 }
 0x889   :  { %v2910_v42 = vpop.eup %2909 }
 0x88a   :  { %v1232_v10 = vmul.f32 %v2908_v4, %v1231_v30  ;;  %v1238_v22 = vmul.f32 %v2910_v42, %v1224_v24  ;;  %v1222_v32 = vpop.xlane.xlu0 %1221  ;;  %vm1244_vm3 = vweird.f32 %v2910_v42 }
 0x88b   :  { %v2912_v45 = vpop.eup %2911  ;;  %v1226_v46 = vmax.f32 %v1222_v32, 1e-24  ;;  %vm1245_vm0 = vmor %vm1243_vm2, %vm1244_vm3  ;;  %v38_v32 = vld [vmem:[%s3771_s2] sm:$0xff]  ;;  %vm1450_vm2 = vcmask 31744   ;;  %vm1614_vm3 = vcmask 1043456  }
 0x88c   :  { %v1239_v1 = vmul.f32 %v2910_v42, %v1238_v22  ;;  %v1248_v52 = vmul.f32 %v2912_v45, %v1225_v55  ;;  %v1236_v53 = vsel %vm1235_vm15, %v2908_v4, %v1232_v10  ;;  %vm1254_vm4 = vweird.f32 %v2912_v45 }
 0x88d   :  { %2913 = vrsqrt.f32 %v1226_v46  ;;  %v1267_v34 = vmul.f32 %v1236_v53, %v1203_v14  ;;  %vm1255_vm6 = vmor %vm1253_vm5, %vm1254_vm4  ;;  %vm1263_vm7 = vweird.f32 %v1226_v46  ;;  %v1517_v53 = vld [vmem:[#allocation2 + $0xb8] sm:$0xff] }
 0x88e   :  { %v1240_v56 = vmul.f32 0.5, %v1239_v1  ;;  %v1249_v50 = vmul.f32 %v2912_v45, %v1248_v52  ;;  %v1518_v1 = vld [vmem:[#allocation2 + $0xc0] sm:$0xff]  ;;  %v1352_v52 = vld [vmem:[#allocation2 + $0x98] sm:$0xff] }
 0x88f   :  { %v3433_v0 = vmax.f32 %v1267_v34, 0.0  ;;  %1546 = vmatpush.msrb.mxu1 %v1518_v1  ;;  %1379 = vmatpush.msrb.mxu3 %v1352_v52  ;;  %v1351_v34 = vld [vmem:[#allocation2 + $0x90] sm:$0xff] }
 0x890   :  { %v1241_v5 = vsub.f32 1.5, %v1240_v56  ;;  %v1250_v58 = vmul.f32 0.5, %v1249_v50 }
 0x891   :  { %v1275_v43 = vsel %vm90_vm1, %v3433_v0, 0.0  ;;  %v1289_v16 = vmul.f32 %v3433_v0, %v3433_v0  ;;  %1547 = vmatpush.msrb.mxu1 %v1517_v53  ;;  %1380 = vmatpush.msrb.mxu3 %v1351_v34 }
 0x892   :  { %v1242_v3 = vmul.f32 %v2910_v42, %v1241_v5  ;;  %v1251_v14 = vsub.f32 1.5, %v1250_v58  ;;  %1276 = vadd.xlane.f32.xlu1 %v1275_v43 }
 0x893   :  { %v2914_v60 = vpop.eup %2913  ;;  %v1293_v18 = vsel %vm90_vm1, %v1289_v16, 0.0  ;;  %1814 = vmatpush.msra.mxu1 %v3399_v48 }
 0x894   :  { %v1252_v19 = vmul.f32 %v2912_v45, %v1251_v14  ;;  %v1258_v20 = vmul.f32 %v2914_v60, %v1226_v46  ;;  %1294 = vadd.xlane.f32.xlu0 %v1293_v18  ;;  %v1246_v25 = vsel %vm1245_vm0, %v2910_v42, %v1242_v3  ;;  %vm1264_vm8 = vweird.f32 %v2914_v60 }
 0x895   :  { %v1268_v28 = vmul.f32 %v1246_v25, %v3418_v61  ;;  %vm1265_vm9 = vmor %vm1263_vm7, %vm1264_vm8  ;;  %1815 = vmatpush.msra.mxu1 %v3392_v7 }
 0x896   :  { %v1259_v21 = vmul.f32 %v2914_v60, %v1258_v20  ;;  %v1256_v23 = vsel %vm1255_vm6, %v2912_v45, %v1252_v19  ;;  %v41_v45 = vld [vmem:[%s3771_s2 + $0x18] sm:$0xff] }
 0x897   :  { %v1269_v27 = vmul.f32 %v1256_v23, %v3420_v11  ;;  %v3449_v11 = vmax.f32 %v1268_v28, 0.0 }
 0x898   :  { %v1260_v12 = vmul.f32 0.5, %v1259_v21 }
 0x899   :  { %v3441_v13 = vmax.f32 %v1269_v27, 0.0  ;;  %v1290_v39 = vmul.f32 %v3449_v11, %v3449_v11  ;;  %v1278_v30 = vsel %vm90_vm1, %v3449_v11, 0.0 }
 0x89a   :  { %v1261_v31 = vsub.f32 1.5, %v1260_v12 }
 0x89b   :  { %v1281_v4 = vsel %vm90_vm1, %v3441_v13, 0.0  ;;  %v1291_v24 = vmul.f32 %v3441_v13, %v3441_v13  ;;  %v1296_v10 = vsel %vm90_vm1, %v1290_v39, 0.0 }
 0x89c   :  { %v1262_v33 = vmul.f32 %v2914_v60, %v1261_v31  ;;  %1282 = vadd.xlane.f32.xlu2 %v1281_v4 }
 0x89d   :  { %v1299_v37 = vsel %vm90_vm1, %v1291_v24, 0.0 }
 0x89e   :  { %1300 = vadd.xlane.f32.xlu1 %v1299_v37  ;;  %v1266_v55 = vsel %vm1265_vm9, %v2914_v60, %v1262_v33 }
 0x89f   :  { %v1270_v61 = vmul.f32 %v1266_v55, %v3428_v26 }
 0x8a1   :  { %v3452_v8 = vmax.f32 %v1270_v61, 0.0 }
 0x8a3   :  { %v1284_v42 = vsel %vm90_vm1, %v3452_v8, 0.0  ;;  %v1292_v22 = vmul.f32 %v3452_v8, %v3452_v8 }
 0x8a4   :  { %1279 = vadd.xlane.f32.xlu2 %v1278_v30  ;;  %1285 = vadd.xlane.f32.xlu0 %v1284_v42 }
 0x8a5   :  { %v1302_v26 = vsel %vm90_vm1, %v1292_v22, 0.0 }
 0x8a6   :  { %1297 = vadd.xlane.f32.xlu1 %v1296_v10 }
 0x8ac   :  { %1303 = vadd.xlane.f32.xlu2 %v1302_v26 }
 0x8c4   :  { %338 = vperm.xlu2 %2854, %v38_v32  }
 0x8cc   :  { %353 = vperm.xlu2 %2854, %v41_v45  }
 0x905   :  { %v1277_v46 = vpop.xlane.xlu1 %1276 }
 0x907   :  { %v1295_v56 = vpop.xlane.xlu0 %1294 }
 0x90f   :  { %v1283_v50 = vpop.xlane.xlu2 %1282 }
 0x910   :  { %v1287_v63 = vadd.f32 %v1283_v50, %v1277_v46 }
 0x911   :  { %v1301_v5 = vpop.xlane.xlu1 %1300 }
 0x912   :  { %v1307_v58 = vmul.f32 %v1287_v63, %v3169_v51  ;;  %v1305_v43 = vadd.f32 %v1301_v5, %v1295_v56 }
 0x914   :  { %v1311_v16 = vmul.f32 %v1307_v58, %v1307_v58  ;;  %v1309_v3 = vmul.f32 %v1305_v43, %v3169_v51  ;;  %v1317_v22 = vsub.f32 %v3433_v0, %v1307_v58 }
 0x916   :  { %v1313_v14 = vsub.f32 %v1309_v3, %v1311_v16 }
 0x917   :  { %v1280_v60 = vpop.xlane.xlu2 %1279  ;;  %v1286_v18 = vpop.xlane.xlu0 %1285 }
 0x918   :  { %v1315_v19 = vmax.f32 %v1313_v14, 0.0  ;;  %v1288_v21 = vadd.f32 %v1286_v18, %v1280_v60  ;;  %v1516_v18 = vld [vmem:[#allocation2 + $0xb0] sm:$0xff] }
 0x919   :  { %v1298_v25 = vpop.xlane.xlu1 %1297 }
 0x91a   :  { %v1321_v20 = vadd.f32 1e-05, %v1315_v19  ;;  %v1308_v23 = vmul.f32 %v1288_v21, %v3169_v51 }
 0x91c   :  { %2915 = vrsqrt.f32 %v1321_v20  ;;  %v1312_v4 = vmul.f32 %v1308_v23, %v1308_v23  ;;  %vm1329_vm11 = vweird.f32 %v1321_v20  ;;  %v1318_v63 = vsub.f32 %v3449_v11, %v1308_v23 }
 0x91d   :  { %v1320_v3 = vsub.f32 %v3452_v8, %v1308_v23 }
 0x91f   :  { %v1304_v27 = vpop.xlane.xlu2 %1303 }
 0x920   :  { %v1306_v12 = vadd.f32 %v1304_v27, %v1298_v25 }
 0x922   :  { %v2916_v28 = vpop.eup %2915  ;;  %v1310_v31 = vmul.f32 %v1306_v12, %v3169_v51 }
 0x923   :  { %v1324_v24 = vmul.f32 %v2916_v28, %v1321_v20  ;;  %vm1330_vm10 = vweird.f32 %v2916_v28 }
 0x924   :  { %v1314_v33 = vsub.f32 %v1310_v31, %v1312_v4  ;;  %vm1331_vm12 = vmor %vm1329_vm11, %vm1330_vm10 }
 0x925   :  { %v1325_v37 = vmul.f32 %v2916_v28, %v1324_v24 }
 0x926   :  { %v1316_v55 = vmax.f32 %v1314_v33, 0.0 }
 0x927   :  { %v1326_v61 = vmul.f32 0.5, %v1325_v37  ;;  %v3476_v39 = vpop.permute.xlu2 %338 }
 0x928   :  { %v1322_v30 = vadd.f32 1e-05, %v1316_v55  ;;  %v1108_v19 = vmul.f32 %v3370_v44, %v3476_v39  ;;  %v39_v55 = vld [vmem:[%s3771_s2 + $0x8] sm:$0xff] }
 0x929   :  { %v1327_v42 = vsub.f32 1.5, %v1326_v61 }
 0x92a   :  { %2917 = vrsqrt.f32 %v1322_v30  ;;  %vm1339_vm14 = vweird.f32 %v1322_v30 }
 0x92b   :  { %v1328_v10 = vmul.f32 %v2916_v28, %v1327_v42  ;;  %v40_v42 = vld [vmem:[%s3771_s2 + $0x10] sm:$0xff]  ;;  %s3029_s2 = smov [#allocation5]  }
 0x92c   :  { %s2725_s24 = sshll.u32 %s3029_s2, 4  ;;  %s2726_s24 = int_to_ptr.vmem [resolvable:$true] %s2725_s24 }
 0x92d   :  { %v1332_v26 = vsel %vm1331_vm12, %v2916_v28, %v1328_v10  ;;  %v1519_v10 = vld [vmem:[#allocation2 + $0xc8] sm:$0xf] }
 0x92e   :  { %v1343_v32 = vmul.f32 %v1332_v26, %v1317_v22 }
 0x92f   :  { %v3479_v45 = vpop.permute.xlu2 %353 }
 0x930   :  { %v2918_v46 = vpop.eup %2917  ;;  %2791 = vmatmul.msk.f32.vlgmr.msrb.gmra.mxu3 %vm90_vm1, %v1343_v32  ;;  %v1347_v1 = vmul.f32 %v1343_v32, %v3476_v39  ;;  %v3485_v52 = vmul.f32 %v3290_v9, %v3479_v45  ;;  %v1319_v9 = vsub.f32 %v3441_v13, %v1307_v58  ;;  %v1515_v13 = vld [vmem:[#allocation2 + $0xa8] sm:$0xff] }
 0x931   :  { %v1334_v53 = vmul.f32 %v2918_v46, %v1322_v30  ;;  %vm1340_vm13 = vweird.f32 %v2918_v46 }
 0x932   :  { %2799 = vmatmul.msk.f32.vlgmr.msrb.gmra.mxu1 %vm90_vm1, %v1347_v1  ;;  %vm1341_vm15 = vmor %vm1339_vm14, %vm1340_vm13  ;;  %v3495_v16 = vmul.f32 %v1332_v26, %v1319_v9 }
 0x933   :  { %v1335_v34 = vmul.f32 %v2918_v46, %v1334_v53  ;;  %1912 = vmatpush.msrb.mxu1 %v3485_v52 }
 0x935   :  { %v1336_v0 = vmul.f32 0.5, %v1335_v34 }
 0x937   :  { %v1337_v56 = vsub.f32 1.5, %v1336_v0 }
 0x939   :  { %v1338_v50 = vmul.f32 %v2918_v46, %v1337_v56 }
 0x93b   :  { %v1342_v5 = vsel %vm1341_vm15, %v2918_v46, %v1338_v50  ;;  %vm2525_vm15 = vcmask 1041409  }
 0x93c   :  { %v3490_v43 = vmul.f32 %v1342_v5, %v1318_v63  ;;  %v3500_v14 = vmul.f32 %v1342_v5, %v1320_v3 }
 0x93e   :  { %2792 = vmatmul.msk.f32.gmra.mxu3 %vm90_vm1, %v3490_v43 }
 0x946   :  { %2793 = vmatmul.msk.f32.gmra.mxu3 %vm90_vm1, %v3495_v16 }
 0x94e   :  { %2794 = vmatmul.msk.f32.gmra.mxu3 %vm90_vm1, %v3500_v14 }
 0x9b3   :  { %v1382_v11 = vpop.f32.mrf.mxu3 }
 0x9c1   :  { %v1385_v60 = vpop.f32.mrf.mxu3 }
 0x9c2   :  { %1408 = vmatpush.msrb.mxu2 %v1385_v60 }
 0x9c4   :  { %1409 = vmatpush.msrb.mxu2 %v1382_v11 }
 0x9c5   :  { %2795 = vmatmul.msk.f32.vlgmr.msrb.gmra.mxu2 %vm90_vm1, %v3392_v7  ;;  %v2862_v7 = vld [vmem:[#allocation2 + $0xa0] ss:$0 sm:$0xff] }
 0x9c6   :  { %1587 = vmatpush.msra.mxu2 %v1516_v18 }
 0x9c8   :  { %1588 = vmatpush.msra.mxu2 %v1515_v13 }
 0x9c9   :  { %v1388_v58 = vpop.f32.mrf.mxu3 }
 0x9cd   :  { %2796 = vmatmul.msk.f32.gmra.mxu2 %vm90_vm1, %v3399_v48 }
 0x9d1   :  { %v1391_v8 = vpop.f32.mrf.mxu3 }
 0x9d2   :  { %1431 = vmatpush.msrb.mxu0 %v1391_v8 }
 0x9d4   :  { %1432 = vmatpush.msrb.mxu0 %v1388_v58 }
 0x9d5   :  { %2803 = vmatmul.msk.f32.vlgmr.msra.gmra.mxu2 %vm90_vm1, %v1108_v19  ;;  %2797 = vmatmul.msk.f32.vlgmr.msrb.gmra.mxu0 %vm90_vm1, %v3406_v6 }
 0x9d6   :  { %2807 = vmatpush.msk.msra.mxu0 %vm1614_vm3, %v1519_v10 }
 0x9d8   :  { %1952 = vmatpush.msrb.mxu0 %v3413_v2 }
 0x9da   :  { %1953 = vmatpush.msrb.mxu0 %v3406_v6 }
 0x9dd   :  { %2798 = vmatmul.msk.f32.gmra.mxu0 %vm90_vm1, %v3413_v2 }
 0xa48   :  { %v1411_v20 = vpop.f32.mrf.mxu2 }
 0xa49   :  { %v1442_v21 = vadd.f32 %v2862_v7, %v1411_v20 }
 0xa4b   :  { %v1446_v23 = vmul.f32 %v1442_v21, %v1442_v21 }
 0xa4d   :  { %v1451_v48 = vsel %vm1450_vm2, %v1446_v23, 0.0 }
 0xa4e   :  { %1452 = vadd.xlane.f32.xlu0 %v1451_v48 }
 0xa50   :  { %v1414_v25 = vpop.f32.mrf.mxu2 }
 0xa51   :  { %v3516_v27 = vadd.f32 %v2862_v7, %v1414_v25  ;;  %v630_v25 = vmul.f32 %v3275_v62, %v3476_v39 }
 0xa52   :  { %v1434_v44 = vpop.f32.mrf.mxu0 }
 0xa53   :  { %v1447_v12 = vmul.f32 %v3516_v27, %v3516_v27  ;;  %v3520_v28 = vadd.f32 %v2862_v7, %v1434_v44 }
 0xa55   :  { %v1454_v31 = vsel %vm1450_vm2, %v1447_v12, 0.0  ;;  %v1448_v4 = vmul.f32 %v3520_v28, %v3520_v28 }
 0xa56   :  { %1455 = vadd.xlane.f32.xlu1 %v1454_v31 }
 0xa57   :  { %v1457_v33 = vsel %vm1450_vm2, %v1448_v4, 0.0 }
 0xa5a   :  { %v1437_v24 = vpop.f32.mrf.mxu0 }
 0xa5b   :  { %v3526_v37 = vadd.f32 %v2862_v7, %v1437_v24 }
 0xa5d   :  { %v1449_v61 = vmul.f32 %v3526_v37, %v3526_v37 }
 0xa5e   :  { %1458 = vadd.xlane.f32.xlu1 %v1457_v33 }
 0xa5f   :  { %v1460_v30 = vsel %vm1450_vm2, %v1449_v61, 0.0 }
 0xa62   :  { %343 = vperm.xlu0 %2855, %v39_v55  }
 0xa66   :  { %1461 = vadd.xlane.f32.xlu1 %v1460_v30  ;;  %v850_v30 = vsel %vm90_vm1, %v630_v25, -inf }
 0xa7f   :  { %348 = vperm.xlu1 %2856, %v40_v42  }
 0xac1   :  { %v1453_v22 = vpop.xlane.xlu0 %1452 }
 0xac2   :  { %v1463_v26 = vmax.f32 %v1453_v22, 1e-24 }
 0xac4   :  { %2919 = vrsqrt.f32 %v1463_v26  ;;  %vm1473_vm0 = vweird.f32 %v1463_v26 }
 0xac9   :  { %v1456_v32 = vpop.xlane.xlu1 %1455 }
 0xaca   :  { %v2920_v46 = vpop.eup %2919  ;;  %v1464_v1 = vmax.f32 %v1456_v32, 1e-24 }
 0xacb   :  { %v1468_v53 = vmul.f32 %v2920_v46, %v1463_v26  ;;  %vm1474_vm4 = vweird.f32 %v2920_v46 }
 0xacc   :  { %2921 = vrsqrt.f32 %v1464_v1  ;;  %vm1475_vm5 = vmor %vm1473_vm0, %vm1474_vm4  ;;  %vm1483_vm6 = vweird.f32 %v1464_v1 }
 0xacd   :  { %v1469_v34 = vmul.f32 %v2920_v46, %v1468_v53 }
 0xacf   :  { %v1470_v0 = vmul.f32 0.5, %v1469_v34 }
 0xad1   :  { %v1471_v56 = vsub.f32 1.5, %v1470_v0  ;;  %v1459_v50 = vpop.xlane.xlu1 %1458 }
 0xad2   :  { %v2922_v63 = vpop.eup %2921  ;;  %v1465_v5 = vmax.f32 %v1459_v50, 1e-24 }
 0xad3   :  { %v1472_v9 = vmul.f32 %v2920_v46, %v1471_v56  ;;  %v1478_v2 = vmul.f32 %v2922_v63, %v1464_v1  ;;  %vm1484_vm7 = vweird.f32 %v2922_v63 }
 0xad4   :  { %2923 = vrsqrt.f32 %v1465_v5  ;;  %v3540_v6 = vpop.permute.xlu0 %343  ;;  %vm1485_vm8 = vmor %vm1483_vm6, %vm1484_vm7  ;;  %vm1493_vm9 = vweird.f32 %v1465_v5 }
 0xad5   :  { %v1476_v3 = vsel %vm1475_vm5, %v2920_v46, %v1472_v9  ;;  %v1479_v11 = vmul.f32 %v2922_v63, %v1478_v2  ;;  %v1348_v60 = vmul.f32 %v3490_v43, %v3540_v6  ;;  %v1109_v18 = vmul.f32 %v3375_v54, %v3540_v6 }
 0xad6   :  { %v1507_v13 = vmul.f32 %v1476_v3, %v1442_v21  ;;  %v3548_v58 = vmul.f32 %v3540_v6, %v3183_v36  ;;  %v3556_v43 = vmul.f32 %v3476_v39, %v3176_v29  ;;  %v631_v36 = vmul.f32 %v3280_v15, %v3540_v6 }
 0xad7   :  { %v1480_v8 = vmul.f32 0.5, %v1479_v11  ;;  %2800 = vmatmul.msk.f32.gmra.mxu1 %vm90_vm1, %v1348_v60  ;;  %2804 = vmatmul.msk.f32.gmra.mxu2 %vm90_vm1, %v1109_v18  ;;  %v1350_v60 = vmul.f32 %v3500_v14, %v3479_v45  ;;  %v1111_v18 = vmul.f32 %v3385_v57, %v3479_v45  ;;  %v1549_v57 = vpop.f32.mrf.mxu1 }
 0xad8   :  { %v1511_v19 = vmul.f32 %v1507_v13, %v3476_v39  ;;  %1754 = vmatpush.msra.mxu3 %v3548_v58  ;;  %v851_v61 = vsel %vm90_vm1, %v631_v36, -inf }
 0xad9   :  { %v1481_v54 = vsub.f32 1.5, %v1480_v8  ;;  %v1462_v7 = vpop.xlane.xlu1 %1461  ;;  %v852_v10 = vmax.f32 %v850_v30, %v851_v61 }
 0xada   :  { %v2924_v20 = vpop.eup %2923  ;;  %1755 = vmatpush.msra.mxu3 %v3556_v43  ;;  %v1466_v21 = vmax.f32 %v1462_v7, 1e-24  ;;  %2808 = vmatmul.msk.f32.vlgmr.msra.gmra.mxu0 %vm1450_vm2, %v1511_v19 }
 0xadb   :  { %v1482_v23 = vmul.f32 %v2922_v63, %v1481_v54  ;;  %v1488_v48 = vmul.f32 %v2924_v20, %v1465_v5  ;;  %vm1494_vm10 = vweird.f32 %v2924_v20  ;;  %v853_v22 = vrot.slane %v852_v10, 4 }
 0xadc   :  { %1774 = vmatpush.msrb.mxu3 %v631_v36  ;;  %2925 = vrsqrt.f32 %v1466_v21  ;;  %vm1495_vm11 = vmor %vm1493_vm9, %vm1494_vm10  ;;  %vm1503_vm12 = vweird.f32 %v1466_v21  ;;  %v860_v5 = vsel %vm90_vm1, %v3485_v52, -inf  ;;  %v1590_v36 = vpop.f32.mrf.mxu2 }
 0xadd   :  { %v1489_v29 = vmul.f32 %v2924_v20, %v1488_v48  ;;  %v1486_v44 = vsel %vm1485_vm8, %v2922_v63, %v1482_v23  ;;  %v854_v53 = vmax.f32 %v852_v10, %v853_v22 }
 0xade   :  { %1775 = vmatpush.msrb.mxu3 %v630_v25  ;;  %v1508_v12 = vmul.f32 %v1486_v44, %v3516_v27 }
 0xadf   :  { %v1490_v31 = vmul.f32 0.5, %v1489_v29  ;;  %v855_v9 = vrot.slane %v854_v53, 2 }
 0xae0   :  { %v1512_v15 = vmul.f32 %v1508_v12, %v3540_v6 }
 0xae1   :  { %v1491_v33 = vsub.f32 1.5, %v1490_v31  ;;  %v856_v3 = vmax.f32 %v854_v53, %v855_v9 }
 0xae2   :  { %v2926_v4 = vpop.eup %2925  ;;  %2809 = vmatmul.msk.f32.gmra.mxu0 %vm1450_vm2, %v1512_v15 }
 0xae3   :  { %v1498_v24 = vmul.f32 %v2926_v4, %v1466_v21  ;;  %v1492_v42 = vmul.f32 %v2924_v20, %v1491_v33  ;;  %vm1504_vm13 = vweird.f32 %v2926_v4  ;;  %v857_v19 = vrot.slane %v856_v3, 1  ;;  %v2863_v21 = vld [vmem:[#allocation2 + $0xd0] ss:$0 sm:$0xff] }
 0xae4   :  { %vm3570_vm14 = vmor %vm1503_vm12, %vm1504_vm13 }
 0xae5   :  { %v1499_v55 = vmul.f32 %v2926_v4, %v1498_v24  ;;  %v1496_v26 = vsel %vm1495_vm11, %v2924_v20, %v1492_v42  ;;  %v858_v54 = vmax.f32 %v856_v3, %v857_v19  ;;  %v1591_v20 = vadd.f32 %v1590_v36, %v1549_v57 }
 0xae6   :  { %v1509_v46 = vmul.f32 %v1496_v26, %v3520_v28 }
 0xae7   :  { %v1500_v62 = vmul.f32 0.5, %v1499_v55 }
 0xae9   :  { %v1501_v27 = vsub.f32 1.5, %v1500_v62 }
 0xaeb   :  { %v1502_v32 = vmul.f32 %v2926_v4, %v1501_v27  ;;  %v2971_v27 = vld [vmem:[#allocation2 + $0x60] ss:$0 sm:$0xff] }
 0xaec   :  { %v3606_v22 = vadd.f32 %v2971_v27, %v3323_v38 }
 0xaf1   :  { %v3574_v34 = vpop.permute.xlu1 %348 }
 0xaf2   :  { %v1349_v0 = vmul.f32 %v3495_v16, %v3574_v34  ;;  %v1110_v56 = vmul.f32 %v3380_v49, %v3574_v34  ;;  %v1513_v50 = vmul.f32 %v1509_v46, %v3574_v34  ;;  %v632_v63 = vmul.f32 %v3285_v17, %v3574_v34 }
 0xaf3   :  { %v1506_v16 = vsel %vm3570_vm14, %v2926_v4, %v1502_v32  ;;  %v765_v32 = vmul.f32 %v3606_v22, %v3606_v22 }
 0xaf4   :  { %2801 = vmatmul.msk.f32.gmra.mxu1 %vm90_vm1, %v1349_v0  ;;  %2805 = vmatmul.msk.f32.gmra.mxu2 %vm90_vm1, %v1110_v56  ;;  %v859_v28 = vsel %vm90_vm1, %v632_v63, -inf  ;;  %v1510_v17 = vmul.f32 %v1506_v16, %v3526_v37 }
 0xaf5   :  { %2810 = vmatmul.msk.f32.gmra.mxu0 %vm1450_vm2, %v1513_v50  ;;  %v861_v49 = vmax.f32 %v859_v28, %v860_v5  ;;  %1913 = vmatpush.msrb.mxu1 %v632_v63  ;;  %v771_v46 = vsel %vm90_vm1, %v765_v32, 0.0 }
 0xaf6   :  { %v1514_v13 = vmul.f32 %v1510_v17, %v3479_v45 }
 0xaf7   :  { %v862_v2 = vrot.slane %v861_v49, 4 }
 0xaf9   :  { %v863_v11 = vmax.f32 %v861_v49, %v862_v2 }
 0xafb   :  { %v864_v52 = vrot.slane %v863_v11, 2 }
 0xafc   :  { %2802 = vmatmul.msk.f32.gmra.mxu1 %vm90_vm1, %v1350_v60  ;;  %2806 = vmatmul.msk.f32.gmra.mxu2 %vm90_vm1, %v1111_v18  ;;  %v764_v18 = vmul.f32 %v3321_v35, %v3321_v35 }
 0xafd   :  { %v865_v8 = vmax.f32 %v863_v11, %v864_v52  ;;  %2811 = vmatmul.msk.f32.gmra.mxu0 %vm1450_vm2, %v1514_v13 }
 0xafe   :  { %v768_v52 = vsel %vm90_vm1, %v764_v18, 0.0 }
 0xaff   :  { %v866_v37 = vrot.slane %v865_v8, 1 }
 0xb01   :  { %v867_v7 = vmax.f32 %v865_v8, %v866_v37 }
 0xb03   :  { %v3601_v14 = vsel %vm2525_vm15, %v867_v7, %v858_v54  ;;  %v767_v7 = vmul.f32 %v3332_v59, %v3332_v59 }
 0xb05   :  { %v777_v36 = vsel %vm90_vm1, %v767_v7, 0.0 }
 0xb54   :  { %v1552_v12 = vpop.f32.mrf.mxu1 }
 0xb57   :  { %v1635_v23 = vpop.f32.mrf.mxu0 }
 0xb58   :  { %v1647_v48 = vadd.f32 %v1635_v23, %v1591_v20 }
 0xb5a   :  { %v1653_v25 = vadd.f32 %v2863_v21, %v1647_v48  ;;  %v1593_v29 = vpop.f32.mrf.mxu2 }
 0xb5b   :  { %v1594_v15 = vadd.f32 %v1593_v29, %v1552_v12 }
 0xb5c   :  { %v1657_v44 = vsel %vm1450_vm2, %v1653_v25, -inf }
 0xb5d   :  { %1658 = vmax.xlane.f32.xlu2 %v1657_v44 }
 0xb5f   :  { %v1638_v31 = vpop.f32.mrf.mxu0 }
 0xb60   :  { %v1648_v4 = vadd.f32 %v1638_v31, %v1594_v15 }
 0xb62   :  { %v1654_v24 = vadd.f32 %v2863_v21, %v1648_v4 }
 0xb64   :  { %v1660_v33 = vsel %vm1450_vm2, %v1654_v24, -inf }
 0xb65   :  { %1661 = vmax.xlane.f32.xlu0 %v1660_v33  ;;  %v766_v33 = vmul.f32 %v3325_v47, %v3325_v47 }
 0xb71   :  { %v1555_v55 = vpop.f32.mrf.mxu1 }
 0xb72   :  { %v1641_v30 = vpop.f32.mrf.mxu0 }
 0xb77   :  { %v1596_v61 = vpop.f32.mrf.mxu2 }
 0xb78   :  { %v1597_v62 = vadd.f32 %v1596_v61, %v1555_v55  ;;  %v774_v61 = vsel %vm90_vm1, %v766_v33, 0.0 }
 0xb79   :  { %v1558_v50 = vpop.f32.mrf.mxu1 }
 0xb7a   :  { %v1649_v42 = vadd.f32 %v1641_v30, %v1597_v62  ;;  %v1644_v16 = vpop.f32.mrf.mxu0 }
 0xb7c   :  { %v1655_v10 = vadd.f32 %v2863_v21, %v1649_v42 }
 0xb7e   :  { %v1663_v26 = vsel %vm1450_vm2, %v1655_v10, -inf }
 0xb7f   :  { %1664 = vmax.xlane.f32.xlu0 %v1663_v26  ;;  %v1599_v56 = vpop.f32.mrf.mxu2 }
 0xb80   :  { %v1600_v63 = vadd.f32 %v1599_v56, %v1558_v50 }
 0xb82   :  { %v1650_v49 = vadd.f32 %v1644_v16, %v1600_v63 }
 0xb84   :  { %v1656_v17 = vadd.f32 %v2863_v21, %v1650_v49 }
 0xb86   :  { %v1666_v60 = vsel %vm1450_vm2, %v1656_v17, -inf }
 0xb87   :  { %772 = vadd.xlane.f32.xlu0 %v771_v46 }
 0xbd0   :  { %v1659_v1 = vpop.xlane.xlu2 %1658 }
 0xbd1   :  { %v1669_v53 = vsub.f32 %v1653_v25, %v1659_v1 }
 0xbd3   :  { %v1673_v0 = vmul.f32 1.442695, %v1669_v53 }
 0xbd5   :  { %2927 = vpow2.f32 %v1673_v0 }
 0xbd8   :  { %v1662_v28 = vpop.xlane.xlu0 %1661 }
 0xbd9   :  { %v1670_v5 = vsub.f32 %v1654_v24, %v1662_v28 }
 0xbdb   :  { %v2928_v38 = vpop.eup %2927  ;;  %v1675_v9 = vmul.f32 1.442695, %v1670_v5 }
 0xbdc   :  { %v1681_v2 = vsel %vm1450_vm2, %v2928_v38, 0.0 }
 0xbdd   :  { %2929 = vpow2.f32 %v1675_v9  ;;  %1682 = vadd.xlane.f32.xlu1 %v1681_v2 }
 0xbe3   :  { %v2930_v3 = vpop.eup %2929 }
 0xbe4   :  { %v1684_v11 = vsel %vm1450_vm2, %v2930_v3, 0.0 }
 0xbe5   :  { %1685 = vadd.xlane.f32.xlu2 %v1684_v11  ;;  %1667 = vmax.xlane.f32.xlu1 %v1666_v60 }
 0xbed   :  { %769 = vadd.xlane.f32.xlu1 %v768_v52 }
 0xbf2   :  { %v1665_v13 = vpop.xlane.xlu0 %1664 }
 0xbf3   :  { %v1671_v8 = vsub.f32 %v1655_v10, %v1665_v13 }
 0xbf5   :  { %v1677_v19 = vmul.f32 1.442695, %v1671_v8 }
 0xbf7   :  { %2931 = vpow2.f32 %v1677_v19 }
 0xbfa   :  { %v773_v55 = vpop.xlane.xlu0 %772 }
 0xbfd   :  { %v2932_v37 = vpop.eup %2931 }
 0xbfe   :  { %v1687_v54 = vsel %vm1450_vm2, %v2932_v37, 0.0 }
 0xbff   :  { %1688 = vadd.xlane.f32.xlu0 %v1687_v54 }
 0xc07   :  { %778 = vadd.xlane.f32.xlu0 %v777_v36 }
 0xc50   :  { %v1683_v57 = vpop.xlane.xlu1 %1682 }
 0xc51   :  { %2933 = vrcp.f32 %v1683_v57 }
 0xc57   :  { %v2934_v20 = vpop.eup %2933 }
 0xc58   :  { %v1686_v21 = vpop.xlane.xlu2 %1685  ;;  %v1668_v23 = vpop.xlane.xlu1 %1667  ;;  %v1697_v48 = vmul.f32 %v2934_v20, %v2928_v38  ;;  %v781_v38 = vmax.f32 %v773_v55, 1e-24 }
 0xc59   :  { %2935 = vrcp.f32 %v1686_v21  ;;  %v1672_v25 = vsub.f32 %v1656_v17, %v1668_v23 }
 0xc5a   :  { %v1701_v29 = vmul.f32 %v1697_v48, %v3476_v39  ;;  %vm800_vm7 = vweird.f32 %v781_v38 }
 0xc5b   :  { %v1679_v44 = vmul.f32 1.442695, %v1672_v25 }
 0xc5c   :  { %1705 = vxpose.xlu2.b32.start [1/2] (short) (narrow) %v1701_v29, 8 }
 0xc5d   :  { %2937 = vpow2.f32 %v1679_v44 }
 0xc5f   :  { %v2936_v12 = vpop.eup %2935 }
 0xc60   :  { %v1698_v15 = vmul.f32 %v2936_v12, %v2930_v3  ;;  %v770_v5 = vpop.xlane.xlu1 %769 }
 0xc61   :  { %v780_v16 = vmax.f32 %v770_v5, 1e-24 }
 0xc62   :  { %v1702_v31 = vmul.f32 %v1698_v15, %v3540_v6 }
 0xc63   :  { %v2938_v4 = vpop.eup %2937  ;;  %vm790_vm10 = vweird.f32 %v780_v16 }
 0xc64   :  { %1837 = vmatpush.msrb.mxu2 %v1702_v31  ;;  %1706 = vxpose.xlu2.b32.end [2/2] (short) (narrow) %v1702_v31, 8  ;;  %v1690_v24 = vsel %vm1450_vm2, %v2938_v4, 0.0 }
 0xc65   :  { %1691 = vadd.xlane.f32.xlu1 %v1690_v24 }
 0xc66   :  { %1838 = vmatpush.msrb.mxu2 %v1701_v29 }
 0xc6d   :  { %775 = vadd.xlane.f32.xlu1 %v774_v61 }
 0xc72   :  { %v1689_v62 = vpop.xlane.xlu0 %1688 }
 0xc73   :  { %2939 = vrcp.f32 %v1689_v62 }
 0xc79   :  { %v2940_v30 = vpop.eup %2939 }
 0xc7a   :  { %v779_v42 = vpop.xlane.xlu0 %778  ;;  %v1699_v10 = vmul.f32 %v2940_v30, %v2932_v37 }
 0xc7b   :  { %v783_v27 = vmax.f32 %v779_v42, 1e-24 }
 0xc7c   :  { %v3629_v26 = vmul.f32 %v1699_v10, %v3574_v34  ;;  %v1982_v10 = vld [vmem:[#allocation2 + $0xe0] sm:$0xff] }
 0xc7d   :  { %2941 = vrsqrt.f32 %v783_v27  ;;  %vm820_vm0 = vweird.f32 %v783_v27 }
 0xc7e   :  { %1843 = vxpose.xlu0.b32.start [1/2] (short) (narrow) %v3629_v26, 8  ;;  %2943 = vrsqrt.f32 %v781_v38 }
 0xc7f   :  { %2945 = vrsqrt.f32 %v780_v16 }
 0xc83   :  { %v2942_v32 = vpop.eup %2941 }
 0xc84   :  { %v815_v46 = vmul.f32 %v2942_v32, %v783_v27  ;;  %vm821_vm4 = vweird.f32 %v2942_v32  ;;  %v2944_v9 = vpop.eup %2943  ;;  %v1981_v27 = vld [vmem:[#allocation2 + $0xd8] sm:$0xff] }
 0xc85   :  { %vm822_vm5 = vmor %vm820_vm0, %vm821_vm4  ;;  %v2946_v2 = vpop.eup %2945  ;;  %v795_v17 = vmul.f32 %v2944_v9, %v781_v38  ;;  %vm801_vm6 = vweird.f32 %v2944_v9  ;;  %vm2130_vm4 = vcmask 125952  }
 0xc86   :  { %v816_v1 = vmul.f32 %v2942_v32, %v815_v46  ;;  %v785_v3 = vmul.f32 %v2946_v2, %v780_v16  ;;  %vm791_vm8 = vweird.f32 %v2946_v2  ;;  %vm802_vm9 = vmor %vm800_vm7, %vm801_vm6 }
 0xc87   :  { %v796_v11 = vmul.f32 %v2944_v9, %v795_v17  ;;  %vm792_vm11 = vmor %vm790_vm10, %vm791_vm8 }
 0xc88   :  { %v817_v53 = vmul.f32 0.5, %v816_v1  ;;  %v786_v18 = vmul.f32 %v2946_v2, %v785_v3 }
 0xc89   :  { %v797_v8 = vmul.f32 0.5, %v796_v11  ;;  %v2864_v11 = vld [vmem:[#allocation2 + $0x108] ss:$0 sm:$0xff] }
 0xc8a   :  { %v818_v0 = vsub.f32 1.5, %v817_v53  ;;  %v787_v37 = vmul.f32 0.5, %v786_v18 }
 0xc8b   :  { %v798_v54 = vsub.f32 1.5, %v797_v8 }
 0xc8c   :  { %v819_v56 = vmul.f32 %v2942_v32, %v818_v0  ;;  %v788_v7 = vsub.f32 1.5, %v787_v37 }
 0xc8d   :  { %v799_v57 = vmul.f32 %v2944_v9, %v798_v54 }
 0xc8e   :  { %v823_v50 = vsel %vm822_vm5, %v2942_v32, %v819_v56  ;;  %v789_v21 = vmul.f32 %v2946_v2, %v788_v7  ;;  %v1985_v32 = vld [vmem:[#allocation2 + $0xf8] sm:$0xff] }
 0xc8f   :  { %v827_v63 = vmul.f32 %v823_v50, %v3332_v59  ;;  %v803_v48 = vsel %vm802_vm9, %v2944_v9, %v799_v57 }
 0xc90   :  { %v793_v44 = vsel %vm792_vm11, %v2946_v2, %v789_v21  ;;  %v825_v12 = vmul.f32 %v803_v48, %v3606_v22 }
 0xc91   :  { %v831_v28 = vmul.f32 %v827_v63, %v3479_v45  ;;  %v824_v31 = vmul.f32 %v793_v44, %v3321_v35 }
 0xc92   :  { %v3638_v33 = vmul.f32 %v825_v12, %v3540_v6 }
 0xc93   :  { %1932 = vmatpush.msra.mxu2 %v831_v28  ;;  %v3645_v22 = vmul.f32 %v824_v31, %v3476_v39  ;;  %v878_v6 = vsel %vm90_vm1, %v831_v28, -inf  ;;  %v3661_v39 = vmul.f32 %v3574_v34, %v3190_v40  ;;  %v1984_v40 = vld [vmem:[#allocation2 + $0xf0] sm:$0xff] }
 0xcd8   :  { %v1692_v49 = vpop.xlane.xlu1 %1691 }
 0xcd9   :  { %2947 = vrcp.f32 %v1692_v49 }
 0xcdf   :  { %v2948_v60 = vpop.eup %2947 }
 0xce0   :  { %v1700_v52 = vmul.f32 %v2948_v60, %v2938_v4  ;;  %v776_v13 = vpop.xlane.xlu1 %775 }
 0xce1   :  { %v782_v59 = vmax.f32 %v776_v13, 1e-24 }
 0xce2   :  { %v1704_v19 = vmul.f32 %v1700_v52, %v3479_v45 }
 0xce3   :  { %2949 = vrsqrt.f32 %v782_v59  ;;  %vm810_vm13 = vweird.f32 %v782_v59 }
 0xce4   :  { %1844 = vxpose.xlu0.b32.end [2/2] (short) (narrow) %v1704_v19, 8 }
 0xce9   :  { %v2950_v36 = vpop.eup %2949 }
 0xcea   :  { %v805_v20 = vmul.f32 %v2950_v36, %v782_v59  ;;  %vm811_vm12 = vweird.f32 %v2950_v36 }
 0xceb   :  { %vm812_vm14 = vmor %vm810_vm13, %vm811_vm12 }
 0xcec   :  { %v806_v23 = vmul.f32 %v2950_v36, %v805_v20 }
 0xcee   :  { %v807_v25 = vmul.f32 0.5, %v806_v23 }
 0xcf0   :  { %v808_v29 = vsub.f32 1.5, %v807_v25 }
 0xcf2   :  { %v809_v15 = vmul.f32 %v2950_v36, %v808_v29 }
 0xcf4   :  { %v813_v4 = vsel %vm812_vm14, %v2950_v36, %v809_v15 }
 0xcf5   :  { %v1721_v24 = vpop.trf.xlu2  ;;  %v826_v55 = vmul.f32 %v813_v4, %v3325_v47  ;;  %v3655_v47 = vmul.f32 %v3479_v45, %v3197_v41 }
 0xcf6   :  { %2812 = vmatmul.msk.f32.vlgmr.msra.gmra.mxu3 %vm90_vm1, %v1721_v24  ;;  %2815 = vmatmul.msk.f32.vlgmr.msra.gmra.mxu1 %vm90_vm1, %v1721_v24 }
 0xcf7   :  { %1794 = vmatpush.msra.mxu3 %v3638_v33  ;;  %v830_v61 = vmul.f32 %v826_v55, %v3574_v34  ;;  %2009 = vmatpush.msra.mxu1 %v1984_v40  ;;  %v1983_v34 = vld [vmem:[#allocation2 + $0xe8] sm:$0xff] }
 0xcf9   :  { %1795 = vmatpush.msra.mxu3 %v3645_v22  ;;  %v877_v35 = vsel %vm90_vm1, %v830_v61, -inf  ;;  %1933 = vmatpush.msra.mxu2 %v830_v61 }
 0xcfa   :  { %v3651_v62 = vmax.f32 %v877_v35, %v878_v6  ;;  %2010 = vmatpush.msra.mxu1 %v1983_v34 }
 0xcfe   :  { %2813 = vmatmul.msk.f32.vlgmr.msrb.gmra.mxu3 %vm90_vm1, %v1721_v24 }
 0xcff   :  { %1892 = vmatpush.msrb.mxu3 %v3655_v47 }
 0xd01   :  { %1893 = vmatpush.msrb.mxu3 %v3661_v39 }
 0xd06   :  { %2814 = vmatmul.msk.f32.vlgmr.msra.gmra.mxu3 %vm90_vm1, %v1721_v24 }
 0xd07   :  { %1975 = vmatpush.msra.mxu3 %v1704_v19 }
 0xd09   :  { %1976 = vmatpush.msra.mxu3 %v3629_v26  ;;  %v1986_v26 = vld [vmem:[#allocation2 + $0x100] sm:$0xff] }
 0xd0a   :  { %2065 = vmatpush.msra.mxu0 %v1986_v26 }
 0xd0c   :  { %2066 = vmatpush.msra.mxu0 %v1985_v32 }
 0xd73   :  { %v1817_v30 = vpop.f32.mrf.mxu1 }
 0xd74   :  { %2816 = vmatmul.msk.f32.vlgmr.msrb.gmra.mxu2 %vm90_vm1, %v1817_v30 }
 0xd75   :  { %2037 = vmatpush.msrb.mxu2 %v1982_v10 }
 0xd77   :  { %2038 = vmatpush.msrb.mxu2 %v1981_v27 }
 0xd79   :  { %v1757_v41 = vpop.f32.mrf.mxu3 }
 0xd80   :  { %v1859_v45 = vpop.trf.xlu0 }
 0xd81   :  { %2818 = vmatmul.msk.f32.vlgmr.msrb.gmra.mxu1 %vm90_vm1, %v1859_v45  ;;  %2817 = vmatmul.msk.f32.vlgmr.msrb.gmra.mxu3 %vm90_vm1, %v1859_v45  ;;  %v1777_v42 = vpop.f32.mrf.mxu3 }
 0xd82   :  { %2819 = vmatmul.msk.f32.vlgmr.msra.gmra.mxu2 %vm90_vm1, %v1859_v45  ;;  %1989 = vst [vmem:[#allocation1] ss:$2 sm:$0xff] %v1777_v42  ;;  %2820 = vmatmul.msk.f32.vlgmr.msrb.gmra.mxu0 %vm90_vm1, %v1859_v45 }
 0xd89   :  { %v1797_v46 = vpop.f32.mrf.mxu3 }
 0xdf7   :  { %v3672_v0 = vpop.f32.mrf.mxu2 }
 0xdfe   :  { %v1915_v1 = vpop.f32.mrf.mxu1 }
 0xdff   :  { %1991 = vst [vmem:[#allocation1 + $0x1] ss:$2 sm:$0xff] %v1915_v1  ;;  %v1955_v53 = vpop.f32.mrf.mxu0 }
 0xe00   :  { %2821 = vmatmul.msk.f32.vlgmr.msra.gmra.mxu3 %vm90_vm1, %v1955_v53 }
 0xe04   :  { %v1895_v56 = vpop.f32.mrf.mxu3 }
 0xe05   :  { %v1935_v28 = vpop.f32.mrf.mxu2 }
 0xe06   :  { %v1992_v50 = vld.sshfl [vmem:[#allocation1] sm:$0xff pattern:$0x75316420] }
 0xe07   :  { %2019 = vst [vmem:[#allocation1 + $0x1] ss:$2 sm:$0xff] %v1895_v56  ;;  %2822 = vmatmul.msk.f32.vlgmr.msra.gmra.mxu1 %vm90_vm1, %v1992_v50 }
 0xe08   :  { %2017 = vst [vmem:[#allocation1] ss:$2 sm:$0xff] %v1757_v41 }
 0xe0f   :  { %v2020_v63 = vld.sshfl [vmem:[#allocation1] sm:$0xff pattern:$0x75316420] }
 0xe10   :  { %2045 = vst [vmem:[#allocation1] ss:$2 sm:$0xff] %v1797_v46  ;;  %2823 = vmatmul.msk.f32.vlgmr.msrb.gmra.mxu2 %vm90_vm1, %v2020_v63 }
 0xe11   :  { %2047 = vst [vmem:[#allocation1 + $0x1] ss:$2 sm:$0xff] %v1935_v28 }
 0xe18   :  { %v2048_v5 = vld.sshfl [vmem:[#allocation1] sm:$0xff pattern:$0x75316420] }
 0xe19   :  { %2824 = vmatmul.msk.f32.vlgmr.msra.gmra.mxu0 %vm90_vm1, %v2048_v5 }
 0xe83   :  { %v3680_v3 = vpop.f32.mrf.mxu3 }
 0xe84   :  { %v2012_v38 = vpop.f32.mrf.mxu1 }
 0xe93   :  { %v2040_v16 = vpop.f32.mrf.mxu2 }
 0xe94   :  { %v2041_v9 = vadd.f32 %v2040_v16, %v2012_v38  ;;  %v2204_v38 = vld [vmem:[#allocation2 + $0x118] sm:$0xff]  ;;  %v2203_v16 = vld [vmem:[#allocation2 + $0x110] sm:$0xff] }
 0xe95   :  { %2227 = vmatpush.msra.mxu2 %v2204_v38 }
 0xe96   :  { %v2068_v49 = vpop.f32.mrf.mxu0 }
 0xe97   :  { %v2071_v2 = vadd.f32 %v2068_v49, %v2041_v9  ;;  %2228 = vmatpush.msra.mxu2 %v2203_v16 }
 0xe99   :  { %v2073_v17 = vrot.slane %v2071_v2, 4  ;;  %2825 = vmatpush.msk.msrb.mxu3 %vm1614_vm3, %v2071_v2 }
 0xe9a   :  { %2826 = vmatmul.msk.f32.vlgmr.msrb.gmra.mxu3 %vm1450_vm2, %v3672_v0 }
 0xe9b   :  { %2827 = vmatpush.msk.msrb.mxu1 %vm1614_vm3, %v2073_v17 }
 0xe9c   :  { %2828 = vmatmul.msk.f32.vlgmr.msrb.gmra.mxu1 %vm1450_vm2, %v3680_v3 }
 0xf19   :  { %v2121_v60 = vpop.f32.mrf.mxu1 }
 0xf1a   :  { %v2127_v18 = vadd.f32 %v2864_v11, %v2121_v60 }
 0xf1c   :  { %v2129_v52 = vmul.f32 %v2127_v18, %v2127_v18 }
 0xf1d   :  { %v2096_v13 = vpop.f32.mrf.mxu3 }
 0xf1e   :  { %v2126_v59 = vadd.f32 %v2864_v11, %v2096_v13  ;;  %v2134_v8 = vsel %vm2130_vm4, %v2129_v52, 0.0 }
 0xf1f   :  { %2135 = vadd.xlane.f32.xlu2 %v2134_v8 }
 0xf20   :  { %v2128_v19 = vmul.f32 %v2126_v59, %v2126_v59 }
 0xf22   :  { %v2131_v37 = vsel %vm2130_vm4, %v2128_v19, 0.0 }
 0xf23   :  { %2132 = vadd.xlane.f32.xlu1 %v2131_v37 }
 0xf92   :  { %v2136_v54 = vpop.xlane.xlu2 %2135 }
 0xf93   :  { %v2138_v7 = vmax.f32 %v2136_v54, 1e-24 }
 0xf95   :  { %2951 = vrsqrt.f32 %v2138_v7  ;;  %vm2155_vm5 = vweird.f32 %v2138_v7 }
 0xf96   :  { %v2133_v36 = vpop.xlane.xlu1 %2132 }
 0xf97   :  { %v2137_v57 = vmax.f32 %v2133_v36, 1e-24 }
 0xf99   :  { %2953 = vrsqrt.f32 %v2137_v57  ;;  %vm2145_vm8 = vweird.f32 %v2137_v57 }
 0xf9b   :  { %v2952_v20 = vpop.eup %2951 }
 0xf9c   :  { %v2150_v21 = vmul.f32 %v2952_v20, %v2138_v7  ;;  %vm2156_vm0 = vweird.f32 %v2952_v20 }
 0xf9d   :  { %vm2157_vm6 = vmor %vm2155_vm5, %vm2156_vm0 }
 0xf9e   :  { %v2151_v23 = vmul.f32 %v2952_v20, %v2150_v21 }
 0xf9f   :  { %v2954_v48 = vpop.eup %2953 }
 0xfa0   :  { %v2152_v25 = vmul.f32 0.5, %v2151_v23  ;;  %v2140_v29 = vmul.f32 %v2954_v48, %v2137_v57  ;;  %vm2146_vm7 = vweird.f32 %v2954_v48 }
 0xfa1   :  { %vm2147_vm9 = vmor %vm2145_vm8, %vm2146_vm7 }
 0xfa2   :  { %v2153_v44 = vsub.f32 1.5, %v2152_v25  ;;  %v2141_v12 = vmul.f32 %v2954_v48, %v2140_v29 }
 0xfa4   :  { %v2154_v15 = vmul.f32 %v2952_v20, %v2153_v44  ;;  %v2142_v31 = vmul.f32 0.5, %v2141_v12 }
 0xfa6   :  { %v2143_v4 = vsub.f32 1.5, %v2142_v31  ;;  %v2158_v24 = vsel %vm2157_vm6, %v2952_v20, %v2154_v15 }
 0xfa7   :  { %v2160_v55 = vmul.f32 %v2158_v24, %v2127_v18 }
 0xfa8   :  { %v2144_v61 = vmul.f32 %v2954_v48, %v2143_v4 }
 0xfa9   :  { %v2162_v35 = vmax.f32 %v2160_v55, 0.0 }
 0xfaa   :  { %v2148_v6 = vsel %vm2147_vm9, %v2954_v48, %v2144_v61 }
 0xfab   :  { %v2166_v30 = vsel %vm2130_vm4, %v2162_v35, 0.0  ;;  %v2159_v41 = vmul.f32 %v2148_v6, %v2126_v59  ;;  %v2173_v10 = vmul.f32 %v2162_v35, %v2162_v35 }
 0xfac   :  { %2167 = vadd.xlane.f32.xlu1 %v2166_v30 }
 0xfad   :  { %v2161_v45 = vmax.f32 %v2159_v41, 0.0  ;;  %v2177_v27 = vsel %vm2130_vm4, %v2173_v10, 0.0 }
 0xfaf   :  { %v2163_v42 = vsel %vm2130_vm4, %v2161_v45, 0.0  ;;  %v2172_v40 = vmul.f32 %v2161_v45, %v2161_v45 }
 0xfb1   :  { %v2174_v34 = vsel %vm2130_vm4, %v2172_v40, 0.0  ;;  %v2865_v40 = vld [vmem:[#allocation2 + $0x120] ss:$0 sm:$0xff] }
 0xfb4   :  { %2164 = vadd.xlane.f32.xlu1 %v2163_v42  ;;  %v2513_v42 = vld [vmem:[#allocation2 + $0x150] sm:$0xff] }
 0xfbc   :  { %2175 = vadd.xlane.f32.xlu1 %v2174_v34 }
 0xfc4   :  { %2178 = vadd.xlane.f32.xlu1 %v2177_v27 }
0x101f   :  { %v2168_v26 = vpop.xlane.xlu1 %2167 }
0x1020   :  { %v2170_v53 = vsel %vm1614_vm3, %v2168_v26, 0.0 }
0x1027   :  { %v2165_v32 = vpop.xlane.xlu1 %2164 }
0x1028   :  { %v2169_v1 = vsel %vm1614_vm3, %v2165_v32, 0.0 }
0x1029   :  { %v2171_v56 = vadd.f32 %v2170_v53, %v2169_v1 }
0x102b   :  { %v2183_v50 = vmul.f32 %v2171_v56, %v3169_v51 }
0x102d   :  { %v2185_v49 = vmul.f32 %v2183_v50, %v2183_v50  ;;  %v2188_v37 = vsub.f32 %v2161_v45, %v2183_v50  ;;  %v2189_v54 = vsub.f32 %v2162_v35, %v2183_v50  ;;  %v2514_v45 = vld [vmem:[#allocation2 + $0x158] sm:$0xff] }
0x102f   :  { %v2176_v46 = vpop.xlane.xlu1 %2175 }
0x1030   :  { %v2180_v28 = vsel %vm1614_vm3, %v2176_v46, 0.0 }
0x1037   :  { %v2179_v63 = vpop.xlane.xlu1 %2178 }
0x1038   :  { %v2181_v5 = vsel %vm1614_vm3, %v2179_v63, 0.0 }
0x1039   :  { %v2182_v9 = vadd.f32 %v2181_v5, %v2180_v28 }
0x103b   :  { %v2184_v2 = vmul.f32 %v2182_v9, %v3169_v51 }
0x103d   :  { %v2186_v17 = vsub.f32 %v2184_v2, %v2185_v49 }
0x103f   :  { %v2187_v11 = vmax.f32 %v2186_v17, 0.0 }
0x1041   :  { %v2190_v60 = vadd.f32 1e-05, %v2187_v11 }
0x1043   :  { %2955 = vrsqrt.f32 %v2190_v60  ;;  %vm2197_vm11 = vweird.f32 %v2190_v60 }
0x1049   :  { %v2956_v18 = vpop.eup %2955 }
0x104a   :  { %v2192_v52 = vmul.f32 %v2956_v18, %v2190_v60  ;;  %vm2198_vm10 = vweird.f32 %v2956_v18 }
0x104b   :  { %vm2199_vm12 = vmor %vm2197_vm11, %vm2198_vm10 }
0x104c   :  { %v2193_v13 = vmul.f32 %v2956_v18, %v2192_v52 }
0x104e   :  { %v2194_v59 = vmul.f32 0.5, %v2193_v13 }
0x1050   :  { %v2195_v8 = vsub.f32 1.5, %v2194_v59 }
0x1052   :  { %v2196_v19 = vmul.f32 %v2956_v18, %v2195_v8 }
0x1054   :  { %v2200_v7 = vsel %vm2199_vm12, %v2956_v18, %v2196_v19 }
0x1055   :  { %v2201_v36 = vmul.f32 %v2200_v7, %v2188_v37  ;;  %v2202_v57 = vmul.f32 %v2200_v7, %v2189_v54 }
0x1057   :  { %2207 = vst [vmem:[#allocation1] ss:$2 sm:$0xff] %v2201_v36  ;;  %v2469_v20 = vsel %vm2130_vm4, %v2201_v36, -inf  ;;  %v2476_v21 = vsel %vm2130_vm4, %v2202_v57, -inf }
0x1058   :  { %2209 = vst [vmem:[#allocation1 + $0x1] ss:$2 sm:$0xff] %v2202_v57  ;;  %v2470_v23 = vrot.slane %v2469_v20, 4  ;;  %v2477_v48 = vrot.slane %v2476_v21, 4 }
0x105a   :  { %v2471_v25 = vmax.f32 %v2469_v20, %v2470_v23  ;;  %v2478_v29 = vmax.f32 %v2476_v21, %v2477_v48 }
0x105c   :  { %v2472_v44 = vrot.slane %v2471_v25, 2  ;;  %v2479_v12 = vrot.slane %v2478_v29, 2 }
0x105e   :  { %v2473_v15 = vmax.f32 %v2471_v25, %v2472_v44  ;;  %v2480_v31 = vmax.f32 %v2478_v29, %v2479_v12 }
0x105f   :  { %v2210_v4 = vld.sshfl [vmem:[#allocation1] sm:$0xff pattern:$0x75316420] }
0x1060   :  { %2829 = vmatmul.msk.f32.vlgmr.msra.gmra.mxu2 %vm90_vm1, %v2210_v4  ;;  %v2474_v24 = vrot.slane %v2473_v15, 1  ;;  %v2481_v55 = vrot.slane %v2480_v31, 1 }
0x1062   :  { %v2475_v61 = vmax.f32 %v2473_v15, %v2474_v24  ;;  %v2482_v35 = vmax.f32 %v2480_v31, %v2481_v55 }
0x1064   :  { %v3701_v6 = vsel %vm2525_vm15, %v2482_v35, %v2475_v61  ;;  %v2358_v61 = vld [vmem:[#allocation2 + $0x130] sm:$0xff]  ;;  %v2357_v35 = vld [vmem:[#allocation2 + $0x128] sm:$0xff] }
0x1065   :  { %2381 = vmatpush.msra.mxu1 %v2358_v61  ;;  %v868_v61 = vsel %vm90_vm1, %v3645_v22, -inf }
0x1067   :  { %2382 = vmatpush.msra.mxu1 %v2357_v35  ;;  %v869_v35 = vsel %vm90_vm1, %v3638_v33, -inf  ;;  %v2515_v33 = vld [vmem:[#allocation2 + $0x160] sm:$0xff] }
0x10e3   :  { %v2230_v30 = vpop.f32.mrf.mxu2 }
0x10e4   :  { %v2234_v41 = vrot.slane %v2230_v30, 4  ;;  %2830 = vmatpush.msk.msrb.mxu0 %vm1614_vm3, %v2230_v30 }
0x10e5   :  { %2831 = vmatmul.msk.f32.vlgmr.msrb.gmra.mxu0 %vm1450_vm2, %v3672_v0 }
0x10e6   :  { %2832 = vmatpush.msk.msra.mxu3 %vm1614_vm3, %v2234_v41 }
0x10e7   :  { %2833 = vmatmul.msk.f32.vlgmr.msra.gmra.mxu3 %vm1450_vm2, %v3680_v3 }
0x10e8   :  { %2543 = vmatpush.msrb.mxu3 %v2514_v45 }
0x10ea   :  { %2544 = vmatpush.msrb.mxu3 %v2513_v42 }
0x10ef   :  { %2839 = vmatmul.msk.f32.vlgmr.msrb.gmra.mxu3 %vm90_vm1, %v3601_v14 }
0x1162   :  { %v2254_v34 = vpop.f32.mrf.mxu0 }
0x1163   :  { %v2281_v10 = vadd.f32 %v2865_v40, %v2254_v34  ;;  %v2520_v34 = vld [vmem:[#allocation2 + $0x188] sm:$0xff] }
0x1164   :  { %2645 = vmatpush.msra.mxu3 %v2520_v34 }
0x1165   :  { %v2283_v27 = vmul.f32 %v2281_v10, %v2281_v10 }
0x1167   :  { %v2285_v26 = vsel %vm2130_vm4, %v2283_v27, 0.0  ;;  %v2519_v27 = vld [vmem:[#allocation2 + $0x180] sm:$0xff] }
0x1168   :  { %2286 = vadd.xlane.f32.xlu1 %v2285_v26  ;;  %2646 = vmatpush.msra.mxu3 %v2519_v27 }
0x116a   :  { %v2276_v32 = vpop.f32.mrf.mxu3 }
0x116b   :  { %v2282_v46 = vadd.f32 %v2865_v40, %v2276_v32  ;;  %v2511_v32 = vld [vmem:[#allocation2 + $0x140] sm:$0xff] }
0x116d   :  { %v2284_v1 = vmul.f32 %v2282_v46, %v2282_v46 }
0x116f   :  { %v2288_v53 = vsel %vm2130_vm4, %v2284_v1, 0.0 }
0x1170   :  { %2289 = vadd.xlane.f32.xlu0 %v2288_v53  ;;  %v842_v53 = vsel %vm90_vm1, %v3655_v47, -inf }
0x11db   :  { %v2287_v56 = vpop.xlane.xlu1 %2286 }
0x11dc   :  { %v2291_v50 = vmax.f32 %v2287_v56, 1e-24 }
0x11de   :  { %2957 = vrsqrt.f32 %v2291_v50  ;;  %vm2299_vm14 = vweird.f32 %v2291_v50 }
0x11e3   :  { %v2290_v63 = vpop.xlane.xlu0 %2289 }
0x11e4   :  { %v2958_v28 = vpop.eup %2957  ;;  %v2292_v5 = vmax.f32 %v2290_v63, 1e-24  ;;  %v832_v63 = vsel %vm90_vm1, %v3556_v43, -inf }
0x11e5   :  { %v2294_v14 = vmul.f32 %v2958_v28, %v2291_v50  ;;  %vm2300_vm13 = vweird.f32 %v2958_v28 }
0x11e6   :  { %2959 = vrsqrt.f32 %v2292_v5  ;;  %vm2301_vm0 = vmor %vm2299_vm14, %vm2300_vm13  ;;  %vm2309_vm6 = vweird.f32 %v2292_v5 }
0x11e7   :  { %v2295_v38 = vmul.f32 %v2958_v28, %v2294_v14 }
0x11e9   :  { %v2296_v16 = vmul.f32 0.5, %v2295_v38 }
0x11eb   :  { %v2297_v9 = vsub.f32 1.5, %v2296_v16 }
0x11ec   :  { %v2960_v49 = vpop.eup %2959 }
0x11ed   :  { %v2298_v2 = vmul.f32 %v2958_v28, %v2297_v9  ;;  %v2304_v17 = vmul.f32 %v2960_v49, %v2292_v5  ;;  %vm2310_vm5 = vweird.f32 %v2960_v49 }
0x11ee   :  { %vm2311_vm7 = vmor %vm2309_vm6, %vm2310_vm5 }
0x11ef   :  { %v2305_v11 = vmul.f32 %v2960_v49, %v2304_v17  ;;  %v2302_v60 = vsel %vm2301_vm0, %v2958_v28, %v2298_v2 }
0x11f0   :  { %v2313_v18 = vmul.f32 %v2302_v60, %v2281_v10  ;;  %v2512_v10 = vld [vmem:[#allocation2 + $0x148] sm:$0xff] }
0x11f1   :  { %v2306_v52 = vmul.f32 0.5, %v2305_v11  ;;  %2568 = vmatpush.msrb.mxu1 %v2512_v10 }
0x11f2   :  { %v3713_v13 = vmax.f32 %v2313_v18, 0.0 }
0x11f3   :  { %v2307_v59 = vsub.f32 1.5, %v2306_v52  ;;  %2569 = vmatpush.msrb.mxu1 %v2511_v32 }
0x11f4   :  { %v2317_v8 = vsel %vm2130_vm4, %v3713_v13, 0.0  ;;  %v2326_v37 = vmul.f32 %v3713_v13, %v3713_v13 }
0x11f5   :  { %v2308_v19 = vmul.f32 %v2960_v49, %v2307_v59  ;;  %2318 = vadd.xlane.f32.xlu1 %v2317_v8 }
0x11f6   :  { %v2328_v7 = vsel %vm2130_vm4, %v2326_v37, 0.0 }
0x11f7   :  { %v2312_v54 = vsel %vm2311_vm7, %v2960_v49, %v2308_v19 }
0x11f8   :  { %v2314_v36 = vmul.f32 %v2312_v54, %v2282_v46  ;;  %v841_v46 = vsel %vm90_vm1, %v3661_v39, -inf }
0x11f9   :  { %v843_v50 = vmax.f32 %v841_v46, %v842_v53  ;;  %v2516_v46 = vld [vmem:[#allocation2 + $0x168] sm:$0xff]  ;;  %v2517_v53 = vld [vmem:[#allocation2 + $0x170] sm:$0xff] }
0x11fa   :  { %v2316_v57 = vmax.f32 %v2314_v36, 0.0 }
0x11fb   :  { %v844_v38 = vrot.slane %v843_v50, 4 }
0x11fc   :  { %v2320_v20 = vsel %vm2130_vm4, %v2316_v57, 0.0  ;;  %v2327_v21 = vmul.f32 %v2316_v57, %v2316_v57 }
0x11fd   :  { %2329 = vadd.xlane.f32.xlu1 %v2328_v7  ;;  %v845_v49 = vmax.f32 %v843_v50, %v844_v38 }
0x11fe   :  { %v2331_v23 = vsel %vm2130_vm4, %v2327_v21, 0.0 }
0x11ff   :  { %v846_v18 = vrot.slane %v845_v49, 2 }
0x1201   :  { %v847_v7 = vmax.f32 %v845_v49, %v846_v18 }
0x1205   :  { %2321 = vadd.xlane.f32.xlu1 %v2320_v20 }
0x120d   :  { %2332 = vadd.xlane.f32.xlu1 %v2331_v23 }
0x1268   :  { %v2319_v48 = vpop.xlane.xlu1 %2318 }
0x1269   :  { %v2323_v12 = vsel %vm1614_vm3, %v2319_v48, 0.0  ;;  %v848_v48 = vrot.slane %v847_v7, 1 }
0x1270   :  { %v2330_v25 = vpop.xlane.xlu1 %2329 }
0x1271   :  { %v2334_v24 = vsel %vm1614_vm3, %v2330_v25, 0.0 }
0x1278   :  { %v2322_v29 = vpop.xlane.xlu1 %2321 }
0x1279   :  { %v2324_v44 = vsel %vm1614_vm3, %v2322_v29, 0.0 }
0x127a   :  { %v2325_v15 = vadd.f32 %v2324_v44, %v2323_v12 }
0x127c   :  { %v2337_v31 = vmul.f32 %v2325_v15, %v3169_v51 }
0x127e   :  { %v2339_v41 = vmul.f32 %v2337_v31, %v2337_v31  ;;  %v2343_v2 = vsub.f32 %v2316_v57, %v2337_v31 }
0x1280   :  { %v2333_v4 = vpop.xlane.xlu1 %2332 }
0x1281   :  { %v2335_v55 = vsel %vm1614_vm3, %v2333_v4, 0.0 }
0x1282   :  { %v2336_v30 = vadd.f32 %v2335_v55, %v2334_v24 }
0x1284   :  { %v2338_v45 = vmul.f32 %v2336_v30, %v3169_v51  ;;  %v833_v51 = vsel %vm90_vm1, %v3548_v58, -inf  ;;  %v2342_v58 = vsub.f32 %v3713_v13, %v2337_v31  ;;  %v849_v31 = vmax.f32 %v847_v7, %v848_v48 }
0x1285   :  { %v834_v5 = vmax.f32 %v832_v63, %v833_v51  ;;  %v870_v30 = vmax.f32 %v868_v61, %v869_v35  ;;  %v2518_v51 = vld [vmem:[#allocation2 + $0x178] sm:$0xff] }
0x1286   :  { %v2340_v42 = vsub.f32 %v2338_v45, %v2339_v41  ;;  %v880_v41 = vrot.slane %v3651_v62, 4 }
0x1287   :  { %v835_v9 = vrot.slane %v834_v5, 4  ;;  %v871_v45 = vrot.slane %v870_v30, 4 }
0x1288   :  { %v2341_v40 = vmax.f32 %v2340_v42, 0.0  ;;  %v881_v42 = vmax.f32 %v3651_v62, %v880_v41 }
0x1289   :  { %v836_v17 = vmax.f32 %v834_v5, %v835_v9 }
0x128a   :  { %v2344_v26 = vadd.f32 1e-05, %v2341_v40  ;;  %v872_v40 = vmax.f32 %v870_v30, %v871_v45  ;;  %v882_v34 = vrot.slane %v881_v42, 2 }
0x128b   :  { %v837_v19 = vrot.slane %v836_v17, 2 }
0x128c   :  { %2961 = vrsqrt.f32 %v2344_v26  ;;  %vm2351_vm9 = vweird.f32 %v2344_v26  ;;  %v873_v10 = vrot.slane %v872_v40, 2  ;;  %v883_v27 = vmax.f32 %v881_v42, %v882_v34  ;;  %v2685_v34 = vld [vmem:[#allocation2 + $0x1c0] sm:$0xff] }
0x128d   :  { %v838_v57 = vmax.f32 %v836_v17, %v837_v19 }
0x128e   :  { %v884_v22 = vrot.slane %v883_v27, 1 }
0x128f   :  { %v839_v44 = vrot.slane %v838_v57, 1 }
0x1291   :  { %v840_v24 = vmax.f32 %v838_v57, %v839_v44 }
0x1292   :  { %v2962_v1 = vpop.eup %2961 }
0x1293   :  { %v2346_v56 = vmul.f32 %v2962_v1, %v2344_v26  ;;  %vm2352_vm8 = vweird.f32 %v2962_v1  ;;  %v2551_v55 = vsel %vm2525_vm15, %v849_v31, %v840_v24  ;;  %v874_v26 = vmax.f32 %v872_v40, %v873_v10  ;;  %v2684_v10 = vld [vmem:[#allocation2 + $0x1b8] sm:$0xff] }
0x1294   :  { %vm2353_vm10 = vmor %vm2351_vm9, %vm2352_vm8 }
0x1295   :  { %v2347_v28 = vmul.f32 %v2962_v1, %v2346_v56  ;;  %v875_v62 = vrot.slane %v874_v26, 1  ;;  %v885_v56 = vmax.f32 %v883_v27, %v884_v22  ;;  %v2683_v27 = vld [vmem:[#allocation2 + $0x1b0] sm:$0xff] }
0x1297   :  { %v2348_v14 = vmul.f32 0.5, %v2347_v28  ;;  %v876_v50 = vmax.f32 %v874_v26, %v875_v62  ;;  %v2682_v26 = vld [vmem:[#allocation2 + $0x1a8] sm:$0xff] }
0x1299   :  { %v2349_v16 = vsub.f32 1.5, %v2348_v14  ;;  %v2576_v63 = vsel %vm2525_vm15, %v885_v56, %v876_v50  ;;  %v2867_v50 = vld [vmem:[#allocation2 + $0x1a0] ss:$0 sm:$0xff] }
0x129b   :  { %v2350_v39 = vmul.f32 %v2962_v1, %v2349_v16 }
0x129d   :  { %v2354_v47 = vsel %vm2353_vm10, %v2962_v1, %v2350_v39 }
0x129e   :  { %v2355_v11 = vmul.f32 %v2354_v47, %v2342_v58  ;;  %v2356_v60 = vmul.f32 %v2354_v47, %v2343_v2  ;;  %v2522_v2 = vld [vmem:[#allocation2 + $0x198] sm:$0xff]  ;;  %v2521_v47 = vld [vmem:[#allocation2 + $0x190] sm:$0xff] }
0x12a0   :  { %v2483_v43 = vsel %vm2130_vm4, %v2355_v11, -inf  ;;  %v2490_v52 = vsel %vm2130_vm4, %v2356_v60, -inf  ;;  %2361 = vst [vmem:[#allocation1] ss:$2 sm:$0xff] %v2355_v11 }
0x12a1   :  { %v2484_v59 = vrot.slane %v2483_v43, 4  ;;  %v2491_v8 = vrot.slane %v2490_v52, 4  ;;  %2363 = vst [vmem:[#allocation1 + $0x1] ss:$2 sm:$0xff] %v2356_v60 }
0x12a3   :  { %v2485_v37 = vmax.f32 %v2483_v43, %v2484_v59  ;;  %v2492_v54 = vmax.f32 %v2490_v52, %v2491_v8  ;;  %v2688_v43 = vld [vmem:[#allocation2 + $0x1d8] sm:$0x3]  ;;  %v2687_v52 = vld [vmem:[#allocation2 + $0x1d0] sm:$0xff]  ;;  %v2686_v8 = vld [vmem:[#allocation2 + $0x1c8] sm:$0xff] }
0x12a5   :  { %v2486_v13 = vrot.slane %v2485_v37, 2  ;;  %v2493_v36 = vrot.slane %v2492_v54, 2 }
0x12a7   :  { %v2487_v20 = vmax.f32 %v2485_v37, %v2486_v13  ;;  %v2494_v21 = vmax.f32 %v2492_v54, %v2493_v36 }
0x12a8   :  { %v2364_v23 = vld.sshfl [vmem:[#allocation1] sm:$0xff pattern:$0x75316420] }
0x12a9   :  { %2834 = vmatmul.msk.f32.vlgmr.msra.gmra.mxu1 %vm90_vm1, %v2364_v23  ;;  %v2488_v25 = vrot.slane %v2487_v20, 1  ;;  %v2495_v29 = vrot.slane %v2494_v21, 1 }
0x12aa   :  { %2671 = vmatpush.msra.mxu1 %v2522_v2 }
0x12ab   :  { %v2489_v12 = vmax.f32 %v2487_v20, %v2488_v25  ;;  %v2496_v15 = vmax.f32 %v2494_v21, %v2495_v29 }
0x12ac   :  { %2672 = vmatpush.msra.mxu1 %v2521_v47 }
0x12ad   :  { %v2628_v4 = vsel %vm2525_vm15, %v2496_v15, %v2489_v12 }
0x12ae   :  { %2843 = vmatmul.msk.f32.vlgmr.msra.gmra.mxu3 %vm90_vm1, %v2628_v4 }
0x12b1   :  { %2840 = vmatmul.msk.f32.vlgmr.msrb.gmra.mxu1 %vm90_vm1, %v2551_v55 }
0x1326   :  { %v2384_v32 = vpop.f32.mrf.mxu1 }
0x1327   :  { %v2388_v1 = vrot.slane %v2384_v32, 4  ;;  %2835 = vmatpush.msk.msrb.mxu2 %vm1614_vm3, %v2384_v32 }
0x1328   :  { %2836 = vmatmul.msk.f32.vlgmr.msrb.gmra.mxu2 %vm1450_vm2, %v3672_v0  ;;  %v2866_v0 = vld [vmem:[#allocation2 + $0x138] ss:$0 sm:$0xff] }
0x1329   :  { %2837 = vmatpush.msk.msra.mxu0 %vm1614_vm3, %v2388_v1  ;;  %2593 = vmatpush.msra.mxu2 %v2516_v46  ;;  %v2546_v46 = vpop.f32.mrf.mxu3 }
0x132a   :  { %2838 = vmatmul.msk.f32.vlgmr.msra.gmra.mxu0 %vm1450_vm2, %v3680_v3  ;;  %vm2695_vm2 = vcmask 1041408  }
0x132b   :  { %2594 = vmatpush.msra.mxu2 %v2515_v33  ;;  %2619 = vmatpush.msrb.mxu0 %v2518_v51 }
0x132d   :  { %2620 = vmatpush.msrb.mxu0 %v2517_v53  ;;  %2845 = vmatpush.msk.msrb.mxu2 %vm2695_vm2, %v2688_v43 }
0x132e   :  { %v2571_v32 = vpop.f32.mrf.mxu1 }
0x132f   :  { %2709 = vmatpush.msrb.mxu2 %v2687_v52  ;;  %v2572_v22 = vadd.f32 %v2571_v32, %v2546_v46 }
0x1330   :  { %2841 = vmatmul.msk.f32.vlgmr.msra.gmra.mxu2 %vm90_vm1, %v2576_v63 }
0x1331   :  { %2710 = vmatpush.msrb.mxu2 %v2686_v8  ;;  %v2648_v53 = vpop.f32.mrf.mxu3 }
0x1332   :  { %2842 = vmatmul.msk.f32.vlgmr.msrb.gmra.mxu0 %vm90_vm1, %v3701_v6 }
0x1333   :  { %2711 = vmatpush.msrb.mxu2 %v2685_v34 }
0x1335   :  { %2712 = vmatpush.msrb.mxu2 %v2684_v10 }
0x1337   :  { %2713 = vmatpush.msrb.mxu2 %v2683_v27 }
0x1339   :  { %2714 = vmatpush.msrb.mxu2 %v2682_v26 }
0x13a7   :  { %v2430_v14 = vpop.f32.mrf.mxu0 }
0x13a8   :  { %v2436_v16 = vadd.f32 %v2866_v0, %v2430_v14  ;;  %v2868_v14 = vld [vmem:[#allocation2 + $0x1e0] ss:$0 sm:$0xff] }
0x13aa   :  { %v2438_v9 = vmul.f32 %v2436_v16, %v2436_v16 }
0x13ab   :  { %v2408_v28 = vpop.f32.mrf.mxu2 }
0x13ac   :  { %v2435_v5 = vadd.f32 %v2866_v0, %v2408_v28  ;;  %v2442_v39 = vsel %vm2130_vm4, %v2438_v9, 0.0 }
0x13ae   :  { %v2437_v38 = vmul.f32 %v2435_v5, %v2435_v5 }
0x13af   :  { %v2622_v51 = vpop.f32.mrf.mxu0 }
0x13b0   :  { %v2439_v3 = vsel %vm2130_vm4, %v2437_v38, 0.0 }
0x13b1   :  { %2440 = vadd.xlane.f32.xlu1 %v2439_v3 }
0x13b3   :  { %v2596_v1 = vpop.f32.mrf.mxu2 }
0x13b4   :  { %v2599_v33 = vadd.f32 %v2596_v1, %v2572_v22 }
0x13b6   :  { %v2625_v62 = vadd.f32 %v2622_v51, %v2599_v33 }
0x13b8   :  { %v2651_v56 = vadd.f32 %v2648_v53, %v2625_v62 }
0x13b9   :  { %2443 = vadd.xlane.f32.xlu1 %v2442_v39 }
0x1424   :  { %v2441_v49 = vpop.xlane.xlu1 %2440 }
0x1425   :  { %v2445_v58 = vmax.f32 %v2441_v49, 1e-24 }
0x1427   :  { %2963 = vrsqrt.f32 %v2445_v58  ;;  %vm2453_vm11 = vweird.f32 %v2445_v58 }
0x142c   :  { %v2444_v6 = vpop.xlane.xlu1 %2443 }
0x142d   :  { %v2964_v17 = vpop.eup %2963  ;;  %v2446_v11 = vmax.f32 %v2444_v6, 1e-24 }
0x142e   :  { %v2448_v60 = vmul.f32 %v2964_v17, %v2445_v58  ;;  %vm2454_vm3 = vweird.f32 %v2964_v17 }
0x142f   :  { %2965 = vrsqrt.f32 %v2446_v11  ;;  %vm2455_vm12 = vmor %vm2453_vm11, %vm2454_vm3  ;;  %vm2463_vm14 = vweird.f32 %v2446_v11 }
0x1430   :  { %v2449_v18 = vmul.f32 %v2964_v17, %v2448_v60 }
0x1432   :  { %v2450_v59 = vmul.f32 0.5, %v2449_v18 }
0x1434   :  { %v2451_v19 = vsub.f32 1.5, %v2450_v59 }
0x1435   :  { %v2966_v37 = vpop.eup %2965 }
0x1436   :  { %v2452_v54 = vmul.f32 %v2964_v17, %v2451_v19  ;;  %v2458_v7 = vmul.f32 %v2966_v37, %v2446_v11  ;;  %vm2464_vm13 = vweird.f32 %v2966_v37 }
0x1437   :  { %vm2465_vm0 = vmor %vm2463_vm14, %vm2464_vm13 }
0x1438   :  { %v2456_v13 = vsel %vm2455_vm12, %v2964_v17, %v2452_v54  ;;  %v2459_v36 = vmul.f32 %v2966_v37, %v2458_v7 }
0x1439   :  { %v2467_v57 = vmul.f32 %v2456_v13, %v2435_v5 }
0x143a   :  { %v2460_v20 = vmul.f32 0.5, %v2459_v36 }
0x143b   :  { %v2497_v21 = vsel %vm2130_vm4, %v2467_v57, -inf }
0x143c   :  { %v2498_v23 = vrot.slane %v2497_v21, 4  ;;  %v2461_v48 = vsub.f32 1.5, %v2460_v20 }
0x143e   :  { %v2499_v25 = vmax.f32 %v2497_v21, %v2498_v23  ;;  %v2462_v29 = vmul.f32 %v2966_v37, %v2461_v48 }
0x1440   :  { %v2466_v44 = vsel %vm2465_vm0, %v2966_v37, %v2462_v29  ;;  %v2500_v15 = vrot.slane %v2499_v25, 2 }
0x1441   :  { %v2468_v12 = vmul.f32 %v2466_v44, %v2436_v16 }
0x1442   :  { %v2501_v24 = vmax.f32 %v2499_v25, %v2500_v15 }
0x1443   :  { %v2504_v31 = vsel %vm2130_vm4, %v2468_v12, -inf }
0x1444   :  { %v2505_v4 = vrot.slane %v2504_v31, 4  ;;  %v2502_v30 = vrot.slane %v2501_v24, 1 }
0x1446   :  { %v2506_v55 = vmax.f32 %v2504_v31, %v2505_v4  ;;  %v2503_v45 = vmax.f32 %v2501_v24, %v2502_v30 }
0x1448   :  { %v2507_v61 = vrot.slane %v2506_v55, 2 }
0x144a   :  { %v2508_v35 = vmax.f32 %v2506_v55, %v2507_v61 }
0x144c   :  { %v2509_v41 = vrot.slane %v2508_v35, 1 }
0x144e   :  { %v2510_v42 = vmax.f32 %v2508_v35, %v2509_v41 }
0x1450   :  { %v2654_v40 = vsel %vm2525_vm15, %v2510_v42, %v2503_v45 }
0x1451   :  { %2844 = vmatmul.msk.f32.vlgmr.msra.gmra.mxu1 %vm90_vm1, %v2654_v40  ;;  %vm2691_vm1 = vcmask 408576  }
0x14ce   :  { %v2674_v63 = vpop.f32.mrf.mxu1 }
0x14cf   :  { %v2677_v0 = vadd.f32 %v2674_v63, %v2651_v56 }
0x14d1   :  { %v2680_v28 = vadd.f32 %v2867_v50, %v2677_v0 }
0x14d3   :  { %v2681_v5 = vmax.f32 %v2680_v28, 0.0 }
0x14d5   :  { %2846 = vmatmul.msk.f32.vlgmr.msrb.gmra.mxu2 %vm2691_vm1, %v2681_v5 }
0x1558   :  { %v2716_v38 = vpop.f32.mrf.mxu2 }
0x1559   :  { %v2717_v16 = vadd.f32 %v2868_v14, %v2716_v38 }
0x155b   :  { %2719 = vst [vmem:[#allocation5] sm:$0x3] %v2717_v16 }
0x155c   :  { %2730 = dma.vmem_to_hbm [thread:$0]  %s2726_s24, 32, %s2728_s27, [#allocation4]  }
0x155d   :  { %3022 = dma.done.wait [#allocation4], 32  }
0x155e   :  { %3023 = vsyncadd [#allocation4], 4294967264 }
0x155f   :  { %2735 = vsyncpa [#allocation3], 1 }
0x1560   :  { %2736 = vsyncpa [#allocation4], 1 }

</bundles_post_ra>
